<compile_context>
chip_gen: v7x
topology: tpu7x:2x2x1
jax: 0.10.0
libtpu: 0.0.40
codegen_flags: <defaults>
</compile_context>

<pallas_src>
import functools

import numpy as np
import jax
import jax.numpy as jnp
from jax import lax
from jax.experimental import pallas as pl
from jax.experimental.pallas import tpu as pltpu

NUM_LAYERS = 2
NUM_HEADS = 10
LN_EPS = 1e-5

WEIGHT_KEYS = ['embed',
               'wq', 'bq', 'wk', 'bk', 'wv', 'bv', 'wo', 'bo', 'n1g', 'n1b',
               'w1', 'b1', 'w2', 'b2', 'n2g', 'n2b',
               'fcw', 'fcb', 'lng', 'lnb']


def _layer_norm(v, g, b):
    mu = jnp.mean(v, axis=-1, keepdims=True)
    var = jnp.mean((v - mu) ** 2, axis=-1, keepdims=True)
    return (v - mu) * lax.rsqrt(var + LN_EPS) * g + b


def transformer_kernel(ids_ref, emb_ref,
                       wq_ref, bq_ref, wk_ref, bk_ref, wv_ref, bv_ref,
                       wo_ref, bo_ref, n1g_ref, n1b_ref,
                       w1_ref, b1_ref, w2_ref, b2_ref, n2g_ref, n2b_ref,
                       fcw_ref, fcb_ref, lng_ref, lnb_ref,
                       logits_ref, preds_ref,
                       *, tb, seq_len):
    TB, S, H = tb, seq_len, NUM_HEADS
    V, D = emb_ref.shape
    C = fcw_ref.shape[-1]
    R = TB * S                       # rows in this batch tile (batch-major, seq-minor)
    hd = D // H
    scale = 1.0 / float(np.sqrt(hd))

    # ---- fused embedding gather: one-hot(ids) @ embed == one MXU push ----
    ids = ids_ref[...]                                               # (R, 1) int32
    onehot = (lax.broadcasted_iota(jnp.int32, (R, V), 1) == ids).astype(jnp.float32)
    x = jnp.dot(onehot, emb_ref[...], preferred_element_type=jnp.float32)   # (R, D)

    # ---- constants shared by both layers (VPU only; no integer div/mod) ----
    lane = lax.broadcasted_iota(jnp.int32, (1, D), 1)
    head_masks = [((lane >= h * hd) & (lane < (h + 1) * hd)).astype(jnp.float32)
                  for h in range(H)]
    # Block-diagonal (per-sample) attention bias; rows/cols in (batch, seq) order.
    col = lax.broadcasted_iota(jnp.int32, (S, R), 1)
    bias_blk = jnp.concatenate(
        [jnp.where((col >= b * S) & (col < (b + 1) * S), 0.0, -1e30)
         for b in range(TB)], axis=0)                                # (R, R)
    # Head-major stacking repeats the same block-diagonal per head.
    bias = bias_blk if H == 1 else jnp.concatenate([bias_blk] * H, axis=0)   # (H*R, R)
    # Selector picking sequence position 0 of every sample: x0 = sel0 @ x.
    zr = lax.broadcasted_iota(jnp.int32, (TB, R), 0)
    zc = lax.broadcasted_iota(jnp.int32, (TB, R), 1)
    sel0 = (zc == zr * S).astype(jnp.float32)                        # (TB, R)

    for l in range(NUM_LAYERS):
        # --- multi-head self attention (post-norm layer, PyTorch default) ---
        q = jnp.dot(x, wq_ref[l], preferred_element_type=jnp.float32) + bq_ref[l]
        k = jnp.dot(x, wk_ref[l], preferred_element_type=jnp.float32) + bk_ref[l]
        v = jnp.dot(x, wv_ref[l], preferred_element_type=jnp.float32) + bv_ref[l]
        q = q * scale

        # Stacked-head attention: head h occupies the row block [h*R, (h+1)*R);
        # its query lanes outside head h are zeroed, so q_stk @ k.T contracts only
        # the head-h feature slice.  All heads & samples share 2 MXU matmuls and
        # one masked softmax.
        q_stk = jnp.concatenate([q * head_masks[h] for h in range(H)], axis=0)  # (H*R, D)
        scores = lax.dot_general(q_stk, k, (((1,), (1,)), ((), ())),
                                 preferred_element_type=jnp.float32) + bias
        scores = scores - jnp.max(scores, axis=-1, keepdims=True)
        p = jnp.exp(scores)
        p = p * pl.reciprocal(jnp.sum(p, axis=-1, keepdims=True), approx=True)
        o_stk = jnp.dot(p, v, preferred_element_type=jnp.float32)    # (H*R, D)

        # Re-assemble heads: keep only head h's lanes of its row block, sum over h.
        attn = o_stk[0:R, :] * head_masks[0]
        for h in range(1, H):
            attn = attn + o_stk[h * R:(h + 1) * R, :] * head_masks[h]

        attn = jnp.dot(attn, wo_ref[l], preferred_element_type=jnp.float32) + bo_ref[l]
        x = _layer_norm(x + attn, n1g_ref[l], n1b_ref[l])

        # --- feed forward: linear -> relu -> linear ---
        hdn = jnp.dot(x, w1_ref[l], preferred_element_type=jnp.float32) + b1_ref[l]
        hdn = jnp.maximum(hdn, 0.0)
        ff = jnp.dot(hdn, w2_ref[l], preferred_element_type=jnp.float32) + b2_ref[l]
        x = _layer_norm(x + ff, n2g_ref[l], n2b_ref[l])

    # first sequence position of each sample -> fc -> LayerNorm(num_classes)
    x0 = jnp.dot(sel0, x, preferred_element_type=jnp.float32)        # (TB, D)
    logits = jnp.dot(x0, fcw_ref[...], preferred_element_type=jnp.float32) + fcb_ref[...]
    logits = _layer_norm(logits, lng_ref[...], lnb_ref[...])         # (TB, C)
    logits_ref[...] = logits

    # fused argmax (index of first maximum, matching jnp.argmax semantics)
    cls = lax.broadcasted_iota(jnp.int32, (TB, C), 1).astype(jnp.float32)
    mx = jnp.max(logits, axis=-1, keepdims=True)
    first_max = jnp.min(jnp.where(logits == mx, cls, float(C)), axis=-1, keepdims=True)
    preds_ref[...] = first_max.astype(jnp.int32)


def _pick_batch_tile(batch):
    # Whole batch per grid step when small (fills MXU sublanes, amortizes the ~0.35us
    # per-step cost); otherwise a multiple of 8 dividing the batch so sub-blocks
    # respect the (8, 128) block divisibility rule.
    if batch <= 16:
        return batch
    for cand in (16, 8):
        if batch % cand == 0:
            return cand
    return batch


@jax.jit
def model_forward(word_ids, params):
    B, S = word_ids.shape
    C = params['fcw'].shape[-1]
    TB = _pick_batch_tile(B)
    n_tiles = B // TB

    ids = word_ids.astype(jnp.int32).reshape(B * S, 1)
    weights = [params[k] for k in WEIGHT_KEYS]

    def resident(arr):
        nd = arr.ndim
        return pl.BlockSpec(arr.shape, lambda b, _n=nd: (0,) * _n)

    in_specs = ([pl.BlockSpec((TB * S, 1), lambda b: (b, 0))]
                + [resident(w) for w in weights])
    out_specs = [pl.BlockSpec((TB, C), lambda b: (b, 0)),
                 pl.BlockSpec((TB, 1), lambda b: (b, 0))]

    kernel = functools.partial(transformer_kernel, tb=TB, seq_len=S)

    logits, preds = pl.pallas_call(
        kernel,
        out_shape=(jax.ShapeDtypeStruct((B, C), jnp.float32),
                   jax.ShapeDtypeStruct((B, 1), jnp.int32)),
        grid_spec=pltpu.PrefetchScalarGridSpec(
            num_scalar_prefetch=0,
            grid=(n_tiles,),
            in_specs=in_specs,
            out_specs=out_specs,
        ),
        compiler_params=pltpu.CompilerParams(
            dimension_semantics=("parallel",)),   # v7x: batch tiles across both TCs
    )(ids, *weights)

    return logits, preds[:, 0]


def build_params(key, vocab_len, embed_dim, num_classes, dim_ff):
    keys = iter(jax.random.split(key, 64))

    def rnd(shape, scale=0.05):
        return (scale * jax.random.normal(next(keys), shape)).astype(jnp.float32)

    D, F, C, L = embed_dim, dim_ff, num_classes, NUM_LAYERS
    p = {}
    p['embed'] = rnd((vocab_len, D), 1.0)
    # Attention in_proj split into q/k/v, stored transposed: x @ w
    p['wq'] = rnd((L, D, D)); p['bq'] = rnd((L, 1, D))
    p['wk'] = rnd((L, D, D)); p['bk'] = rnd((L, 1, D))
    p['wv'] = rnd((L, D, D)); p['bv'] = rnd((L, 1, D))
    p['wo'] = rnd((L, D, D)); p['bo'] = rnd((L, 1, D))
    p['n1g'] = jnp.ones((L, 1, D), jnp.float32); p['n1b'] = jnp.zeros((L, 1, D), jnp.float32)
    p['w1'] = rnd((L, D, F)); p['b1'] = rnd((L, 1, F))
    p['w2'] = rnd((L, F, D)); p['b2'] = rnd((L, 1, D))
    p['n2g'] = jnp.ones((L, 1, D), jnp.float32); p['n2b'] = jnp.zeros((L, 1, D), jnp.float32)
    p['fcw'] = rnd((D, C)); p['fcb'] = rnd((1, C))
    p['lng'] = jnp.ones((1, C), jnp.float32); p['lnb'] = jnp.zeros((1, C), jnp.float32)
    return p


def reference_forward(word_ids, p):
    # Pure-JAX reference for numerical validation (same param layout).
    x = jnp.take(p['embed'], word_ids, axis=0)     # (B, S, D)
    B, S, D = x.shape
    hd = D // NUM_HEADS
    scale = 1.0 / float(np.sqrt(hd))

    def ln(v, g, b):
        mu = v.mean(-1, keepdims=True)
        var = ((v - mu) ** 2).mean(-1, keepdims=True)
        return (v - mu) / jnp.sqrt(var + LN_EPS) * g + b

    for l in range(NUM_LAYERS):
        q = x @ p['wq'][l] + p['bq'][l]
        k = x @ p['wk'][l] + p['bk'][l]
        v = x @ p['wv'][l] + p['bv'][l]
        qh = q.reshape(B, S, NUM_HEADS, hd).transpose(0, 2, 1, 3)
        kh = k.reshape(B, S, NUM_HEADS, hd).transpose(0, 2, 1, 3)
        vh = v.reshape(B, S, NUM_HEADS, hd).transpose(0, 2, 1, 3)
        s = jnp.einsum('bhsd,bhtd->bhst', qh * scale, kh)
        pr = jax.nn.softmax(s, axis=-1)
        o = jnp.einsum('bhst,bhtd->bhsd', pr, vh).transpose(0, 2, 1, 3).reshape(B, S, D)
        o = o @ p['wo'][l] + p['bo'][l]
        x = ln(x + o, p['n1g'][l], p['n1b'][l])
        hdn = jax.nn.relu(x @ p['w1'][l] + p['b1'][l])
        ff = hdn @ p['w2'][l] + p['b2'][l]
        x = ln(x + ff, p['n2g'][l], p['n2b'][l])
    logits = x[:, 0, :] @ p['fcw'] + p['fcb']
    return ln(logits, p['lng'], p['lnb'])


if __name__ == "__main__":
    VOCAB = 50
    EMBED_DIM = 40          # must be divisible by nhead=10
    NUM_CLASSES = 8
    DIM_FF = EMBED_DIM      # config: dim_feedforward = embed_dim
    B, S = 2, 8

    key = jax.random.PRNGKey(0)
    kp, kx = jax.random.split(key)
    params = build_params(kp, VOCAB, EMBED_DIM, NUM_CLASSES, DIM_FF)
    word_ids = jax.random.randint(kx, (B, S), 0, VOCAB, dtype=jnp.int32)

    logits, preds = model_forward(word_ids, params)
    jax.block_until_ready((logits, preds))

    with jax.default_matmul_precision("highest"):
        ref_logits = reference_forward(word_ids, params)
    np.testing.assert_allclose(np.asarray(logits), np.asarray(ref_logits),
                               rtol=1e-2, atol=1e-2)
    # fused in-kernel argmax must agree with argmax of the kernel's own logits
    np.testing.assert_array_equal(np.asarray(preds),
                                  np.argmax(np.asarray(logits), axis=-1))

    loss = None   # label_ids=None path of the reference model
    assert preds.shape == (B,) and preds.dtype == jnp.int32 and loss is None
    print("KERNEL_OK")
</pallas_src>

<mosaic_0001>
module attributes {stable_mosaic.version = 11 : i64} {
  func.func @transformer_kernel(%arg0: i32, %arg1: memref<16x1xi32, #tpu.memory_space<vmem>>, %arg2: memref<50x40xf32, #tpu.memory_space<vmem>>, %arg3: memref<2x40x40xf32, #tpu.memory_space<vmem>>, %arg4: memref<2x1x40xf32, #tpu.memory_space<vmem>>, %arg5: memref<2x40x40xf32, #tpu.memory_space<vmem>>, %arg6: memref<2x1x40xf32, #tpu.memory_space<vmem>>, %arg7: memref<2x40x40xf32, #tpu.memory_space<vmem>>, %arg8: memref<2x1x40xf32, #tpu.memory_space<vmem>>, %arg9: memref<2x40x40xf32, #tpu.memory_space<vmem>>, %arg10: memref<2x1x40xf32, #tpu.memory_space<vmem>>, %arg11: memref<2x1x40xf32, #tpu.memory_space<vmem>>, %arg12: memref<2x1x40xf32, #tpu.memory_space<vmem>>, %arg13: memref<2x40x40xf32, #tpu.memory_space<vmem>>, %arg14: memref<2x1x40xf32, #tpu.memory_space<vmem>>, %arg15: memref<2x40x40xf32, #tpu.memory_space<vmem>>, %arg16: memref<2x1x40xf32, #tpu.memory_space<vmem>>, %arg17: memref<2x1x40xf32, #tpu.memory_space<vmem>>, %arg18: memref<2x1x40xf32, #tpu.memory_space<vmem>>, %arg19: memref<40x8xf32, #tpu.memory_space<vmem>>, %arg20: memref<1x8xf32, #tpu.memory_space<vmem>>, %arg21: memref<1x8xf32, #tpu.memory_space<vmem>>, %arg22: memref<1x8xf32, #tpu.memory_space<vmem>>, %arg23: memref<2x8xf32, #tpu.memory_space<vmem>>, %arg24: memref<2x1xi32, #tpu.memory_space<vmem>>) attributes {dimension_semantics = [#tpu.dimension_semantics<parallel>], iteration_bounds = array<i64: 1>, scalar_prefetch = 0 : i64, scratch_operands = 0 : i64, tpu.core_type = #tpu.core_type<tc>, window_params = [{transform_indices = @transform_0, window_bounds = array<i64: 16, 1>}, {pipeline_mode = #tpu.pipeline_mode<synchronous>, transform_indices = @transform_1, window_bounds = array<i64: 50, 40>}, {pipeline_mode = #tpu.pipeline_mode<synchronous>, transform_indices = @transform_2, window_bounds = array<i64: 2, 40, 40>}, {pipeline_mode = #tpu.pipeline_mode<synchronous>, transform_indices = @transform_3, window_bounds = array<i64: 2, 1, 40>}, {pipeline_mode = #tpu.pipeline_mode<synchronous>, transform_indices = @transform_4, window_bounds = array<i64: 2, 40, 40>}, {pipeline_mode = #tpu.pipeline_mode<synchronous>, transform_indices = @transform_5, window_bounds = array<i64: 2, 1, 40>}, {pipeline_mode = #tpu.pipeline_mode<synchronous>, transform_indices = @transform_6, window_bounds = array<i64: 2, 40, 40>}, {pipeline_mode = #tpu.pipeline_mode<synchronous>, transform_indices = @transform_7, window_bounds = array<i64: 2, 1, 40>}, {pipeline_mode = #tpu.pipeline_mode<synchronous>, transform_indices = @transform_8, window_bounds = array<i64: 2, 40, 40>}, {pipeline_mode = #tpu.pipeline_mode<synchronous>, transform_indices = @transform_9, window_bounds = array<i64: 2, 1, 40>}, {pipeline_mode = #tpu.pipeline_mode<synchronous>, transform_indices = @transform_10, window_bounds = array<i64: 2, 1, 40>}, {pipeline_mode = #tpu.pipeline_mode<synchronous>, transform_indices = @transform_11, window_bounds = array<i64: 2, 1, 40>}, {pipeline_mode = #tpu.pipeline_mode<synchronous>, transform_indices = @transform_12, window_bounds = array<i64: 2, 40, 40>}, {pipeline_mode = #tpu.pipeline_mode<synchronous>, transform_indices = @transform_13, window_bounds = array<i64: 2, 1, 40>}, {pipeline_mode = #tpu.pipeline_mode<synchronous>, transform_indices = @transform_14, window_bounds = array<i64: 2, 40, 40>}, {pipeline_mode = #tpu.pipeline_mode<synchronous>, transform_indices = @transform_15, window_bounds = array<i64: 2, 1, 40>}, {pipeline_mode = #tpu.pipeline_mode<synchronous>, transform_indices = @transform_16, window_bounds = array<i64: 2, 1, 40>}, {pipeline_mode = #tpu.pipeline_mode<synchronous>, transform_indices = @transform_17, window_bounds = array<i64: 2, 1, 40>}, {pipeline_mode = #tpu.pipeline_mode<synchronous>, transform_indices = @transform_18, window_bounds = array<i64: 40, 8>}, {pipeline_mode = #tpu.pipeline_mode<synchronous>, transform_indices = @transform_19, window_bounds = array<i64: 1, 8>}, {pipeline_mode = #tpu.pipeline_mode<synchronous>, transform_indices = @transform_20, window_bounds = array<i64: 1, 8>}, {pipeline_mode = #tpu.pipeline_mode<synchronous>, transform_indices = @transform_21, window_bounds = array<i64: 1, 8>}, {transform_indices = @transform_22, window_bounds = array<i64: 2, 8>}, {transform_indices = @transform_23, window_bounds = array<i64: 2, 1>}]} {
    %c0 = arith.constant 0 : index
    %c0_0 = arith.constant 0 : index
    %0 = vector.load %arg1[%c0, %c0_0] : memref<16x1xi32, #tpu.memory_space<vmem>>, vector<16x1xi32>
    %1 = tpu.iota {dimensions = array<i32: 1>} : vector<16x50xi32>
    %2 = vector.broadcast %0 : vector<16x1xi32> to vector<16x50xi32>
    %3 = arith.cmpi eq, %1, %2 : vector<16x50xi32>
    %4 = arith.extui %3 : vector<16x50xi1> to vector<16x50xi32>
    %5 = arith.sitofp %4 : vector<16x50xi32> to vector<16x50xf32>
    %c0_1 = arith.constant 0 : index
    %c0_2 = arith.constant 0 : index
    %6 = vector.load %arg2[%c0_1, %c0_2] : memref<50x40xf32, #tpu.memory_space<vmem>>, vector<50x40xf32>
    %cst = arith.constant dense<0.000000e+00> : vector<16x40xf32>
    %7 = tpu.matmul %5, %6, %cst {dimension_numbers = #tpu.dot_dimension_numbers<[1], [0], [0], [1], [0, 0, 1, 1], [], []>} : vector<16x50xf32>, vector<50x40xf32>, vector<16x40xf32> -> vector<16x40xf32>
    %8 = tpu.iota {dimensions = array<i32: 1>} : vector<1x40xi32>
    %c0_i32 = arith.constant 0 : i32
    %9 = vector.broadcast %c0_i32 : i32 to vector<1x40xi32>
    %10 = arith.cmpi sge, %8, %9 : vector<1x40xi32>
    %c4_i32 = arith.constant 4 : i32
    %11 = vector.broadcast %c4_i32 : i32 to vector<1x40xi32>
    %12 = arith.cmpi slt, %8, %11 : vector<1x40xi32>
    %13 = arith.andi %10, %12 : vector<1x40xi1>
    %14 = arith.extui %13 : vector<1x40xi1> to vector<1x40xi32>
    %15 = arith.sitofp %14 : vector<1x40xi32> to vector<1x40xf32>
    %c4_i32_3 = arith.constant 4 : i32
    %16 = vector.broadcast %c4_i32_3 : i32 to vector<1x40xi32>
    %17 = arith.cmpi sge, %8, %16 : vector<1x40xi32>
    %c8_i32 = arith.constant 8 : i32
    %18 = vector.broadcast %c8_i32 : i32 to vector<1x40xi32>
    %19 = arith.cmpi slt, %8, %18 : vector<1x40xi32>
    %20 = arith.andi %17, %19 : vector<1x40xi1>
    %21 = arith.extui %20 : vector<1x40xi1> to vector<1x40xi32>
    %22 = arith.sitofp %21 : vector<1x40xi32> to vector<1x40xf32>
    %c8_i32_4 = arith.constant 8 : i32
    %23 = vector.broadcast %c8_i32_4 : i32 to vector<1x40xi32>
    %24 = arith.cmpi sge, %8, %23 : vector<1x40xi32>
    %c12_i32 = arith.constant 12 : i32
    %25 = vector.broadcast %c12_i32 : i32 to vector<1x40xi32>
    %26 = arith.cmpi slt, %8, %25 : vector<1x40xi32>
    %27 = arith.andi %24, %26 : vector<1x40xi1>
    %28 = arith.extui %27 : vector<1x40xi1> to vector<1x40xi32>
    %29 = arith.sitofp %28 : vector<1x40xi32> to vector<1x40xf32>
    %c12_i32_5 = arith.constant 12 : i32
    %30 = vector.broadcast %c12_i32_5 : i32 to vector<1x40xi32>
    %31 = arith.cmpi sge, %8, %30 : vector<1x40xi32>
    %c16_i32 = arith.constant 16 : i32
    %32 = vector.broadcast %c16_i32 : i32 to vector<1x40xi32>
    %33 = arith.cmpi slt, %8, %32 : vector<1x40xi32>
    %34 = arith.andi %31, %33 : vector<1x40xi1>
    %35 = arith.extui %34 : vector<1x40xi1> to vector<1x40xi32>
    %36 = arith.sitofp %35 : vector<1x40xi32> to vector<1x40xf32>
    %c16_i32_6 = arith.constant 16 : i32
    %37 = vector.broadcast %c16_i32_6 : i32 to vector<1x40xi32>
    %38 = arith.cmpi sge, %8, %37 : vector<1x40xi32>
    %c20_i32 = arith.constant 20 : i32
    %39 = vector.broadcast %c20_i32 : i32 to vector<1x40xi32>
    %40 = arith.cmpi slt, %8, %39 : vector<1x40xi32>
    %41 = arith.andi %38, %40 : vector<1x40xi1>
    %42 = arith.extui %41 : vector<1x40xi1> to vector<1x40xi32>
    %43 = arith.sitofp %42 : vector<1x40xi32> to vector<1x40xf32>
    %c20_i32_7 = arith.constant 20 : i32
    %44 = vector.broadcast %c20_i32_7 : i32 to vector<1x40xi32>
    %45 = arith.cmpi sge, %8, %44 : vector<1x40xi32>
    %c24_i32 = arith.constant 24 : i32
    %46 = vector.broadcast %c24_i32 : i32 to vector<1x40xi32>
    %47 = arith.cmpi slt, %8, %46 : vector<1x40xi32>
    %48 = arith.andi %45, %47 : vector<1x40xi1>
    %49 = arith.extui %48 : vector<1x40xi1> to vector<1x40xi32>
    %50 = arith.sitofp %49 : vector<1x40xi32> to vector<1x40xf32>
    %c24_i32_8 = arith.constant 24 : i32
    %51 = vector.broadcast %c24_i32_8 : i32 to vector<1x40xi32>
    %52 = arith.cmpi sge, %8, %51 : vector<1x40xi32>
    %c28_i32 = arith.constant 28 : i32
    %53 = vector.broadcast %c28_i32 : i32 to vector<1x40xi32>
    %54 = arith.cmpi slt, %8, %53 : vector<1x40xi32>
    %55 = arith.andi %52, %54 : vector<1x40xi1>
    %56 = arith.extui %55 : vector<1x40xi1> to vector<1x40xi32>
    %57 = arith.sitofp %56 : vector<1x40xi32> to vector<1x40xf32>
    %c28_i32_9 = arith.constant 28 : i32
    %58 = vector.broadcast %c28_i32_9 : i32 to vector<1x40xi32>
    %59 = arith.cmpi sge, %8, %58 : vector<1x40xi32>
    %c32_i32 = arith.constant 32 : i32
    %60 = vector.broadcast %c32_i32 : i32 to vector<1x40xi32>
    %61 = arith.cmpi slt, %8, %60 : vector<1x40xi32>
    %62 = arith.andi %59, %61 : vector<1x40xi1>
    %63 = arith.extui %62 : vector<1x40xi1> to vector<1x40xi32>
    %64 = arith.sitofp %63 : vector<1x40xi32> to vector<1x40xf32>
    %c32_i32_10 = arith.constant 32 : i32
    %65 = vector.broadcast %c32_i32_10 : i32 to vector<1x40xi32>
    %66 = arith.cmpi sge, %8, %65 : vector<1x40xi32>
    %c36_i32 = arith.constant 36 : i32
    %67 = vector.broadcast %c36_i32 : i32 to vector<1x40xi32>
    %68 = arith.cmpi slt, %8, %67 : vector<1x40xi32>
    %69 = arith.andi %66, %68 : vector<1x40xi1>
    %70 = arith.extui %69 : vector<1x40xi1> to vector<1x40xi32>
    %71 = arith.sitofp %70 : vector<1x40xi32> to vector<1x40xf32>
    %c36_i32_11 = arith.constant 36 : i32
    %72 = vector.broadcast %c36_i32_11 : i32 to vector<1x40xi32>
    %73 = arith.cmpi sge, %8, %72 : vector<1x40xi32>
    %c40_i32 = arith.constant 40 : i32
    %74 = vector.broadcast %c40_i32 : i32 to vector<1x40xi32>
    %75 = arith.cmpi slt, %8, %74 : vector<1x40xi32>
    %76 = arith.andi %73, %75 : vector<1x40xi1>
    %77 = arith.extui %76 : vector<1x40xi1> to vector<1x40xi32>
    %78 = arith.sitofp %77 : vector<1x40xi32> to vector<1x40xf32>
    %79 = tpu.iota {dimensions = array<i32: 1>} : vector<8x16xi32>
    %c0_i32_12 = arith.constant 0 : i32
    %80 = vector.broadcast %c0_i32_12 : i32 to vector<8x16xi32>
    %81 = arith.cmpi sge, %79, %80 : vector<8x16xi32>
    %c8_i32_13 = arith.constant 8 : i32
    %82 = vector.broadcast %c8_i32_13 : i32 to vector<8x16xi32>
    %83 = arith.cmpi slt, %79, %82 : vector<8x16xi32>
    %84 = arith.andi %81, %83 : vector<8x16xi1>
    %cst_14 = arith.constant 0.000000e+00 : f32
    %cst_15 = arith.constant -1.000000e+30 : f32
    %85 = vector.broadcast %cst_14 : f32 to vector<8x16xf32>
    %86 = vector.broadcast %cst_15 : f32 to vector<8x16xf32>
    %87 = arith.select %84, %85, %86 : vector<8x16xi1>, vector<8x16xf32>
    %c8_i32_16 = arith.constant 8 : i32
    %88 = vector.broadcast %c8_i32_16 : i32 to vector<8x16xi32>
    %89 = arith.cmpi sge, %79, %88 : vector<8x16xi32>
    %c16_i32_17 = arith.constant 16 : i32
    %90 = vector.broadcast %c16_i32_17 : i32 to vector<8x16xi32>
    %91 = arith.cmpi slt, %79, %90 : vector<8x16xi32>
    %92 = arith.andi %89, %91 : vector<8x16xi1>
    %cst_18 = arith.constant 0.000000e+00 : f32
    %cst_19 = arith.constant -1.000000e+30 : f32
    %93 = vector.broadcast %cst_18 : f32 to vector<8x16xf32>
    %94 = vector.broadcast %cst_19 : f32 to vector<8x16xf32>
    %95 = arith.select %92, %93, %94 : vector<8x16xi1>, vector<8x16xf32>
    %96 = tpu.concatenate %87, %95 in 0 : vector<8x16xf32>, vector<8x16xf32> -> vector<16x16xf32>
    %97 = tpu.concatenate %96, %96, %96, %96, %96, %96, %96, %96, %96, %96 in 0 : vector<16x16xf32>, vector<16x16xf32>, vector<16x16xf32>, vector<16x16xf32>, vector<16x16xf32>, vector<16x16xf32>, vector<16x16xf32>, vector<16x16xf32>, vector<16x16xf32>, vector<16x16xf32> -> vector<160x16xf32>
    %98 = tpu.iota {dimensions = array<i32: 0>} : vector<2x16xi32>
    %99 = tpu.iota {dimensions = array<i32: 1>} : vector<2x16xi32>
    %c8_i32_20 = arith.constant 8 : i32
    %100 = vector.broadcast %c8_i32_20 : i32 to vector<2x16xi32>
    %101 = arith.muli %98, %100 : vector<2x16xi32>
    %102 = arith.cmpi eq, %99, %101 : vector<2x16xi32>
    %103 = arith.extui %102 : vector<2x16xi1> to vector<2x16xi32>
    %104 = arith.sitofp %103 : vector<2x16xi32> to vector<2x16xf32>
    %c0_21 = arith.constant 0 : index
    %c0_22 = arith.constant 0 : index
    %c0_23 = arith.constant 0 : index
    %105 = vector.load %arg3[%c0_21, %c0_22, %c0_23] : memref<2x40x40xf32, #tpu.memory_space<vmem>>, vector<1x40x40xf32>
    %106 = vector.shape_cast %105 : vector<1x40x40xf32> to vector<40x40xf32>
    %cst_24 = arith.constant dense<0.000000e+00> : vector<16x40xf32>
    %107 = tpu.matmul %7, %106, %cst_24 {dimension_numbers = #tpu.dot_dimension_numbers<[1], [0], [0], [1], [0, 0, 1, 1], [], []>} : vector<16x40xf32>, vector<40x40xf32>, vector<16x40xf32> -> vector<16x40xf32>
    %c0_25 = arith.constant 0 : index
    %c0_26 = arith.constant 0 : index
    %c0_27 = arith.constant 0 : index
    %108 = vector.load %arg4[%c0_25, %c0_26, %c0_27] : memref<2x1x40xf32, #tpu.memory_space<vmem>>, vector<1x1x40xf32>
    %109 = vector.shape_cast %108 : vector<1x1x40xf32> to vector<1x40xf32>
    %110 = vector.broadcast %109 : vector<1x40xf32> to vector<16x40xf32>
    %111 = arith.addf %107, %110 : vector<16x40xf32>
    %c0_28 = arith.constant 0 : index
    %c0_29 = arith.constant 0 : index
    %c0_30 = arith.constant 0 : index
    %112 = vector.load %arg5[%c0_28, %c0_29, %c0_30] : memref<2x40x40xf32, #tpu.memory_space<vmem>>, vector<1x40x40xf32>
    %113 = vector.shape_cast %112 : vector<1x40x40xf32> to vector<40x40xf32>
    %cst_31 = arith.constant dense<0.000000e+00> : vector<16x40xf32>
    %114 = tpu.matmul %7, %113, %cst_31 {dimension_numbers = #tpu.dot_dimension_numbers<[1], [0], [0], [1], [0, 0, 1, 1], [], []>} : vector<16x40xf32>, vector<40x40xf32>, vector<16x40xf32> -> vector<16x40xf32>
    %c0_32 = arith.constant 0 : index
    %c0_33 = arith.constant 0 : index
    %c0_34 = arith.constant 0 : index
    %115 = vector.load %arg6[%c0_32, %c0_33, %c0_34] : memref<2x1x40xf32, #tpu.memory_space<vmem>>, vector<1x1x40xf32>
    %116 = vector.shape_cast %115 : vector<1x1x40xf32> to vector<1x40xf32>
    %117 = vector.broadcast %116 : vector<1x40xf32> to vector<16x40xf32>
    %118 = arith.addf %114, %117 : vector<16x40xf32>
    %c0_35 = arith.constant 0 : index
    %c0_36 = arith.constant 0 : index
    %c0_37 = arith.constant 0 : index
    %119 = vector.load %arg7[%c0_35, %c0_36, %c0_37] : memref<2x40x40xf32, #tpu.memory_space<vmem>>, vector<1x40x40xf32>
    %120 = vector.shape_cast %119 : vector<1x40x40xf32> to vector<40x40xf32>
    %cst_38 = arith.constant dense<0.000000e+00> : vector<16x40xf32>
    %121 = tpu.matmul %7, %120, %cst_38 {dimension_numbers = #tpu.dot_dimension_numbers<[1], [0], [0], [1], [0, 0, 1, 1], [], []>} : vector<16x40xf32>, vector<40x40xf32>, vector<16x40xf32> -> vector<16x40xf32>
    %c0_39 = arith.constant 0 : index
    %c0_40 = arith.constant 0 : index
    %c0_41 = arith.constant 0 : index
    %122 = vector.load %arg8[%c0_39, %c0_40, %c0_41] : memref<2x1x40xf32, #tpu.memory_space<vmem>>, vector<1x1x40xf32>
    %123 = vector.shape_cast %122 : vector<1x1x40xf32> to vector<1x40xf32>
    %124 = vector.broadcast %123 : vector<1x40xf32> to vector<16x40xf32>
    %125 = arith.addf %121, %124 : vector<16x40xf32>
    %cst_42 = arith.constant 5.000000e-01 : f32
    %126 = vector.broadcast %cst_42 : f32 to vector<16x40xf32>
    %127 = arith.mulf %111, %126 : vector<16x40xf32>
    %128 = vector.broadcast %15 : vector<1x40xf32> to vector<16x40xf32>
    %129 = arith.mulf %127, %128 : vector<16x40xf32>
    %130 = vector.broadcast %22 : vector<1x40xf32> to vector<16x40xf32>
    %131 = arith.mulf %127, %130 : vector<16x40xf32>
    %132 = vector.broadcast %29 : vector<1x40xf32> to vector<16x40xf32>
    %133 = arith.mulf %127, %132 : vector<16x40xf32>
    %134 = vector.broadcast %36 : vector<1x40xf32> to vector<16x40xf32>
    %135 = arith.mulf %127, %134 : vector<16x40xf32>
    %136 = vector.broadcast %43 : vector<1x40xf32> to vector<16x40xf32>
    %137 = arith.mulf %127, %136 : vector<16x40xf32>
    %138 = vector.broadcast %50 : vector<1x40xf32> to vector<16x40xf32>
    %139 = arith.mulf %127, %138 : vector<16x40xf32>
    %140 = vector.broadcast %57 : vector<1x40xf32> to vector<16x40xf32>
    %141 = arith.mulf %127, %140 : vector<16x40xf32>
    %142 = vector.broadcast %64 : vector<1x40xf32> to vector<16x40xf32>
    %143 = arith.mulf %127, %142 : vector<16x40xf32>
    %144 = vector.broadcast %71 : vector<1x40xf32> to vector<16x40xf32>
    %145 = arith.mulf %127, %144 : vector<16x40xf32>
    %146 = vector.broadcast %78 : vector<1x40xf32> to vector<16x40xf32>
    %147 = arith.mulf %127, %146 : vector<16x40xf32>
    %148 = tpu.concatenate %129, %131, %133, %135, %137, %139, %141, %143, %145, %147 in 0 : vector<16x40xf32>, vector<16x40xf32>, vector<16x40xf32>, vector<16x40xf32>, vector<16x40xf32>, vector<16x40xf32>, vector<16x40xf32>, vector<16x40xf32>, vector<16x40xf32>, vector<16x40xf32> -> vector<160x40xf32>
    %cst_43 = arith.constant dense<0.000000e+00> : vector<160x16xf32>
    %149 = tpu.matmul %148, %118, %cst_43 {dimension_numbers = #tpu.dot_dimension_numbers<[1], [1], [0], [0], [0, 0, 1, 0], [], []>} : vector<160x40xf32>, vector<16x40xf32>, vector<160x16xf32> -> vector<160x16xf32>
    %150 = arith.addf %149, %97 : vector<160x16xf32>
    %cst_44 = arith.constant dense<0xFF800000> : vector<160xf32>
    %151 = vector.multi_reduction <maximumf>, %150, %cst_44 [1] : vector<160x16xf32> to vector<160xf32>
    %152 = vector.shape_cast %151 : vector<160xf32> to vector<160x1xf32>
    %153 = vector.broadcast %152 : vector<160x1xf32> to vector<160x16xf32>
    %154 = arith.subf %150, %153 : vector<160x16xf32>
    %155 = math.exp %154 : vector<160x16xf32>
    %cst_45 = arith.constant dense<0.000000e+00> : vector<160xf32>
    %156 = vector.multi_reduction <add>, %155, %cst_45 [1] : vector<160x16xf32> to vector<160xf32>
    %157 = vector.shape_cast %156 : vector<160xf32> to vector<160x1xf32>
    %158 = tpu.reciprocal %157 {approx = true} : vector<160x1xf32> -> vector<160x1xf32>
    %159 = vector.broadcast %158 : vector<160x1xf32> to vector<160x16xf32>
    %160 = arith.mulf %155, %159 : vector<160x16xf32>
    %cst_46 = arith.constant dense<0.000000e+00> : vector<160x40xf32>
    %161 = tpu.matmul %160, %125, %cst_46 {dimension_numbers = #tpu.dot_dimension_numbers<[1], [0], [0], [1], [0, 0, 1, 1], [], []>} : vector<160x16xf32>, vector<16x40xf32>, vector<160x40xf32> -> vector<160x40xf32>
    %162 = vector.extract_strided_slice %161 {offsets = [0, 0], sizes = [16, 40], strides = [1, 1]} : vector<160x40xf32> to vector<16x40xf32>
    %163 = vector.broadcast %15 : vector<1x40xf32> to vector<16x40xf32>
    %164 = arith.mulf %162, %163 : vector<16x40xf32>
    %165 = vector.extract_strided_slice %161 {offsets = [16, 0], sizes = [16, 40], strides = [1, 1]} : vector<160x40xf32> to vector<16x40xf32>
    %166 = vector.broadcast %22 : vector<1x40xf32> to vector<16x40xf32>
    %167 = arith.mulf %165, %166 : vector<16x40xf32>
    %168 = arith.addf %164, %167 : vector<16x40xf32>
    %169 = vector.extract_strided_slice %161 {offsets = [32, 0], sizes = [16, 40], strides = [1, 1]} : vector<160x40xf32> to vector<16x40xf32>
    %170 = vector.broadcast %29 : vector<1x40xf32> to vector<16x40xf32>
    %171 = arith.mulf %169, %170 : vector<16x40xf32>
    %172 = arith.addf %168, %171 : vector<16x40xf32>
    %173 = vector.extract_strided_slice %161 {offsets = [48, 0], sizes = [16, 40], strides = [1, 1]} : vector<160x40xf32> to vector<16x40xf32>
    %174 = vector.broadcast %36 : vector<1x40xf32> to vector<16x40xf32>
    %175 = arith.mulf %173, %174 : vector<16x40xf32>
    %176 = arith.addf %172, %175 : vector<16x40xf32>
    %177 = vector.extract_strided_slice %161 {offsets = [64, 0], sizes = [16, 40], strides = [1, 1]} : vector<160x40xf32> to vector<16x40xf32>
    %178 = vector.broadcast %43 : vector<1x40xf32> to vector<16x40xf32>
    %179 = arith.mulf %177, %178 : vector<16x40xf32>
    %180 = arith.addf %176, %179 : vector<16x40xf32>
    %181 = vector.extract_strided_slice %161 {offsets = [80, 0], sizes = [16, 40], strides = [1, 1]} : vector<160x40xf32> to vector<16x40xf32>
    %182 = vector.broadcast %50 : vector<1x40xf32> to vector<16x40xf32>
    %183 = arith.mulf %181, %182 : vector<16x40xf32>
    %184 = arith.addf %180, %183 : vector<16x40xf32>
    %185 = vector.extract_strided_slice %161 {offsets = [96, 0], sizes = [16, 40], strides = [1, 1]} : vector<160x40xf32> to vector<16x40xf32>
    %186 = vector.broadcast %57 : vector<1x40xf32> to vector<16x40xf32>
    %187 = arith.mulf %185, %186 : vector<16x40xf32>
    %188 = arith.addf %184, %187 : vector<16x40xf32>
    %189 = vector.extract_strided_slice %161 {offsets = [112, 0], sizes = [16, 40], strides = [1, 1]} : vector<160x40xf32> to vector<16x40xf32>
    %190 = vector.broadcast %64 : vector<1x40xf32> to vector<16x40xf32>
    %191 = arith.mulf %189, %190 : vector<16x40xf32>
    %192 = arith.addf %188, %191 : vector<16x40xf32>
    %193 = vector.extract_strided_slice %161 {offsets = [128, 0], sizes = [16, 40], strides = [1, 1]} : vector<160x40xf32> to vector<16x40xf32>
    %194 = vector.broadcast %71 : vector<1x40xf32> to vector<16x40xf32>
    %195 = arith.mulf %193, %194 : vector<16x40xf32>
    %196 = arith.addf %192, %195 : vector<16x40xf32>
    %197 = vector.extract_strided_slice %161 {offsets = [144, 0], sizes = [16, 40], strides = [1, 1]} : vector<160x40xf32> to vector<16x40xf32>
    %198 = vector.broadcast %78 : vector<1x40xf32> to vector<16x40xf32>
    %199 = arith.mulf %197, %198 : vector<16x40xf32>
    %200 = arith.addf %196, %199 : vector<16x40xf32>
    %c0_47 = arith.constant 0 : index
    %c0_48 = arith.constant 0 : index
    %c0_49 = arith.constant 0 : index
    %201 = vector.load %arg9[%c0_47, %c0_48, %c0_49] : memref<2x40x40xf32, #tpu.memory_space<vmem>>, vector<1x40x40xf32>
    %202 = vector.shape_cast %201 : vector<1x40x40xf32> to vector<40x40xf32>
    %cst_50 = arith.constant dense<0.000000e+00> : vector<16x40xf32>
    %203 = tpu.matmul %200, %202, %cst_50 {dimension_numbers = #tpu.dot_dimension_numbers<[1], [0], [0], [1], [0, 0, 1, 1], [], []>} : vector<16x40xf32>, vector<40x40xf32>, vector<16x40xf32> -> vector<16x40xf32>
    %c0_51 = arith.constant 0 : index
    %c0_52 = arith.constant 0 : index
    %c0_53 = arith.constant 0 : index
    %204 = vector.load %arg10[%c0_51, %c0_52, %c0_53] : memref<2x1x40xf32, #tpu.memory_space<vmem>>, vector<1x1x40xf32>
    %205 = vector.shape_cast %204 : vector<1x1x40xf32> to vector<1x40xf32>
    %206 = vector.broadcast %205 : vector<1x40xf32> to vector<16x40xf32>
    %207 = arith.addf %203, %206 : vector<16x40xf32>
    %208 = arith.addf %7, %207 : vector<16x40xf32>
    %c0_54 = arith.constant 0 : index
    %c0_55 = arith.constant 0 : index
    %c0_56 = arith.constant 0 : index
    %209 = vector.load %arg11[%c0_54, %c0_55, %c0_56] : memref<2x1x40xf32, #tpu.memory_space<vmem>>, vector<1x1x40xf32>
    %210 = vector.shape_cast %209 : vector<1x1x40xf32> to vector<1x40xf32>
    %c0_57 = arith.constant 0 : index
    %c0_58 = arith.constant 0 : index
    %c0_59 = arith.constant 0 : index
    %211 = vector.load %arg12[%c0_57, %c0_58, %c0_59] : memref<2x1x40xf32, #tpu.memory_space<vmem>>, vector<1x1x40xf32>
    %212 = vector.shape_cast %211 : vector<1x1x40xf32> to vector<1x40xf32>
    %cst_60 = arith.constant dense<0.000000e+00> : vector<16xf32>
    %213 = vector.multi_reduction <add>, %208, %cst_60 [1] : vector<16x40xf32> to vector<16xf32>
    %214 = vector.shape_cast %213 : vector<16xf32> to vector<16x1xf32>
    %cst_61 = arith.constant 4.000000e+01 : f32
    %215 = vector.broadcast %cst_61 : f32 to vector<16x1xf32>
    %216 = arith.divf %214, %215 : vector<16x1xf32>
    %217 = vector.broadcast %216 : vector<16x1xf32> to vector<16x40xf32>
    %218 = arith.subf %208, %217 : vector<16x40xf32>
    %219 = arith.mulf %218, %218 : vector<16x40xf32>
    %cst_62 = arith.constant dense<0.000000e+00> : vector<16xf32>
    %220 = vector.multi_reduction <add>, %219, %cst_62 [1] : vector<16x40xf32> to vector<16xf32>
    %221 = vector.shape_cast %220 : vector<16xf32> to vector<16x1xf32>
    %cst_63 = arith.constant 4.000000e+01 : f32
    %222 = vector.broadcast %cst_63 : f32 to vector<16x1xf32>
    %223 = arith.divf %221, %222 : vector<16x1xf32>
    %224 = vector.broadcast %216 : vector<16x1xf32> to vector<16x40xf32>
    %225 = arith.subf %208, %224 : vector<16x40xf32>
    %cst_64 = arith.constant 9.99999974E-6 : f32
    %226 = vector.broadcast %cst_64 : f32 to vector<16x1xf32>
    %227 = arith.addf %223, %226 : vector<16x1xf32>
    %228 = math.rsqrt %227 : vector<16x1xf32>
    %229 = vector.broadcast %228 : vector<16x1xf32> to vector<16x40xf32>
    %230 = arith.mulf %225, %229 : vector<16x40xf32>
    %231 = vector.broadcast %210 : vector<1x40xf32> to vector<16x40xf32>
    %232 = arith.mulf %230, %231 : vector<16x40xf32>
    %233 = vector.broadcast %212 : vector<1x40xf32> to vector<16x40xf32>
    %234 = arith.addf %232, %233 : vector<16x40xf32>
    %c0_65 = arith.constant 0 : index
    %c0_66 = arith.constant 0 : index
    %c0_67 = arith.constant 0 : index
    %235 = vector.load %arg13[%c0_65, %c0_66, %c0_67] : memref<2x40x40xf32, #tpu.memory_space<vmem>>, vector<1x40x40xf32>
    %236 = vector.shape_cast %235 : vector<1x40x40xf32> to vector<40x40xf32>
    %cst_68 = arith.constant dense<0.000000e+00> : vector<16x40xf32>
    %237 = tpu.matmul %234, %236, %cst_68 {dimension_numbers = #tpu.dot_dimension_numbers<[1], [0], [0], [1], [0, 0, 1, 1], [], []>} : vector<16x40xf32>, vector<40x40xf32>, vector<16x40xf32> -> vector<16x40xf32>
    %c0_69 = arith.constant 0 : index
    %c0_70 = arith.constant 0 : index
    %c0_71 = arith.constant 0 : index
    %238 = vector.load %arg14[%c0_69, %c0_70, %c0_71] : memref<2x1x40xf32, #tpu.memory_space<vmem>>, vector<1x1x40xf32>
    %239 = vector.shape_cast %238 : vector<1x1x40xf32> to vector<1x40xf32>
    %240 = vector.broadcast %239 : vector<1x40xf32> to vector<16x40xf32>
    %241 = arith.addf %237, %240 : vector<16x40xf32>
    %cst_72 = arith.constant 0.000000e+00 : f32
    %242 = vector.broadcast %cst_72 : f32 to vector<16x40xf32>
    %243 = arith.maximumf %241, %242 : vector<16x40xf32>
    %c0_73 = arith.constant 0 : index
    %c0_74 = arith.constant 0 : index
    %c0_75 = arith.constant 0 : index
    %244 = vector.load %arg15[%c0_73, %c0_74, %c0_75] : memref<2x40x40xf32, #tpu.memory_space<vmem>>, vector<1x40x40xf32>
    %245 = vector.shape_cast %244 : vector<1x40x40xf32> to vector<40x40xf32>
    %cst_76 = arith.constant dense<0.000000e+00> : vector<16x40xf32>
    %246 = tpu.matmul %243, %245, %cst_76 {dimension_numbers = #tpu.dot_dimension_numbers<[1], [0], [0], [1], [0, 0, 1, 1], [], []>} : vector<16x40xf32>, vector<40x40xf32>, vector<16x40xf32> -> vector<16x40xf32>
    %c0_77 = arith.constant 0 : index
    %c0_78 = arith.constant 0 : index
    %c0_79 = arith.constant 0 : index
    %247 = vector.load %arg16[%c0_77, %c0_78, %c0_79] : memref<2x1x40xf32, #tpu.memory_space<vmem>>, vector<1x1x40xf32>
    %248 = vector.shape_cast %247 : vector<1x1x40xf32> to vector<1x40xf32>
    %249 = vector.broadcast %248 : vector<1x40xf32> to vector<16x40xf32>
    %250 = arith.addf %246, %249 : vector<16x40xf32>
    %251 = arith.addf %234, %250 : vector<16x40xf32>
    %c0_80 = arith.constant 0 : index
    %c0_81 = arith.constant 0 : index
    %c0_82 = arith.constant 0 : index
    %252 = vector.load %arg17[%c0_80, %c0_81, %c0_82] : memref<2x1x40xf32, #tpu.memory_space<vmem>>, vector<1x1x40xf32>
    %253 = vector.shape_cast %252 : vector<1x1x40xf32> to vector<1x40xf32>
    %c0_83 = arith.constant 0 : index
    %c0_84 = arith.constant 0 : index
    %c0_85 = arith.constant 0 : index
    %254 = vector.load %arg18[%c0_83, %c0_84, %c0_85] : memref<2x1x40xf32, #tpu.memory_space<vmem>>, vector<1x1x40xf32>
    %255 = vector.shape_cast %254 : vector<1x1x40xf32> to vector<1x40xf32>
    %cst_86 = arith.constant dense<0.000000e+00> : vector<16xf32>
    %256 = vector.multi_reduction <add>, %251, %cst_86 [1] : vector<16x40xf32> to vector<16xf32>
    %257 = vector.shape_cast %256 : vector<16xf32> to vector<16x1xf32>
    %cst_87 = arith.constant 4.000000e+01 : f32
    %258 = vector.broadcast %cst_87 : f32 to vector<16x1xf32>
    %259 = arith.divf %257, %258 : vector<16x1xf32>
    %260 = vector.broadcast %259 : vector<16x1xf32> to vector<16x40xf32>
    %261 = arith.subf %251, %260 : vector<16x40xf32>
    %262 = arith.mulf %261, %261 : vector<16x40xf32>
    %cst_88 = arith.constant dense<0.000000e+00> : vector<16xf32>
    %263 = vector.multi_reduction <add>, %262, %cst_88 [1] : vector<16x40xf32> to vector<16xf32>
    %264 = vector.shape_cast %263 : vector<16xf32> to vector<16x1xf32>
    %cst_89 = arith.constant 4.000000e+01 : f32
    %265 = vector.broadcast %cst_89 : f32 to vector<16x1xf32>
    %266 = arith.divf %264, %265 : vector<16x1xf32>
    %267 = vector.broadcast %259 : vector<16x1xf32> to vector<16x40xf32>
    %268 = arith.subf %251, %267 : vector<16x40xf32>
    %cst_90 = arith.constant 9.99999974E-6 : f32
    %269 = vector.broadcast %cst_90 : f32 to vector<16x1xf32>
    %270 = arith.addf %266, %269 : vector<16x1xf32>
    %271 = math.rsqrt %270 : vector<16x1xf32>
    %272 = vector.broadcast %271 : vector<16x1xf32> to vector<16x40xf32>
    %273 = arith.mulf %268, %272 : vector<16x40xf32>
    %274 = vector.broadcast %253 : vector<1x40xf32> to vector<16x40xf32>
    %275 = arith.mulf %273, %274 : vector<16x40xf32>
    %276 = vector.broadcast %255 : vector<1x40xf32> to vector<16x40xf32>
    %277 = arith.addf %275, %276 : vector<16x40xf32>
    %c1 = arith.constant 1 : index
    %c0_91 = arith.constant 0 : index
    %c0_92 = arith.constant 0 : index
    %278 = vector.load %arg3[%c1, %c0_91, %c0_92] : memref<2x40x40xf32, #tpu.memory_space<vmem>>, vector<1x40x40xf32>
    %279 = vector.shape_cast %278 : vector<1x40x40xf32> to vector<40x40xf32>
    %cst_93 = arith.constant dense<0.000000e+00> : vector<16x40xf32>
    %280 = tpu.matmul %277, %279, %cst_93 {dimension_numbers = #tpu.dot_dimension_numbers<[1], [0], [0], [1], [0, 0, 1, 1], [], []>} : vector<16x40xf32>, vector<40x40xf32>, vector<16x40xf32> -> vector<16x40xf32>
    %c1_94 = arith.constant 1 : index
    %c0_95 = arith.constant 0 : index
    %c0_96 = arith.constant 0 : index
    %281 = vector.load %arg4[%c1_94, %c0_95, %c0_96] : memref<2x1x40xf32, #tpu.memory_space<vmem>>, vector<1x1x40xf32>
    %282 = vector.shape_cast %281 : vector<1x1x40xf32> to vector<1x40xf32>
    %283 = vector.broadcast %282 : vector<1x40xf32> to vector<16x40xf32>
    %284 = arith.addf %280, %283 : vector<16x40xf32>
    %c1_97 = arith.constant 1 : index
    %c0_98 = arith.constant 0 : index
    %c0_99 = arith.constant 0 : index
    %285 = vector.load %arg5[%c1_97, %c0_98, %c0_99] : memref<2x40x40xf32, #tpu.memory_space<vmem>>, vector<1x40x40xf32>
    %286 = vector.shape_cast %285 : vector<1x40x40xf32> to vector<40x40xf32>
    %cst_100 = arith.constant dense<0.000000e+00> : vector<16x40xf32>
    %287 = tpu.matmul %277, %286, %cst_100 {dimension_numbers = #tpu.dot_dimension_numbers<[1], [0], [0], [1], [0, 0, 1, 1], [], []>} : vector<16x40xf32>, vector<40x40xf32>, vector<16x40xf32> -> vector<16x40xf32>
    %c1_101 = arith.constant 1 : index
    %c0_102 = arith.constant 0 : index
    %c0_103 = arith.constant 0 : index
    %288 = vector.load %arg6[%c1_101, %c0_102, %c0_103] : memref<2x1x40xf32, #tpu.memory_space<vmem>>, vector<1x1x40xf32>
    %289 = vector.shape_cast %288 : vector<1x1x40xf32> to vector<1x40xf32>
    %290 = vector.broadcast %289 : vector<1x40xf32> to vector<16x40xf32>
    %291 = arith.addf %287, %290 : vector<16x40xf32>
    %c1_104 = arith.constant 1 : index
    %c0_105 = arith.constant 0 : index
    %c0_106 = arith.constant 0 : index
    %292 = vector.load %arg7[%c1_104, %c0_105, %c0_106] : memref<2x40x40xf32, #tpu.memory_space<vmem>>, vector<1x40x40xf32>
    %293 = vector.shape_cast %292 : vector<1x40x40xf32> to vector<40x40xf32>
    %cst_107 = arith.constant dense<0.000000e+00> : vector<16x40xf32>
    %294 = tpu.matmul %277, %293, %cst_107 {dimension_numbers = #tpu.dot_dimension_numbers<[1], [0], [0], [1], [0, 0, 1, 1], [], []>} : vector<16x40xf32>, vector<40x40xf32>, vector<16x40xf32> -> vector<16x40xf32>
    %c1_108 = arith.constant 1 : index
    %c0_109 = arith.constant 0 : index
    %c0_110 = arith.constant 0 : index
    %295 = vector.load %arg8[%c1_108, %c0_109, %c0_110] : memref<2x1x40xf32, #tpu.memory_space<vmem>>, vector<1x1x40xf32>
    %296 = vector.shape_cast %295 : vector<1x1x40xf32> to vector<1x40xf32>
    %297 = vector.broadcast %296 : vector<1x40xf32> to vector<16x40xf32>
    %298 = arith.addf %294, %297 : vector<16x40xf32>
    %cst_111 = arith.constant 5.000000e-01 : f32
    %299 = vector.broadcast %cst_111 : f32 to vector<16x40xf32>
    %300 = arith.mulf %284, %299 : vector<16x40xf32>
    %301 = vector.broadcast %15 : vector<1x40xf32> to vector<16x40xf32>
    %302 = arith.mulf %300, %301 : vector<16x40xf32>
    %303 = vector.broadcast %22 : vector<1x40xf32> to vector<16x40xf32>
    %304 = arith.mulf %300, %303 : vector<16x40xf32>
    %305 = vector.broadcast %29 : vector<1x40xf32> to vector<16x40xf32>
    %306 = arith.mulf %300, %305 : vector<16x40xf32>
    %307 = vector.broadcast %36 : vector<1x40xf32> to vector<16x40xf32>
    %308 = arith.mulf %300, %307 : vector<16x40xf32>
    %309 = vector.broadcast %43 : vector<1x40xf32> to vector<16x40xf32>
    %310 = arith.mulf %300, %309 : vector<16x40xf32>
    %311 = vector.broadcast %50 : vector<1x40xf32> to vector<16x40xf32>
    %312 = arith.mulf %300, %311 : vector<16x40xf32>
    %313 = vector.broadcast %57 : vector<1x40xf32> to vector<16x40xf32>
    %314 = arith.mulf %300, %313 : vector<16x40xf32>
    %315 = vector.broadcast %64 : vector<1x40xf32> to vector<16x40xf32>
    %316 = arith.mulf %300, %315 : vector<16x40xf32>
    %317 = vector.broadcast %71 : vector<1x40xf32> to vector<16x40xf32>
    %318 = arith.mulf %300, %317 : vector<16x40xf32>
    %319 = vector.broadcast %78 : vector<1x40xf32> to vector<16x40xf32>
    %320 = arith.mulf %300, %319 : vector<16x40xf32>
    %321 = tpu.concatenate %302, %304, %306, %308, %310, %312, %314, %316, %318, %320 in 0 : vector<16x40xf32>, vector<16x40xf32>, vector<16x40xf32>, vector<16x40xf32>, vector<16x40xf32>, vector<16x40xf32>, vector<16x40xf32>, vector<16x40xf32>, vector<16x40xf32>, vector<16x40xf32> -> vector<160x40xf32>
    %cst_112 = arith.constant dense<0.000000e+00> : vector<160x16xf32>
    %322 = tpu.matmul %321, %291, %cst_112 {dimension_numbers = #tpu.dot_dimension_numbers<[1], [1], [0], [0], [0, 0, 1, 0], [], []>} : vector<160x40xf32>, vector<16x40xf32>, vector<160x16xf32> -> vector<160x16xf32>
    %323 = arith.addf %322, %97 : vector<160x16xf32>
    %cst_113 = arith.constant dense<0xFF800000> : vector<160xf32>
    %324 = vector.multi_reduction <maximumf>, %323, %cst_113 [1] : vector<160x16xf32> to vector<160xf32>
    %325 = vector.shape_cast %324 : vector<160xf32> to vector<160x1xf32>
    %326 = vector.broadcast %325 : vector<160x1xf32> to vector<160x16xf32>
    %327 = arith.subf %323, %326 : vector<160x16xf32>
    %328 = math.exp %327 : vector<160x16xf32>
    %cst_114 = arith.constant dense<0.000000e+00> : vector<160xf32>
    %329 = vector.multi_reduction <add>, %328, %cst_114 [1] : vector<160x16xf32> to vector<160xf32>
    %330 = vector.shape_cast %329 : vector<160xf32> to vector<160x1xf32>
    %331 = tpu.reciprocal %330 {approx = true} : vector<160x1xf32> -> vector<160x1xf32>
    %332 = vector.broadcast %331 : vector<160x1xf32> to vector<160x16xf32>
    %333 = arith.mulf %328, %332 : vector<160x16xf32>
    %cst_115 = arith.constant dense<0.000000e+00> : vector<160x40xf32>
    %334 = tpu.matmul %333, %298, %cst_115 {dimension_numbers = #tpu.dot_dimension_numbers<[1], [0], [0], [1], [0, 0, 1, 1], [], []>} : vector<160x16xf32>, vector<16x40xf32>, vector<160x40xf32> -> vector<160x40xf32>
    %335 = vector.extract_strided_slice %334 {offsets = [0, 0], sizes = [16, 40], strides = [1, 1]} : vector<160x40xf32> to vector<16x40xf32>
    %336 = vector.broadcast %15 : vector<1x40xf32> to vector<16x40xf32>
    %337 = arith.mulf %335, %336 : vector<16x40xf32>
    %338 = vector.extract_strided_slice %334 {offsets = [16, 0], sizes = [16, 40], strides = [1, 1]} : vector<160x40xf32> to vector<16x40xf32>
    %339 = vector.broadcast %22 : vector<1x40xf32> to vector<16x40xf32>
    %340 = arith.mulf %338, %339 : vector<16x40xf32>
    %341 = arith.addf %337, %340 : vector<16x40xf32>
    %342 = vector.extract_strided_slice %334 {offsets = [32, 0], sizes = [16, 40], strides = [1, 1]} : vector<160x40xf32> to vector<16x40xf32>
    %343 = vector.broadcast %29 : vector<1x40xf32> to vector<16x40xf32>
    %344 = arith.mulf %342, %343 : vector<16x40xf32>
    %345 = arith.addf %341, %344 : vector<16x40xf32>
    %346 = vector.extract_strided_slice %334 {offsets = [48, 0], sizes = [16, 40], strides = [1, 1]} : vector<160x40xf32> to vector<16x40xf32>
    %347 = vector.broadcast %36 : vector<1x40xf32> to vector<16x40xf32>
    %348 = arith.mulf %346, %347 : vector<16x40xf32>
    %349 = arith.addf %345, %348 : vector<16x40xf32>
    %350 = vector.extract_strided_slice %334 {offsets = [64, 0], sizes = [16, 40], strides = [1, 1]} : vector<160x40xf32> to vector<16x40xf32>
    %351 = vector.broadcast %43 : vector<1x40xf32> to vector<16x40xf32>
    %352 = arith.mulf %350, %351 : vector<16x40xf32>
    %353 = arith.addf %349, %352 : vector<16x40xf32>
    %354 = vector.extract_strided_slice %334 {offsets = [80, 0], sizes = [16, 40], strides = [1, 1]} : vector<160x40xf32> to vector<16x40xf32>
    %355 = vector.broadcast %50 : vector<1x40xf32> to vector<16x40xf32>
    %356 = arith.mulf %354, %355 : vector<16x40xf32>
    %357 = arith.addf %353, %356 : vector<16x40xf32>
    %358 = vector.extract_strided_slice %334 {offsets = [96, 0], sizes = [16, 40], strides = [1, 1]} : vector<160x40xf32> to vector<16x40xf32>
    %359 = vector.broadcast %57 : vector<1x40xf32> to vector<16x40xf32>
    %360 = arith.mulf %358, %359 : vector<16x40xf32>
    %361 = arith.addf %357, %360 : vector<16x40xf32>
    %362 = vector.extract_strided_slice %334 {offsets = [112, 0], sizes = [16, 40], strides = [1, 1]} : vector<160x40xf32> to vector<16x40xf32>
    %363 = vector.broadcast %64 : vector<1x40xf32> to vector<16x40xf32>
    %364 = arith.mulf %362, %363 : vector<16x40xf32>
    %365 = arith.addf %361, %364 : vector<16x40xf32>
    %366 = vector.extract_strided_slice %334 {offsets = [128, 0], sizes = [16, 40], strides = [1, 1]} : vector<160x40xf32> to vector<16x40xf32>
    %367 = vector.broadcast %71 : vector<1x40xf32> to vector<16x40xf32>
    %368 = arith.mulf %366, %367 : vector<16x40xf32>
    %369 = arith.addf %365, %368 : vector<16x40xf32>
    %370 = vector.extract_strided_slice %334 {offsets = [144, 0], sizes = [16, 40], strides = [1, 1]} : vector<160x40xf32> to vector<16x40xf32>
    %371 = vector.broadcast %78 : vector<1x40xf32> to vector<16x40xf32>
    %372 = arith.mulf %370, %371 : vector<16x40xf32>
    %373 = arith.addf %369, %372 : vector<16x40xf32>
    %c1_116 = arith.constant 1 : index
    %c0_117 = arith.constant 0 : index
    %c0_118 = arith.constant 0 : index
    %374 = vector.load %arg9[%c1_116, %c0_117, %c0_118] : memref<2x40x40xf32, #tpu.memory_space<vmem>>, vector<1x40x40xf32>
    %375 = vector.shape_cast %374 : vector<1x40x40xf32> to vector<40x40xf32>
    %cst_119 = arith.constant dense<0.000000e+00> : vector<16x40xf32>
    %376 = tpu.matmul %373, %375, %cst_119 {dimension_numbers = #tpu.dot_dimension_numbers<[1], [0], [0], [1], [0, 0, 1, 1], [], []>} : vector<16x40xf32>, vector<40x40xf32>, vector<16x40xf32> -> vector<16x40xf32>
    %c1_120 = arith.constant 1 : index
    %c0_121 = arith.constant 0 : index
    %c0_122 = arith.constant 0 : index
    %377 = vector.load %arg10[%c1_120, %c0_121, %c0_122] : memref<2x1x40xf32, #tpu.memory_space<vmem>>, vector<1x1x40xf32>
    %378 = vector.shape_cast %377 : vector<1x1x40xf32> to vector<1x40xf32>
    %379 = vector.broadcast %378 : vector<1x40xf32> to vector<16x40xf32>
    %380 = arith.addf %376, %379 : vector<16x40xf32>
    %381 = arith.addf %277, %380 : vector<16x40xf32>
    %c1_123 = arith.constant 1 : index
    %c0_124 = arith.constant 0 : index
    %c0_125 = arith.constant 0 : index
    %382 = vector.load %arg11[%c1_123, %c0_124, %c0_125] : memref<2x1x40xf32, #tpu.memory_space<vmem>>, vector<1x1x40xf32>
    %383 = vector.shape_cast %382 : vector<1x1x40xf32> to vector<1x40xf32>
    %c1_126 = arith.constant 1 : index
    %c0_127 = arith.constant 0 : index
    %c0_128 = arith.constant 0 : index
    %384 = vector.load %arg12[%c1_126, %c0_127, %c0_128] : memref<2x1x40xf32, #tpu.memory_space<vmem>>, vector<1x1x40xf32>
    %385 = vector.shape_cast %384 : vector<1x1x40xf32> to vector<1x40xf32>
    %cst_129 = arith.constant dense<0.000000e+00> : vector<16xf32>
    %386 = vector.multi_reduction <add>, %381, %cst_129 [1] : vector<16x40xf32> to vector<16xf32>
    %387 = vector.shape_cast %386 : vector<16xf32> to vector<16x1xf32>
    %cst_130 = arith.constant 4.000000e+01 : f32
    %388 = vector.broadcast %cst_130 : f32 to vector<16x1xf32>
    %389 = arith.divf %387, %388 : vector<16x1xf32>
    %390 = vector.broadcast %389 : vector<16x1xf32> to vector<16x40xf32>
    %391 = arith.subf %381, %390 : vector<16x40xf32>
    %392 = arith.mulf %391, %391 : vector<16x40xf32>
    %cst_131 = arith.constant dense<0.000000e+00> : vector<16xf32>
    %393 = vector.multi_reduction <add>, %392, %cst_131 [1] : vector<16x40xf32> to vector<16xf32>
    %394 = vector.shape_cast %393 : vector<16xf32> to vector<16x1xf32>
    %cst_132 = arith.constant 4.000000e+01 : f32
    %395 = vector.broadcast %cst_132 : f32 to vector<16x1xf32>
    %396 = arith.divf %394, %395 : vector<16x1xf32>
    %397 = vector.broadcast %389 : vector<16x1xf32> to vector<16x40xf32>
    %398 = arith.subf %381, %397 : vector<16x40xf32>
    %cst_133 = arith.constant 9.99999974E-6 : f32
    %399 = vector.broadcast %cst_133 : f32 to vector<16x1xf32>
    %400 = arith.addf %396, %399 : vector<16x1xf32>
    %401 = math.rsqrt %400 : vector<16x1xf32>
    %402 = vector.broadcast %401 : vector<16x1xf32> to vector<16x40xf32>
    %403 = arith.mulf %398, %402 : vector<16x40xf32>
    %404 = vector.broadcast %383 : vector<1x40xf32> to vector<16x40xf32>
    %405 = arith.mulf %403, %404 : vector<16x40xf32>
    %406 = vector.broadcast %385 : vector<1x40xf32> to vector<16x40xf32>
    %407 = arith.addf %405, %406 : vector<16x40xf32>
    %c1_134 = arith.constant 1 : index
    %c0_135 = arith.constant 0 : index
    %c0_136 = arith.constant 0 : index
    %408 = vector.load %arg13[%c1_134, %c0_135, %c0_136] : memref<2x40x40xf32, #tpu.memory_space<vmem>>, vector<1x40x40xf32>
    %409 = vector.shape_cast %408 : vector<1x40x40xf32> to vector<40x40xf32>
    %cst_137 = arith.constant dense<0.000000e+00> : vector<16x40xf32>
    %410 = tpu.matmul %407, %409, %cst_137 {dimension_numbers = #tpu.dot_dimension_numbers<[1], [0], [0], [1], [0, 0, 1, 1], [], []>} : vector<16x40xf32>, vector<40x40xf32>, vector<16x40xf32> -> vector<16x40xf32>
    %c1_138 = arith.constant 1 : index
    %c0_139 = arith.constant 0 : index
    %c0_140 = arith.constant 0 : index
    %411 = vector.load %arg14[%c1_138, %c0_139, %c0_140] : memref<2x1x40xf32, #tpu.memory_space<vmem>>, vector<1x1x40xf32>
    %412 = vector.shape_cast %411 : vector<1x1x40xf32> to vector<1x40xf32>
    %413 = vector.broadcast %412 : vector<1x40xf32> to vector<16x40xf32>
    %414 = arith.addf %410, %413 : vector<16x40xf32>
    %cst_141 = arith.constant 0.000000e+00 : f32
    %415 = vector.broadcast %cst_141 : f32 to vector<16x40xf32>
    %416 = arith.maximumf %414, %415 : vector<16x40xf32>
    %c1_142 = arith.constant 1 : index
    %c0_143 = arith.constant 0 : index
    %c0_144 = arith.constant 0 : index
    %417 = vector.load %arg15[%c1_142, %c0_143, %c0_144] : memref<2x40x40xf32, #tpu.memory_space<vmem>>, vector<1x40x40xf32>
    %418 = vector.shape_cast %417 : vector<1x40x40xf32> to vector<40x40xf32>
    %cst_145 = arith.constant dense<0.000000e+00> : vector<16x40xf32>
    %419 = tpu.matmul %416, %418, %cst_145 {dimension_numbers = #tpu.dot_dimension_numbers<[1], [0], [0], [1], [0, 0, 1, 1], [], []>} : vector<16x40xf32>, vector<40x40xf32>, vector<16x40xf32> -> vector<16x40xf32>
    %c1_146 = arith.constant 1 : index
    %c0_147 = arith.constant 0 : index
    %c0_148 = arith.constant 0 : index
    %420 = vector.load %arg16[%c1_146, %c0_147, %c0_148] : memref<2x1x40xf32, #tpu.memory_space<vmem>>, vector<1x1x40xf32>
    %421 = vector.shape_cast %420 : vector<1x1x40xf32> to vector<1x40xf32>
    %422 = vector.broadcast %421 : vector<1x40xf32> to vector<16x40xf32>
    %423 = arith.addf %419, %422 : vector<16x40xf32>
    %424 = arith.addf %407, %423 : vector<16x40xf32>
    %c1_149 = arith.constant 1 : index
    %c0_150 = arith.constant 0 : index
    %c0_151 = arith.constant 0 : index
    %425 = vector.load %arg17[%c1_149, %c0_150, %c0_151] : memref<2x1x40xf32, #tpu.memory_space<vmem>>, vector<1x1x40xf32>
    %426 = vector.shape_cast %425 : vector<1x1x40xf32> to vector<1x40xf32>
    %c1_152 = arith.constant 1 : index
    %c0_153 = arith.constant 0 : index
    %c0_154 = arith.constant 0 : index
    %427 = vector.load %arg18[%c1_152, %c0_153, %c0_154] : memref<2x1x40xf32, #tpu.memory_space<vmem>>, vector<1x1x40xf32>
    %428 = vector.shape_cast %427 : vector<1x1x40xf32> to vector<1x40xf32>
    %cst_155 = arith.constant dense<0.000000e+00> : vector<16xf32>
    %429 = vector.multi_reduction <add>, %424, %cst_155 [1] : vector<16x40xf32> to vector<16xf32>
    %430 = vector.shape_cast %429 : vector<16xf32> to vector<16x1xf32>
    %cst_156 = arith.constant 4.000000e+01 : f32
    %431 = vector.broadcast %cst_156 : f32 to vector<16x1xf32>
    %432 = arith.divf %430, %431 : vector<16x1xf32>
    %433 = vector.broadcast %432 : vector<16x1xf32> to vector<16x40xf32>
    %434 = arith.subf %424, %433 : vector<16x40xf32>
    %435 = arith.mulf %434, %434 : vector<16x40xf32>
    %cst_157 = arith.constant dense<0.000000e+00> : vector<16xf32>
    %436 = vector.multi_reduction <add>, %435, %cst_157 [1] : vector<16x40xf32> to vector<16xf32>
    %437 = vector.shape_cast %436 : vector<16xf32> to vector<16x1xf32>
    %cst_158 = arith.constant 4.000000e+01 : f32
    %438 = vector.broadcast %cst_158 : f32 to vector<16x1xf32>
    %439 = arith.divf %437, %438 : vector<16x1xf32>
    %440 = vector.broadcast %432 : vector<16x1xf32> to vector<16x40xf32>
    %441 = arith.subf %424, %440 : vector<16x40xf32>
    %cst_159 = arith.constant 9.99999974E-6 : f32
    %442 = vector.broadcast %cst_159 : f32 to vector<16x1xf32>
    %443 = arith.addf %439, %442 : vector<16x1xf32>
    %444 = math.rsqrt %443 : vector<16x1xf32>
    %445 = vector.broadcast %444 : vector<16x1xf32> to vector<16x40xf32>
    %446 = arith.mulf %441, %445 : vector<16x40xf32>
    %447 = vector.broadcast %426 : vector<1x40xf32> to vector<16x40xf32>
    %448 = arith.mulf %446, %447 : vector<16x40xf32>
    %449 = vector.broadcast %428 : vector<1x40xf32> to vector<16x40xf32>
    %450 = arith.addf %448, %449 : vector<16x40xf32>
    %cst_160 = arith.constant dense<0.000000e+00> : vector<2x40xf32>
    %451 = tpu.matmul %104, %450, %cst_160 {dimension_numbers = #tpu.dot_dimension_numbers<[1], [0], [0], [1], [0, 0, 1, 1], [], []>} : vector<2x16xf32>, vector<16x40xf32>, vector<2x40xf32> -> vector<2x40xf32>
    %c0_161 = arith.constant 0 : index
    %c0_162 = arith.constant 0 : index
    %452 = vector.load %arg19[%c0_161, %c0_162] : memref<40x8xf32, #tpu.memory_space<vmem>>, vector<40x8xf32>
    %cst_163 = arith.constant dense<0.000000e+00> : vector<2x8xf32>
    %453 = tpu.matmul %451, %452, %cst_163 {dimension_numbers = #tpu.dot_dimension_numbers<[1], [0], [0], [1], [0, 0, 1, 1], [], []>} : vector<2x40xf32>, vector<40x8xf32>, vector<2x8xf32> -> vector<2x8xf32>
    %c0_164 = arith.constant 0 : index
    %c0_165 = arith.constant 0 : index
    %454 = vector.load %arg20[%c0_164, %c0_165] : memref<1x8xf32, #tpu.memory_space<vmem>>, vector<1x8xf32>
    %455 = vector.broadcast %454 : vector<1x8xf32> to vector<2x8xf32>
    %456 = arith.addf %453, %455 : vector<2x8xf32>
    %c0_166 = arith.constant 0 : index
    %c0_167 = arith.constant 0 : index
    %457 = vector.load %arg21[%c0_166, %c0_167] : memref<1x8xf32, #tpu.memory_space<vmem>>, vector<1x8xf32>
    %c0_168 = arith.constant 0 : index
    %c0_169 = arith.constant 0 : index
    %458 = vector.load %arg22[%c0_168, %c0_169] : memref<1x8xf32, #tpu.memory_space<vmem>>, vector<1x8xf32>
    %cst_170 = arith.constant dense<0.000000e+00> : vector<2xf32>
    %459 = vector.multi_reduction <add>, %456, %cst_170 [1] : vector<2x8xf32> to vector<2xf32>
    %460 = vector.shape_cast %459 : vector<2xf32> to vector<2x1xf32>
    %cst_171 = arith.constant 8.000000e+00 : f32
    %461 = vector.broadcast %cst_171 : f32 to vector<2x1xf32>
    %462 = arith.divf %460, %461 : vector<2x1xf32>
    %463 = vector.broadcast %462 : vector<2x1xf32> to vector<2x8xf32>
    %464 = arith.subf %456, %463 : vector<2x8xf32>
    %465 = arith.mulf %464, %464 : vector<2x8xf32>
    %cst_172 = arith.constant dense<0.000000e+00> : vector<2xf32>
    %466 = vector.multi_reduction <add>, %465, %cst_172 [1] : vector<2x8xf32> to vector<2xf32>
    %467 = vector.shape_cast %466 : vector<2xf32> to vector<2x1xf32>
    %cst_173 = arith.constant 8.000000e+00 : f32
    %468 = vector.broadcast %cst_173 : f32 to vector<2x1xf32>
    %469 = arith.divf %467, %468 : vector<2x1xf32>
    %470 = vector.broadcast %462 : vector<2x1xf32> to vector<2x8xf32>
    %471 = arith.subf %456, %470 : vector<2x8xf32>
    %cst_174 = arith.constant 9.99999974E-6 : f32
    %472 = vector.broadcast %cst_174 : f32 to vector<2x1xf32>
    %473 = arith.addf %469, %472 : vector<2x1xf32>
    %474 = math.rsqrt %473 : vector<2x1xf32>
    %475 = vector.broadcast %474 : vector<2x1xf32> to vector<2x8xf32>
    %476 = arith.mulf %471, %475 : vector<2x8xf32>
    %477 = vector.broadcast %457 : vector<1x8xf32> to vector<2x8xf32>
    %478 = arith.mulf %476, %477 : vector<2x8xf32>
    %479 = vector.broadcast %458 : vector<1x8xf32> to vector<2x8xf32>
    %480 = arith.addf %478, %479 : vector<2x8xf32>
    %c0_175 = arith.constant 0 : index
    %c0_176 = arith.constant 0 : index
    %481 = vector.load %arg23[%c0_175, %c0_176] : memref<2x8xf32, #tpu.memory_space<vmem>>, vector<2x8xf32>
    tpu.vector_store %arg23[%c0_175, %c0_176], %480 {strides = array<i32>} : memref<2x8xf32, #tpu.memory_space<vmem>>, vector<2x8xf32>,
    %482 = tpu.iota {dimensions = array<i32: 1>} : vector<2x8xi32>
    %483 = arith.sitofp %482 : vector<2x8xi32> to vector<2x8xf32>
    %cst_177 = arith.constant dense<0xFF800000> : vector<2xf32>
    %484 = vector.multi_reduction <maximumf>, %480, %cst_177 [1] : vector<2x8xf32> to vector<2xf32>
    %485 = vector.shape_cast %484 : vector<2xf32> to vector<2x1xf32>
    %486 = vector.broadcast %485 : vector<2x1xf32> to vector<2x8xf32>
    %487 = arith.cmpf oeq, %480, %486 : vector<2x8xf32>
    %cst_178 = arith.constant 8.000000e+00 : f32
    %488 = vector.broadcast %cst_178 : f32 to vector<2x8xf32>
    %489 = arith.select %487, %483, %488 : vector<2x8xi1>, vector<2x8xf32>
    %cst_179 = arith.constant dense<0x7F800000> : vector<2xf32>
    %490 = vector.multi_reduction <minimumf>, %489, %cst_179 [1] : vector<2x8xf32> to vector<2xf32>
    %491 = vector.shape_cast %490 : vector<2xf32> to vector<2x1xf32>
    %492 = arith.fptosi %491 : vector<2x1xf32> to vector<2x1xi32>
    %c0_180 = arith.constant 0 : index
    %c0_181 = arith.constant 0 : index
    %493 = vector.load %arg24[%c0_180, %c0_181] : memref<2x1xi32, #tpu.memory_space<vmem>>, vector<2x1xi32>
    tpu.vector_store %arg24[%c0_180, %c0_181], %492 {strides = array<i32>} : memref<2x1xi32, #tpu.memory_space<vmem>>, vector<2x1xi32>,
    return
  }
  func.func @transform_0(%arg0: i32) -> (i32, i32) {
    %c0_i32 = arith.constant 0 : i32
    %c0_i32_0 = arith.constant 0 : i32
    return %arg0, %c0_i32 : i32, i32
  }
  func.func @transform_1(%arg0: i32) -> (i32, i32) {
    %c0_i32 = arith.constant 0 : i32
    %c0_i32_0 = arith.constant 0 : i32
    %c0_i32_1 = arith.constant 0 : i32
    return %c0_i32, %c0_i32_0 : i32, i32
  }
  func.func @transform_2(%arg0: i32) -> (i32, i32, i32) {
    %c0_i32 = arith.constant 0 : i32
    %c0_i32_0 = arith.constant 0 : i32
    %c0_i32_1 = arith.constant 0 : i32
    %c0_i32_2 = arith.constant 0 : i32
    return %c0_i32, %c0_i32_0, %c0_i32_1 : i32, i32, i32
  }
  func.func @transform_3(%arg0: i32) -> (i32, i32, i32) {
    %c0_i32 = arith.constant 0 : i32
    %c0_i32_0 = arith.constant 0 : i32
    %c0_i32_1 = arith.constant 0 : i32
    %c0_i32_2 = arith.constant 0 : i32
    return %c0_i32, %c0_i32_0, %c0_i32_1 : i32, i32, i32
  }
  func.func @transform_4(%arg0: i32) -> (i32, i32, i32) {
    %c0_i32 = arith.constant 0 : i32
    %c0_i32_0 = arith.constant 0 : i32
    %c0_i32_1 = arith.constant 0 : i32
    %c0_i32_2 = arith.constant 0 : i32
    return %c0_i32, %c0_i32_0, %c0_i32_1 : i32, i32, i32
  }
  func.func @transform_5(%arg0: i32) -> (i32, i32, i32) {
    %c0_i32 = arith.constant 0 : i32
    %c0_i32_0 = arith.constant 0 : i32
    %c0_i32_1 = arith.constant 0 : i32
    %c0_i32_2 = arith.constant 0 : i32
    return %c0_i32, %c0_i32_0, %c0_i32_1 : i32, i32, i32
  }
  func.func @transform_6(%arg0: i32) -> (i32, i32, i32) {
    %c0_i32 = arith.constant 0 : i32
    %c0_i32_0 = arith.constant 0 : i32
    %c0_i32_1 = arith.constant 0 : i32
    %c0_i32_2 = arith.constant 0 : i32
    return %c0_i32, %c0_i32_0, %c0_i32_1 : i32, i32, i32
  }
  func.func @transform_7(%arg0: i32) -> (i32, i32, i32) {
    %c0_i32 = arith.constant 0 : i32
    %c0_i32_0 = arith.constant 0 : i32
    %c0_i32_1 = arith.constant 0 : i32
    %c0_i32_2 = arith.constant 0 : i32
    return %c0_i32, %c0_i32_0, %c0_i32_1 : i32, i32, i32
  }
  func.func @transform_8(%arg0: i32) -> (i32, i32, i32) {
    %c0_i32 = arith.constant 0 : i32
    %c0_i32_0 = arith.constant 0 : i32
    %c0_i32_1 = arith.constant 0 : i32
    %c0_i32_2 = arith.constant 0 : i32
    return %c0_i32, %c0_i32_0, %c0_i32_1 : i32, i32, i32
  }
  func.func @transform_9(%arg0: i32) -> (i32, i32, i32) {
    %c0_i32 = arith.constant 0 : i32
    %c0_i32_0 = arith.constant 0 : i32
    %c0_i32_1 = arith.constant 0 : i32
    %c0_i32_2 = arith.constant 0 : i32
    return %c0_i32, %c0_i32_0, %c0_i32_1 : i32, i32, i32
  }
  func.func @transform_10(%arg0: i32) -> (i32, i32, i32) {
    %c0_i32 = arith.constant 0 : i32
    %c0_i32_0 = arith.constant 0 : i32
    %c0_i32_1 = arith.constant 0 : i32
    %c0_i32_2 = arith.constant 0 : i32
    return %c0_i32, %c0_i32_0, %c0_i32_1 : i32, i32, i32
  }
  func.func @transform_11(%arg0: i32) -> (i32, i32, i32) {
    %c0_i32 = arith.constant 0 : i32
    %c0_i32_0 = arith.constant 0 : i32
    %c0_i32_1 = arith.constant 0 : i32
    %c0_i32_2 = arith.constant 0 : i32
    return %c0_i32, %c0_i32_0, %c0_i32_1 : i32, i32, i32
  }
  func.func @transform_12(%arg0: i32) -> (i32, i32, i32) {
    %c0_i32 = arith.constant 0 : i32
    %c0_i32_0 = arith.constant 0 : i32
    %c0_i32_1 = arith.constant 0 : i32
    %c0_i32_2 = arith.constant 0 : i32
    return %c0_i32, %c0_i32_0, %c0_i32_1 : i32, i32, i32
  }
  func.func @transform_13(%arg0: i32) -> (i32, i32, i32) {
    %c0_i32 = arith.constant 0 : i32
    %c0_i32_0 = arith.constant 0 : i32
    %c0_i32_1 = arith.constant 0 : i32
    %c0_i32_2 = arith.constant 0 : i32
    return %c0_i32, %c0_i32_0, %c0_i32_1 : i32, i32, i32
  }
  func.func @transform_14(%arg0: i32) -> (i32, i32, i32) {
    %c0_i32 = arith.constant 0 : i32
    %c0_i32_0 = arith.constant 0 : i32
    %c0_i32_1 = arith.constant 0 : i32
    %c0_i32_2 = arith.constant 0 : i32
    return %c0_i32, %c0_i32_0, %c0_i32_1 : i32, i32, i32
  }
  func.func @transform_15(%arg0: i32) -> (i32, i32, i32) {
    %c0_i32 = arith.constant 0 : i32
    %c0_i32_0 = arith.constant 0 : i32
    %c0_i32_1 = arith.constant 0 : i32
    %c0_i32_2 = arith.constant 0 : i32
    return %c0_i32, %c0_i32_0, %c0_i32_1 : i32, i32, i32
  }
  func.func @transform_16(%arg0: i32) -> (i32, i32, i32) {
    %c0_i32 = arith.constant 0 : i32
    %c0_i32_0 = arith.constant 0 : i32
    %c0_i32_1 = arith.constant 0 : i32
    %c0_i32_2 = arith.constant 0 : i32
    return %c0_i32, %c0_i32_0, %c0_i32_1 : i32, i32, i32
  }
  func.func @transform_17(%arg0: i32) -> (i32, i32, i32) {
    %c0_i32 = arith.constant 0 : i32
    %c0_i32_0 = arith.constant 0 : i32
    %c0_i32_1 = arith.constant 0 : i32
    %c0_i32_2 = arith.constant 0 : i32
    return %c0_i32, %c0_i32_0, %c0_i32_1 : i32, i32, i32
  }
  func.func @transform_18(%arg0: i32) -> (i32, i32) {
    %c0_i32 = arith.constant 0 : i32
    %c0_i32_0 = arith.constant 0 : i32
    %c0_i32_1 = arith.constant 0 : i32
    return %c0_i32, %c0_i32_0 : i32, i32
  }
  func.func @transform_19(%arg0: i32) -> (i32, i32) {
    %c0_i32 = arith.constant 0 : i32
    %c0_i32_0 = arith.constant 0 : i32
    %c0_i32_1 = arith.constant 0 : i32
    return %c0_i32, %c0_i32_0 : i32, i32
  }
  func.func @transform_20(%arg0: i32) -> (i32, i32) {
    %c0_i32 = arith.constant 0 : i32
    %c0_i32_0 = arith.constant 0 : i32
    %c0_i32_1 = arith.constant 0 : i32
    return %c0_i32, %c0_i32_0 : i32, i32
  }
  func.func @transform_21(%arg0: i32) -> (i32, i32) {
    %c0_i32 = arith.constant 0 : i32
    %c0_i32_0 = arith.constant 0 : i32
    %c0_i32_1 = arith.constant 0 : i32
    return %c0_i32, %c0_i32_0 : i32, i32
  }
  func.func @transform_22(%arg0: i32) -> (i32, i32) {
    %c0_i32 = arith.constant 0 : i32
    %c0_i32_0 = arith.constant 0 : i32
    return %arg0, %c0_i32 : i32, i32
  }
  func.func @transform_23(%arg0: i32) -> (i32, i32) {
    %c0_i32 = arith.constant 0 : i32
    %c0_i32_0 = arith.constant 0 : i32
    return %arg0, %c0_i32 : i32, i32
  }
}

</mosaic_0001>

<bundles_post_ra>
// kernel: model_forward.1
= control target key start
LH: loop header
LB: loop body
LE: loop exit
PB: predicated region body
PF: predicated region fallthrough
CT: control target
= control target key end

     0   :  { %s6194_s0 = inlined_call_operand.vmem [shape: s32[16,1], index: 0, kind: input, shape index: {}]   ;;  %s6195_s1 = inlined_call_operand.vmem [shape: f32[50,40], index: 1, kind: input, shape index: {}]   ;;  %s6196_s2 = inlined_call_operand.vmem [shape: f32[2,40,40], index: 2, kind: input, shape index: {}]   ;;  %s6197_s3 = inlined_call_operand.hbm [shape: f32[2,1,40], index: 3, kind: input, shape index: {}]   ;;  %s6198_s4 = inlined_call_operand.vmem [shape: f32[2,40,40], index: 4, kind: input, shape index: {}]   ;;  %s6199_s5 = inlined_call_operand.hbm [shape: f32[2,1,40], index: 5, kind: input, shape index: {}]   ;;  %s6200_s6 = inlined_call_operand.vmem [shape: f32[2,40,40], index: 6, kind: input, shape index: {}]   ;;  %s6201_s7 = inlined_call_operand.hbm [shape: f32[2,1,40], index: 7, kind: input, shape index: {}]   ;;  %s6202_s8 = inlined_call_operand.hbm [shape: f32[2,40,40], index: 8, kind: input, shape index: {}]   ;;  %s6203_s9 = inlined_call_operand.hbm [shape: f32[2,1,40], index: 9, kind: input, shape index: {}]   ;;  %s6204_s10 = inlined_call_operand.hbm [shape: f32[2,1,40], index: 10, kind: input, shape index: {}]   ;;  %s6205_s11 = inlined_call_operand.hbm [shape: f32[2,1,40], index: 11, kind: input, shape index: {}]   ;;  %s6206_s12 = inlined_call_operand.hbm [shape: f32[2,40,40], index: 12, kind: input, shape index: {}]   ;;  %s6207_s13 = inlined_call_operand.hbm [shape: f32[2,1,40], index: 13, kind: input, shape index: {}]   ;;  %s6208_s14 = inlined_call_operand.hbm [shape: f32[2,40,40], index: 14, kind: input, shape index: {}]   ;;  %s6209_s15 = inlined_call_operand.hbm [shape: f32[2,1,40], index: 15, kind: input, shape index: {}]   ;;  %s6210_s16 = inlined_call_operand.hbm [shape: f32[2,1,40], index: 16, kind: input, shape index: {}]   ;;  %s6211_s17 = inlined_call_operand.hbm [shape: f32[2,1,40], index: 17, kind: input, shape index: {}]   ;;  %s6212_s18 = inlined_call_operand.vmem [shape: f32[40,8], index: 18, kind: input, shape index: {}]   ;;  %s6213_s19 = inlined_call_operand.vmem [shape: f32[1,8], index: 19, kind: input, shape index: {}]   ;;  %s6214_s20 = inlined_call_operand.hbm [shape: f32[1,8], index: 20, kind: input, shape index: {}]   ;;  %s6215_s21 = inlined_call_operand.hbm [shape: f32[1,8], index: 21, kind: input, shape index: {}]   ;;  %s6216_s22 = inlined_call_operand.hbm [shape: f32[2,8], index: 22, kind: output, shape index: {0}]   ;;  %s6217_s23 = inlined_call_operand.vmem [shape: s32[2,1], index: 23, kind: output, shape index: {1}]  }
   0x1   :  { %6230 = sst [smem:[#allocation36_spill]] %s6194_s0 }
   0x2   :  { %6231 = sst [smem:[#allocation37_spill]] %s6195_s1 }
   0x3   :  { %6232 = sst [smem:[#allocation38_spill]] %s6196_s2 }
   0x4   :  { %6233 = sst [smem:[#allocation39_spill]] %s6197_s3 }
   0x5   :  { %6234 = sst [smem:[#allocation40_spill]] %s6198_s4 }
   0x6   :  { %6235 = sst [smem:[#allocation41_spill]] %s6199_s5 }
   0x7   :  { %6236 = sst [smem:[#allocation42_spill]] %s6200_s6 }
   0x8   :  { %6237 = sst [smem:[#allocation43_spill]] %s6201_s7 }
   0x9   :  { %6238 = sst [smem:[#allocation44_spill]] %s6217_s23 }
   0xa   :  { %29 = vsyncpa [#allocation3], 0 }
   0xb   :  { %30 = vsyncpa [#allocation6], 0 }
   0xc   :  { %31 = vsyncpa [#allocation9], 0 }
   0xd   :  { %32 = vsyncpa [#allocation12], 0 }
   0xe   :  { %33 = vsyncpa [#allocation15], 0 }
   0xf   :  { %34 = vsyncpa [#allocation18], 0 }
  0x10   :  { %35 = vsyncpa [#allocation21], 0 }
  0x11   :  { %36 = vsyncpa [#allocation24], 0 }
  0x12   :  { %37 = vsyncpa [#allocation4], 0  ;;  %s4837_s4 = smov [#allocation5]   ;;  %s4838_s24 = smov [#allocation8]  }
  0x13   :  { %s63_s30 = sshll.u32 %s4837_s4, 4  ;;  %s89_s25 = sshll.u32 %s4838_s24, 4  ;;  %s64_s30 = int_to_ptr.vmem [resolvable:$true] %s63_s30  ;;  %s4982_s25 = int_to_ptr.vmem [resolvable:$true] %s89_s25 }
  0x14   :  { %s6239_s26 = sld [smem:[#allocation41_spill]] }
  0x1a   :  { %s4467_s2 = scalar_lea.hbm %s6239_s26, 32 }
  0x1b   :  { %p4468_p0 = scmp.ne.s32.totalorder %s6239_s26, %s4467_s2  ;;  %p4471_p1 = scmp.lt.u32.totalorder %s4467_s2, %s6239_s26 }
  0x1d   :  { %p4473_p2 = pnand %p4471_p1, %p4468_p0 }
  0x1f   :  { %4476 = shalt.err (!%p4473_p2)
}
  0x20   :  { %s4477_s29 = scalar_lea.vmem %s64_s30, 32  ;;  %p4482_p4 = scmp.lt.s32.totalorder %s64_s30, %s64_s30 }
  0x21   :  { %p4478_p3 = scmp.ne.s32.totalorder %s64_s30, %s4477_s29  ;;  %p4483_p5 = scmp.lt.s32.totalorder %s4477_s29, %s4477_s29 }
  0x23   :  { %p4484_p6 = por %p4483_p5, %p4482_p4 }
  0x25   :  { %p4485_p7 = pnand %p4484_p6, %p4478_p3 }
  0x27   :  { %4488 = shalt.err (!%p4485_p7)
}
  0x28   :  { %s6226_s3 = smov 16   ;;  %s6228_s0 = smov 1  }
  0x29   :  { %69 = dma.hbm_to_vmem [thread:$0]  %s6239_s26, 32, %s64_s30, [#allocation6], %s6226_s3, %s6226_s3, %s6228_s0  }
  0x2a   :  { %s4489_s2 = scalar_lea.hbm %s6202_s8, 1280 }
  0x2b   :  { %p4490_p8 = scmp.ne.s32.totalorder %s6202_s8, %s4489_s2  ;;  %p4493_p9 = scmp.lt.u32.totalorder %s4489_s2, %s6202_s8 }
  0x2d   :  { %p4495_p10 = pnand %p4493_p9, %p4490_p8 }
  0x2f   :  { %4498 = shalt.err (!%p4495_p10)
}
  0x30   :  { %s4499_s29 = scalar_lea.vmem %s4982_s25, 1280  ;;  %p4504_p12 = scmp.lt.s32.totalorder %s4982_s25, %s4982_s25 }
  0x31   :  { %p4500_p11 = scmp.ne.s32.totalorder %s4982_s25, %s4499_s29  ;;  %p4505_p13 = scmp.lt.s32.totalorder %s4499_s29, %s4499_s29 }
  0x33   :  { %p4506_p0 = por %p4505_p13, %p4504_p12 }
  0x35   :  { %p4507_p1 = pnand %p4506_p0, %p4500_p11 }
  0x37   :  { %4510 = shalt.err (!%p4507_p1)
}
  0x38   :  { %s4841_s30 = smov 128   ;;  %s4842_s26 = smov 8  }
  0x39   :  { %95 = dma.hbm_to_vmem [thread:$0]  %s6202_s8, 1280, %s4982_s25, [#allocation9], %s4841_s30, %s4841_s30, %s4842_s26  }
  0x3a   :  { %s4843_s5 = smov [#allocation11]   ;;  %s4844_s2 = smov [#allocation14]  }
  0x3b   :  { %s113_s1 = sshll.u32 %s4843_s5, 4  ;;  %s137_s6 = sshll.u32 %s4844_s2, 4  ;;  %s114_s1 = int_to_ptr.vmem [resolvable:$true] %s113_s1  ;;  %s5019_s6 = int_to_ptr.vmem [resolvable:$true] %s137_s6 }
  0x3c   :  { %s4511_s28 = scalar_lea.hbm %s6204_s10, 32 }
  0x3d   :  { %p4512_p2 = scmp.ne.s32.totalorder %s6204_s10, %s4511_s28  ;;  %p4515_p3 = scmp.lt.u32.totalorder %s4511_s28, %s6204_s10 }
  0x3f   :  { %p4517_p4 = pnand %p4515_p3, %p4512_p2 }
  0x41   :  { %4520 = shalt.err (!%p4517_p4)
}
  0x42   :  { %s4521_s8 = scalar_lea.vmem %s114_s1, 32  ;;  %p4526_p6 = scmp.lt.s32.totalorder %s114_s1, %s114_s1 }
  0x43   :  { %p4522_p5 = scmp.ne.s32.totalorder %s114_s1, %s4521_s8  ;;  %p4527_p7 = scmp.lt.s32.totalorder %s4521_s8, %s4521_s8 }
  0x45   :  { %p4528_p8 = por %p4527_p7, %p4526_p6 }
  0x47   :  { %p4529_p9 = pnand %p4528_p8, %p4522_p5 }
  0x49   :  { %4532 = shalt.err (!%p4529_p9)
}
  0x4a   :  { %s6240_s25 = smov 1   ;;  %s6241_s4 = smov 16  }
  0x4b   :  { %119 = dma.hbm_to_vmem [thread:$0]  %s6204_s10, 32, %s114_s1, [#allocation12], %s6241_s4, %s6241_s4, %s6240_s25  }
  0x4c   :  { %s4533_s23 = scalar_lea.hbm %s6206_s12, 1280 }
  0x4d   :  { %p4534_p10 = scmp.ne.s32.totalorder %s6206_s12, %s4533_s23  ;;  %p4537_p11 = scmp.lt.u32.totalorder %s4533_s23, %s6206_s12 }
  0x4f   :  { %p4539_p12 = pnand %p4537_p11, %p4534_p10 }
  0x51   :  { %4542 = shalt.err (!%p4539_p12)
}
  0x52   :  { %s4543_s29 = scalar_lea.vmem %s5019_s6, 1280  ;;  %p4548_p0 = scmp.lt.s32.totalorder %s5019_s6, %s5019_s6 }
  0x53   :  { %p4544_p13 = scmp.ne.s32.totalorder %s5019_s6, %s4543_s29  ;;  %p4549_p1 = scmp.lt.s32.totalorder %s4543_s29, %s4543_s29 }
  0x55   :  { %p4550_p2 = por %p4549_p1, %p4548_p0 }
  0x57   :  { %p4551_p3 = pnand %p4550_p2, %p4544_p13 }
  0x59   :  { %4554 = shalt.err (!%p4551_p3)
}
  0x5a   :  { %143 = dma.hbm_to_vmem [thread:$0]  %s6206_s12, 1280, %s5019_s6, [#allocation15], %s4841_s30, %s4841_s30, %s4842_s26  }
  0x5b   :  { %s4845_s8 = smov [#allocation17]   ;;  %s4846_s5 = smov [#allocation20]  }
  0x5c   :  { %s161_s24 = sshll.u32 %s4845_s8, 4  ;;  %s185_s3 = sshll.u32 %s4846_s5, 4  ;;  %s162_s24 = int_to_ptr.vmem [resolvable:$true] %s161_s24  ;;  %s5056_s3 = int_to_ptr.vmem [resolvable:$true] %s185_s3 }
  0x5d   :  { %s4555_s0 = scalar_lea.hbm %s6208_s14, 1280 }
  0x5e   :  { %p4556_p4 = scmp.ne.s32.totalorder %s6208_s14, %s4555_s0  ;;  %p4559_p5 = scmp.lt.u32.totalorder %s4555_s0, %s6208_s14 }
  0x60   :  { %p4561_p6 = pnand %p4559_p5, %p4556_p4 }
  0x62   :  { %4564 = shalt.err (!%p4561_p6)
}
  0x63   :  { %s4565_s12 = scalar_lea.vmem %s162_s24, 1280  ;;  %p4570_p8 = scmp.lt.s32.totalorder %s162_s24, %s162_s24 }
  0x64   :  { %p4566_p7 = scmp.ne.s32.totalorder %s162_s24, %s4565_s12  ;;  %p4571_p9 = scmp.lt.s32.totalorder %s4565_s12, %s4565_s12 }
  0x66   :  { %p4572_p10 = por %p4571_p9, %p4570_p8 }
  0x68   :  { %p4573_p11 = pnand %p4572_p10, %p4566_p7 }
  0x6a   :  { %4576 = shalt.err (!%p4573_p11)
}
  0x6b   :  { %167 = dma.hbm_to_vmem [thread:$0]  %s6208_s14, 1280, %s162_s24, [#allocation18], %s4841_s30, %s4841_s30, %s4842_s26  }
  0x6c   :  { %s4577_s5 = scalar_lea.hbm %s6210_s16, 32 }
  0x6d   :  { %p4578_p12 = scmp.ne.s32.totalorder %s6210_s16, %s4577_s5  ;;  %p4581_p13 = scmp.lt.u32.totalorder %s4577_s5, %s6210_s16 }
  0x6f   :  { %p4583_p0 = pnand %p4581_p13, %p4578_p12 }
  0x71   :  { %4586 = shalt.err (!%p4583_p0)
}
  0x72   :  { %s4587_s7 = scalar_lea.vmem %s5056_s3, 32  ;;  %p4592_p2 = scmp.lt.s32.totalorder %s5056_s3, %s5056_s3 }
  0x73   :  { %p4588_p1 = scmp.ne.s32.totalorder %s5056_s3, %s4587_s7  ;;  %p4593_p3 = scmp.lt.s32.totalorder %s4587_s7, %s4587_s7 }
  0x75   :  { %p4594_p4 = por %p4593_p3, %p4592_p2 }
  0x77   :  { %p4595_p5 = pnand %p4594_p4, %p4588_p1 }
  0x79   :  { %4598 = shalt.err (!%p4595_p5)
}
  0x7a   :  { %191 = dma.hbm_to_vmem [thread:$0]  %s6210_s16, 32, %s5056_s3, [#allocation21], %s6241_s4, %s6241_s4, %s6240_s25  }
  0x7b   :  { %s4847_s26 = smov [#allocation23]   ;;  %s4848_s28 = smov [#allocation2]  }
  0x7c   :  { %s214_s24 = sshll.u32 %s4847_s26, 4  ;;  %s49_s29 = sshll.u32 %s4848_s28, 4  ;;  %s215_s24 = int_to_ptr.vmem [resolvable:$true] %s214_s24  ;;  %s5093_s29 = int_to_ptr.vmem [resolvable:$true] %s49_s29 }
  0x7d   :  { %s4599_s10 = scalar_lea.hbm %s6214_s20, 16 }
  0x7e   :  { %p4600_p6 = scmp.ne.s32.totalorder %s6214_s20, %s4599_s10  ;;  %p4603_p7 = scmp.lt.u32.totalorder %s4599_s10, %s6214_s20 }
  0x80   :  { %p4605_p8 = pnand %p4603_p7, %p4600_p6 }
  0x82   :  { %4608 = shalt.err (!%p4605_p8)
}
  0x83   :  { %s4609_s16 = scalar_lea.vmem %s215_s24, 16  ;;  %s4613_s3 = scalar_lea.vmem %s215_s24, 32 }
  0x84   :  { %p4610_p9 = scmp.ne.s32.totalorder %s215_s24, %s4609_s16  ;;  %p4614_p10 = scmp.lt.s32.totalorder %s215_s24, %s215_s24 }
  0x85   :  { %p4615_p11 = scmp.lt.s32.totalorder %s4613_s3, %s4609_s16 }
  0x87   :  { %p4616_p12 = por %p4615_p11, %p4614_p10 }
  0x89   :  { %p4617_p13 = pnand %p4616_p12, %p4610_p9 }
  0x8b   :  { %4620 = shalt.err (!%p4617_p13)
}
  0x8c   :  { %217 = dma.hbm_to_vmem [thread:$0]  %s6214_s20, 16, %s215_s24, [#allocation24]  }
  0x8d   :  { %s6242_s14 = sld [smem:[#allocation39_spill]] }
  0x93   :  { %s4621_s30 = scalar_lea.hbm %s6242_s14, 32 }
  0x94   :  { %p4622_p0 = scmp.ne.s32.totalorder %s6242_s14, %s4621_s30  ;;  %p4625_p1 = scmp.lt.u32.totalorder %s4621_s30, %s6242_s14 }
  0x96   :  { %p4627_p2 = pnand %p4625_p1, %p4622_p0 }
  0x98   :  { %4630 = shalt.err (!%p4627_p2)
}
  0x99   :  { %s4631_s10 = scalar_lea.vmem %s5093_s29, 32  ;;  %p4636_p4 = scmp.lt.s32.totalorder %s5093_s29, %s5093_s29 }
  0x9a   :  { %p4632_p3 = scmp.ne.s32.totalorder %s5093_s29, %s4631_s10  ;;  %p4637_p5 = scmp.lt.s32.totalorder %s4631_s10, %s4631_s10 }
  0x9c   :  { %p4638_p6 = por %p4637_p5, %p4636_p4 }
  0x9e   :  { %p4639_p7 = pnand %p4638_p6, %p4632_p3 }
  0xa0   :  { %4642 = shalt.err (!%p4639_p7)
}
  0xa1   :  { %55 = dma.hbm_to_vmem [thread:$0]  %s6242_s14, 32, %s5093_s29, [#allocation3], %s6241_s4, %s6241_s4, %s6240_s25  }
  0xa2   :  { %s4849_s1 = smov [#allocation7]   ;;  %s4850_s5 = smov [#allocation10]  }
  0xa3   :  { %s77_s8 = sshll.u32 %s4849_s1, 4  ;;  %s101_s2 = sshll.u32 %s4850_s5, 4  ;;  %s78_s8 = int_to_ptr.vmem [resolvable:$true] %s77_s8  ;;  %s5127_s2 = int_to_ptr.vmem [resolvable:$true] %s101_s2 }
  0xa4   :  { %s6243_s23 = sld [smem:[#allocation43_spill]] }
  0xaa   :  { %s4643_s0 = scalar_lea.hbm %s6243_s23, 32 }
  0xab   :  { %p4644_p8 = scmp.ne.s32.totalorder %s6243_s23, %s4643_s0  ;;  %p4647_p9 = scmp.lt.u32.totalorder %s4643_s0, %s6243_s23 }
  0xad   :  { %p4649_p10 = pnand %p4647_p9, %p4644_p8 }
  0xaf   :  { %4652 = shalt.err (!%p4649_p10)
}
  0xb0   :  { %s4653_s29 = scalar_lea.vmem %s78_s8, 32  ;;  %p4658_p12 = scmp.lt.s32.totalorder %s78_s8, %s78_s8 }
  0xb1   :  { %p4654_p11 = scmp.ne.s32.totalorder %s78_s8, %s4653_s29  ;;  %p4659_p13 = scmp.lt.s32.totalorder %s4653_s29, %s4653_s29 }
  0xb3   :  { %p4660_p0 = por %p4659_p13, %p4658_p12 }
  0xb5   :  { %p4661_p1 = pnand %p4660_p0, %p4654_p11 }
  0xb7   :  { %4664 = shalt.err (!%p4661_p1)
}
  0xb8   :  { %83 = dma.hbm_to_vmem [thread:$0]  %s6243_s23, 32, %s78_s8, [#allocation6], %s6241_s4, %s6241_s4, %s6240_s25  }
  0xb9   :  { %s4665_s10 = scalar_lea.hbm %s6203_s9, 32 }
  0xba   :  { %p4666_p2 = scmp.ne.s32.totalorder %s6203_s9, %s4665_s10  ;;  %p4669_p3 = scmp.lt.u32.totalorder %s4665_s10, %s6203_s9 }
  0xbc   :  { %p4671_p4 = pnand %p4669_p3, %p4666_p2 }
  0xbe   :  { %4674 = shalt.err (!%p4671_p4)
}
  0xbf   :  { %s4675_s16 = scalar_lea.vmem %s5127_s2, 32  ;;  %p4680_p6 = scmp.lt.s32.totalorder %s5127_s2, %s5127_s2 }
  0xc0   :  { %p4676_p5 = scmp.ne.s32.totalorder %s5127_s2, %s4675_s16  ;;  %p4681_p7 = scmp.lt.s32.totalorder %s4675_s16, %s4675_s16 }
  0xc2   :  { %p4682_p8 = por %p4681_p7, %p4680_p6 }
  0xc4   :  { %p4683_p9 = pnand %p4682_p8, %p4676_p5 }
  0xc6   :  { %4686 = shalt.err (!%p4683_p9)
}
  0xc7   :  { %107 = dma.hbm_to_vmem [thread:$0]  %s6203_s9, 32, %s5127_s2, [#allocation9], %s6241_s4, %s6241_s4, %s6240_s25  }
  0xc8   :  { %s4851_s23 = smov [#allocation13]   ;;  %s4852_s27 = smov [#allocation16]  }
  0xc9   :  { %s125_s0 = sshll.u32 %s4851_s23, 4  ;;  %s149_s7 = sshll.u32 %s4852_s27, 4  ;;  %s126_s0 = int_to_ptr.vmem [resolvable:$true] %s125_s0  ;;  %s5164_s7 = int_to_ptr.vmem [resolvable:$true] %s149_s7 }
  0xca   :  { %s4687_s29 = scalar_lea.hbm %s6205_s11, 32 }
  0xcb   :  { %p4688_p10 = scmp.ne.s32.totalorder %s6205_s11, %s4687_s29  ;;  %p4691_p11 = scmp.lt.u32.totalorder %s4687_s29, %s6205_s11 }
  0xcd   :  { %p4693_p12 = pnand %p4691_p11, %p4688_p10 }
  0xcf   :  { %4696 = shalt.err (!%p4693_p12)
}
  0xd0   :  { %s4697_s9 = scalar_lea.vmem %s126_s0, 32  ;;  %p4702_p0 = scmp.lt.s32.totalorder %s126_s0, %s126_s0 }
  0xd1   :  { %p4698_p13 = scmp.ne.s32.totalorder %s126_s0, %s4697_s9  ;;  %p4703_p1 = scmp.lt.s32.totalorder %s4697_s9, %s4697_s9 }
  0xd3   :  { %p4704_p2 = por %p4703_p1, %p4702_p0 }
  0xd5   :  { %p4705_p3 = pnand %p4704_p2, %p4698_p13 }
  0xd7   :  { %4708 = shalt.err (!%p4705_p3)
}
  0xd8   :  { %131 = dma.hbm_to_vmem [thread:$0]  %s6205_s11, 32, %s126_s0, [#allocation12], %s6241_s4, %s6241_s4, %s6240_s25  }
  0xd9   :  { %s4709_s1 = scalar_lea.hbm %s6207_s13, 32 }
  0xda   :  { %p4710_p4 = scmp.ne.s32.totalorder %s6207_s13, %s4709_s1  ;;  %p4713_p5 = scmp.lt.u32.totalorder %s4709_s1, %s6207_s13 }
  0xdc   :  { %p4715_p6 = pnand %p4713_p5, %p4710_p4 }
  0xde   :  { %4718 = shalt.err (!%p4715_p6)
}
  0xdf   :  { %s4719_s23 = scalar_lea.vmem %s5164_s7, 32  ;;  %p4724_p8 = scmp.lt.s32.totalorder %s5164_s7, %s5164_s7 }
  0xe0   :  { %p4720_p7 = scmp.ne.s32.totalorder %s5164_s7, %s4719_s23  ;;  %p4725_p9 = scmp.lt.s32.totalorder %s4719_s23, %s4719_s23 }
  0xe2   :  { %p4726_p10 = por %p4725_p9, %p4724_p8 }
  0xe4   :  { %p4727_p11 = pnand %p4726_p10, %p4720_p7 }
  0xe6   :  { %4730 = shalt.err (!%p4727_p11)
}
  0xe7   :  { %155 = dma.hbm_to_vmem [thread:$0]  %s6207_s13, 32, %s5164_s7, [#allocation15], %s6241_s4, %s6241_s4, %s6240_s25  }
  0xe8   :  { %s4853_s27 = smov [#allocation19]   ;;  %s4854_s26 = smov [#allocation22]  }
  0xe9   :  { %s173_s30 = sshll.u32 %s4853_s27, 4  ;;  %s197_s29 = sshll.u32 %s4854_s26, 4  ;;  %s174_s30 = int_to_ptr.vmem [resolvable:$true] %s173_s30  ;;  %s5201_s29 = int_to_ptr.vmem [resolvable:$true] %s197_s29 }
  0xea   :  { %s4731_s12 = scalar_lea.hbm %s6209_s15, 32 }
  0xeb   :  { %p4732_p12 = scmp.ne.s32.totalorder %s6209_s15, %s4731_s12  ;;  %p4735_p13 = scmp.lt.u32.totalorder %s4731_s12, %s6209_s15 }
  0xed   :  { %p4737_p0 = pnand %p4735_p13, %p4732_p12 }
  0xef   :  { %4740 = shalt.err (!%p4737_p0)
}
  0xf0   :  { %s4741_s13 = scalar_lea.vmem %s174_s30, 32  ;;  %p4746_p2 = scmp.lt.s32.totalorder %s174_s30, %s174_s30 }
  0xf1   :  { %p4742_p1 = scmp.ne.s32.totalorder %s174_s30, %s4741_s13  ;;  %p4747_p3 = scmp.lt.s32.totalorder %s4741_s13, %s4741_s13 }
  0xf3   :  { %p4748_p4 = por %p4747_p3, %p4746_p2 }
  0xf5   :  { %p4749_p5 = pnand %p4748_p4, %p4742_p1 }
  0xf7   :  { %4752 = shalt.err (!%p4749_p5)
}
  0xf8   :  { %179 = dma.hbm_to_vmem [thread:$0]  %s6209_s15, 32, %s174_s30, [#allocation18], %s6241_s4, %s6241_s4, %s6240_s25  }
  0xf9   :  { %s4753_s5 = scalar_lea.hbm %s6211_s17, 32 }
  0xfa   :  { %p4754_p6 = scmp.ne.s32.totalorder %s6211_s17, %s4753_s5  ;;  %p4757_p7 = scmp.lt.u32.totalorder %s4753_s5, %s6211_s17 }
  0xfc   :  { %p4759_p8 = pnand %p4757_p7, %p4754_p6 }
  0xfe   :  { %4762 = shalt.err (!%p4759_p8)
}
  0xff   :  { %s4763_s11 = scalar_lea.vmem %s5201_s29, 32  ;;  %p4768_p10 = scmp.lt.s32.totalorder %s5201_s29, %s5201_s29 }
 0x100   :  { %p4764_p9 = scmp.ne.s32.totalorder %s5201_s29, %s4763_s11  ;;  %p4769_p11 = scmp.lt.s32.totalorder %s4763_s11, %s4763_s11 }
 0x102   :  { %p4770_p12 = por %p4769_p11, %p4768_p10 }
 0x104   :  { %p4771_p13 = pnand %p4770_p12, %p4764_p9 }
 0x106   :  { %4774 = shalt.err (!%p4771_p13)
}
 0x107   :  { %203 = dma.hbm_to_vmem [thread:$0]  %s6211_s17, 32, %s5201_s29, [#allocation21], %s6241_s4, %s6241_s4, %s6240_s25  }
 0x108   :  { %s4855_s27 = smov [#allocation25]   ;;  %s4775_s28 = scalar_lea.hbm %s6215_s21, 16 }
 0x109   :  { %s224_s30 = sshll.u32 %s4855_s27, 4  ;;  %p4776_p0 = scmp.ne.s32.totalorder %s6215_s21, %s4775_s28  ;;  %s225_s30 = int_to_ptr.vmem [resolvable:$true] %s224_s30 }
 0x10a   :  { %p4779_p1 = scmp.lt.u32.totalorder %s4775_s28, %s6215_s21 }
 0x10c   :  { %p4781_p2 = pnand %p4779_p1, %p4776_p0 }
 0x10e   :  { %4784 = shalt.err (!%p4781_p2)
}
 0x10f   :  { %s4785_s10 = scalar_lea.vmem %s225_s30, 16  ;;  %s4789_s17 = scalar_lea.vmem %s225_s30, 32 }
 0x110   :  { %p4786_p3 = scmp.ne.s32.totalorder %s225_s30, %s4785_s10  ;;  %p4790_p4 = scmp.lt.s32.totalorder %s225_s30, %s225_s30 }
 0x111   :  { %p4791_p5 = scmp.lt.s32.totalorder %s4789_s17, %s4785_s10 }
 0x113   :  { %p4792_p6 = por %p4791_p5, %p4790_p4 }
 0x115   :  { %p4793_p7 = pnand %p4792_p6, %p4786_p3 }
 0x117   :  { %4796 = shalt.err (!%p4793_p7)
}
 0x118   :  { %227 = dma.hbm_to_vmem [thread:$0]  %s6215_s21, 16, %s225_s30, [#allocation24]  }
 0x119   :  { %4819 = dma.done.wait [#allocation3], 32  }
 0x11a   :  { %4820 = vsyncadd [#allocation3], 4294967264 }
 0x11b   :  { %4821 = dma.done.wait [#allocation6], 64  }
 0x11c   :  { %4822 = vsyncadd [#allocation6], 4294967232 }
 0x11d   :  { %4823 = dma.done.wait [#allocation9], 1312  }
 0x11e   :  { %4824 = vsyncadd [#allocation9], 4294965984 }
 0x11f   :  { %4825 = dma.done.wait [#allocation12], 64  }
 0x120   :  { %4826 = vsyncadd [#allocation12], 4294967232 }
 0x121   :  { %4827 = dma.done.wait [#allocation15], 1312  }
 0x122   :  { %4828 = vsyncadd [#allocation15], 4294965984 }
 0x123   :  { %4829 = dma.done.wait [#allocation18], 1312  }
 0x124   :  { %4830 = vsyncadd [#allocation18], 4294965984 }
 0x125   :  { %4831 = dma.done.wait [#allocation21], 64  }
 0x126   :  { %4832 = vsyncadd [#allocation21], 4294967232 }
 0x127   :  { %4833 = dma.done.wait [#allocation24], 32  }
 0x128   :  { %4834 = vsyncadd [#allocation24], 4294967264  ;;  %v4856_v0 = vmov 0   ;;  %s6244_s13 = sld [smem:[#allocation36_spill]]  ;;  %s6245_s24 = sld [smem:[#allocation37_spill]]  ;;  %vm303_vm0 = vcmask 1041408   ;;  %v275_v22 = vlaneseq }
 0x129   :  { %4288 = vset.pattern.permute.xlu0 %v4856_v0  ;;  %s6246_s12 = sld [smem:[#allocation38_spill]]  ;;  %s6247_s7 = sld [smem:[#allocation42_spill]]  ;;  %vm296_vm1 = vcmask 408576   ;;  %v4857_v25 = vmov 0.0   ;;  %vm454_vm4 = vcmask 326656  }
 0x12a   :  { %v5296_v23 = vand.u32 127, %v275_v22  ;;  %s6248_s0 = sld [smem:[#allocation40_spill]]  ;;  %v3463_v44 = vld [vmem:[#allocation7] ss:$0 sm:$0xff]  ;;  %v3457_v45 = vld [vmem:[#allocation2] ss:$0 sm:$0xff]  ;;  %vm5366_vm9 = vmpackc.low %vm454_vm4, %vm454_vm4 }
 0x12b   :  { %v3460_v57 = vld [vmem:[#allocation5] ss:$0 sm:$0xff] }
 0x12c   :  { %vm392_vm5 = vcmp.ge.s32.totalorder %v5296_v23, 8  ;;  %vm398_vm6 = vcmp.lt.s32.totalorder %v5296_v23, 16  ;;  %vm383_vm8 = vcmp.lt.s32.totalorder %v5296_v23, 4  ;;  %vm387_vm10 = vcmp.ge.s32.totalorder %v5296_v23, 4 }
 0x12d   :  { %vm5351_vm7 = vmand %vm392_vm5, %vm398_vm6  ;;  %v5357_v53 = vsel %vm383_vm8, 1.0, %v4857_v25  ;;  %vm388_vm11 = vcmp.lt.s32.totalorder %v5296_v23, 8  ;;  %vm393_vm13 = vcmp.lt.s32.totalorder %v5296_v23, 12  ;;  %vm397_vm15 = vcmp.ge.s32.totalorder %v5296_v23, 12 }
 0x12e   :  { %v273_v1 = vld [vmem:[%s6244_s13] sm:$0xff]  ;;  %v290_v3 = vld [vmem:[%s6245_s24 + $0x8] sm:$0xff]  ;;  %v291_v4 = vld [vmem:[%s6245_s24 + $0x10] sm:$0xff] }
 0x12f   :  { %v289_v2 = vld [vmem:[%s6245_s24] sm:$0xff]  ;;  %278 = vperm.xlu0 %4288, %v273_v1   ;;  %v292_v5 = vld [vmem:[%s6245_s24 + $0x18] sm:$0xff]  ;;  %v274_v6 = vld [vmem:[%s6244_s13 + $0x8] sm:$0xff] }
 0x130   :  { %v4124_v7 = vpack.c.bf16 %v290_v3, %v289_v2  ;;  %v4128_v8 = vpack.c.bf16 %v292_v5, %v291_v4  ;;  %v293_v9 = vld [vmem:[%s6245_s24 + $0x20] sm:$0xff]  ;;  %v294_v10 = vld [vmem:[%s6245_s24 + $0x28] sm:$0xff]  ;;  %v444_v15 = vld [vmem:[%s6246_s12 + $0x10] sm:$0xff] }
 0x131   :  { %v4132_v11 = vpack.c.bf16 %v294_v10, %v293_v9  ;;  %v442_v12 = vld [vmem:[%s6246_s12] sm:$0xff]  ;;  %v443_v13 = vld [vmem:[%s6246_s12 + $0x8] sm:$0xff]  ;;  %v445_v16 = vld [vmem:[%s6246_s12 + $0x18] sm:$0xff] }
 0x132   :  { %4125 = vmatprep.subr.bf16.mxu0 %v4124_v7  ;;  %v4136_v14 = vpack.c.bf16 %v443_v13, %v442_v12  ;;  %v4140_v17 = vpack.c.bf16 %v445_v16, %v444_v15  ;;  %v295_v18 = vld [vmem:[%s6245_s24 + $0x30] sm:$0x3]  ;;  %v623_v19 = vld [vmem:[%s6247_s7] sm:$0xff]  ;;  %v624_v20 = vld [vmem:[%s6247_s7 + $0x8] sm:$0xff] }
 0x133   :  { %281 = vperm.xlu0 %4288, %v274_v6   ;;  %4127 = vmatpush3.bf16.msra.mxu0 %v4124_v7  ;;  %v4152_v21 = vpack.c.bf16 %v624_v20, %v623_v19  ;;  %v625_v27 = vld [vmem:[%s6247_s7 + $0x10] sm:$0xff]  ;;  %v626_v28 = vld [vmem:[%s6247_s7 + $0x18] sm:$0xff]  ;;  %v446_v32 = vld [vmem:[%s6246_s12 + $0x20] sm:$0xff] }
 0x134   :  { %4129 = vmatprep.subr.bf16.mxu0 %v4128_v8  ;;  %4137 = vmatprep.subr.bf16.mxu1 %v4136_v14  ;;  %v4156_v30 = vpack.c.bf16 %v626_v28, %v625_v27  ;;  %v536_v33 = vld [vmem:[%s6248_s0] sm:$0xff]  ;;  %v537_v34 = vld [vmem:[%s6248_s0 + $0x8] sm:$0xff]  ;;  %v538_v37 = vld [vmem:[%s6248_s0 + $0x10] sm:$0xff] }
 0x135   :  { %4139 = vmatpush3.bf16.msra.mxu1 %v4136_v14  ;;  %v627_v35 = vld [vmem:[%s6247_s7 + $0x20] sm:$0xff]  ;;  %v4144_v36 = vpack.c.bf16 %v537_v34, %v536_v33  ;;  %v539_v38 = vld [vmem:[%s6248_s0 + $0x18] sm:$0xff]  ;;  %vm389_vm12 = vmand %vm387_vm10, %vm388_vm11  ;;  %vm412_vm10 = vcmp.ge.s32.totalorder %v5296_v23, 24  ;;  %v4858_v33 = vmov -1e+30  }
 0x136   :  { %4141 = vmatprep.subr.bf16.mxu1 %v4140_v17  ;;  %v4148_v41 = vpack.c.bf16 %v539_v38, %v538_v37  ;;  %v540_v42 = vld [vmem:[%s6248_s0 + $0x20] sm:$0xff]  ;;  %v5382_v2 = vsel %vm389_vm12, 1.0, %v4857_v25  ;;  %vm394_vm14 = vmand %vm392_vm5, %vm393_vm13  ;;  %vm407_vm5 = vcmp.ge.s32.totalorder %v5296_v23, 20  ;;  %vm413_vm12 = vcmp.lt.s32.totalorder %v5296_v23, 28 }
 0x137   :  { %4131 = vmatpush3.bf16.msra.mxu0 %v4128_v8  ;;  %v5393_v5 = vsel %vm394_vm14, 1.0, %v4857_v25  ;;  %vm414_vm13 = vmand %vm412_vm10, %vm413_vm12  ;;  %vm417_vm14 = vcmp.ge.s32.totalorder %v5296_v23, 28  ;;  %v5484_v34 = vsel %vm5351_vm7, 0.0, %v4858_v33  ;;  %vm963_vm10 = vcmask 130048  }
 0x138   :  { %4133 = vmatprep.subr.bf16.mxu0 %v4132_v11  ;;  %vm4860_vm7 = vmmov 0  }
 0x139   :  { %4143 = vmatpush3.bf16.msra.mxu1 %v4140_v17  ;;  %v5439_v17 = vsel %vm414_vm13, 1.0, %v4857_v25 }
 0x13a   :  { %3820 = vmatprep.subr.mxu1 %v446_v32 }
 0x13b   :  { %4135 = vmatpush3.bf16.msra.mxu0 %v4132_v11 }
 0x13c   :  { %3807 = vmatprep.subr.msk.mxu0 %vm303_vm0, %v295_v18 }
 0x13d   :  { %3821 = vmatpush3.msra.mxu1 %v446_v32 }
 0x13e   :  { %4145 = vmatprep.subr.bf16.mxu1 %v4144_v36 }
 0x13f   :  { %3808 = vmatpush3.msk.msra.mxu0 %vm303_vm0, %v295_v18  ;;  %vm399_vm0 = vmand %vm397_vm15, %vm398_vm6  ;;  %vm408_vm6 = vcmp.lt.s32.totalorder %v5296_v23, 24  ;;  %vm418_vm15 = vcmp.lt.s32.totalorder %v5296_v23, 32 }
 0x140   :  { %4153 = vmatprep.subr.bf16.mxu0 %v4152_v21  ;;  %v5406_v8 = vsel %vm399_vm0, 1.0, %v4857_v25  ;;  %vm409_vm8 = vmand %vm407_vm5, %vm408_vm6  ;;  %vm427_vm5 = vcmp.ge.s32.totalorder %v5296_v23, 36  ;;  %vm428_vm6 = vcmp.lt.s32.totalorder %v5296_v23, 40 }
 0x141   :  { %v5428_v14 = vsel %vm409_vm8, 1.0, %v4857_v25  ;;  %vm419_vm0 = vmand %vm417_vm14, %vm418_vm15 }
 0x142   :  { %v5450_v20 = vsel %vm419_vm0, 1.0, %v4857_v25  ;;  %vm429_vm8 = vmand %vm427_vm5, %vm428_vm6 }
 0x1ae   :  { %v279_v24 = vpop.permute.xlu0 %278 }
 0x1af   :  { %vm283_vm2 = vcmp.eq.s32.totalorder %v5296_v23, %v279_v24 }
 0x1b0   :  { %v3441_v26 = vsel %vm283_vm2, 1.0, %v4857_v25  ;;  %vm403_vm2 = vcmp.lt.s32.totalorder %v5296_v23, 20 }
 0x1b1   :  { %3809 = vmatprep.mubr.msk.f32.mxu0 %vm296_vm1, %v3441_v26 }
 0x1b2   :  { %v282_v29 = vpop.permute.xlu0 %281 }
 0x1b3   :  { %vm284_vm3 = vcmp.eq.s32.totalorder %v5296_v23, %v282_v29  ;;  %v5470_v29 = vsel %vm429_vm8, 1.0, %v4857_v25 }
 0x1b4   :  { %v3442_v31 = vsel %vm284_vm3, 1.0, %v4857_v25 }
 0x1b5   :  { %3810 = vmatmul.mubr.msk.f32.vlgmr.msra.gmra.mrb[0].mxu0 %vm296_vm1, %v3442_v31  ;;  %vm402_vm1 = vcmp.ge.s32.totalorder %v5296_v23, 16 }
 0x1b6   :  { %4155 = vmatpush3.bf16.msra.mxu0 %v4152_v21  ;;  %vm404_vm3 = vmand %vm402_vm1, %vm403_vm2  ;;  %vm422_vm1 = vcmp.ge.s32.totalorder %v5296_v23, 32  ;;  %vm423_vm2 = vcmp.lt.s32.totalorder %v5296_v23, 36 }
 0x1b7   :  { %4157 = vmatprep.subr.bf16.mxu0 %v4156_v30  ;;  %v5417_v11 = vsel %vm404_vm3, 1.0, %v4857_v25  ;;  %vm424_vm3 = vmand %vm422_vm1, %vm423_vm2 }
 0x1b8   :  { %v5461_v26 = vsel %vm424_vm3, 1.0, %v4857_v25 }
 0x1ba   :  { %4159 = vmatpush3.bf16.msra.mxu0 %v4156_v30 }
 0x1bb   :  { %3846 = vmatprep.subr.mxu0 %v627_v35 }
 0x1be   :  { %3847 = vmatpush3.msra.mxu0 %v627_v35  ;;  %v5488_v35 = vsel %vm388_vm11, 0.0, %v4858_v33  ;;  %vm3373_vm11 = vcmask 58368  }
 0x288   :  { %v5326_v39 = vpop.f32.mrb[0].mxu0 }
 0x289   :  { %v5328_v40 = vpop.f32.mrb[1].mxu0 }
 0x28a   :  { %3822 = vmatprep.mubr.msk.f32.mxu1 %vm454_vm4, %v5328_v40  ;;  %3848 = vmatprep.mubr.msk.f32.mxu0 %vm454_vm4, %v5328_v40 }
 0x28b   :  { %3823 = vmatmul.mubr.msk.f32.vlgmr.msra.gmra.mrb[0].mxu1 %vm454_vm4, %v5326_v39  ;;  %3849 = vmatmul.mubr.msk.f32.vlgmr.msra.gmra.mrb[2].mxu0 %vm454_vm4, %v5326_v39 }
 0x28c   :  { %4147 = vmatpush3.bf16.msra.mxu1 %v4144_v36  ;;  %3835 = vmatprep.mubr.msk.f32.mxu1 %vm454_vm4, %v5328_v40 }
 0x28d   :  { %4149 = vmatprep.subr.bf16.mxu1 %v4148_v41 }
 0x290   :  { %4151 = vmatpush3.bf16.msra.mxu1 %v4148_v41 }
 0x291   :  { %3833 = vmatprep.subr.mxu1 %v540_v42 }
 0x294   :  { %3834 = vmatpush3.msra.mxu1 %v540_v42 }
 0x295   :  { %3836 = vmatmul.mubr.msk.f32.vlgmr.msra.gmra.mrb[2].mxu1 %vm454_vm4, %v5326_v39 }
 0x35e   :  { %v3824_v46 = vpop.f32.mrb[0].mxu1  ;;  %v3850_v47 = vpop.f32.mrb[2].mxu0 }
 0x35f   :  { %v707_v48 = vadd.f32 %v3850_v47, %v3463_v44  ;;  %v527_v49 = vpop.f32.mrb[1].mxu1  ;;  %v701_v50 = vpop.f32.mrb[3].mxu0  ;;  %v533_v63 = vadd.f32 %v3824_v46, %v3457_v45 }
 0x360   :  { %v528_v51 = vadd.f32 %v3457_v45, %v527_v49  ;;  %v702_v52 = vadd.f32 %v3463_v44, %v701_v50 }
 0x361   :  { %v5378_v1 = vmul.f32 0.5, %v533_v63 }
 0x362   :  { %v5359_v54 = vmul.f32 0.5, %v528_v51  ;;  %v4166_v55 = vpack.c.bf16 %v707_v48, %v702_v52 }
 0x363   :  { %v713_v3 = vmul.f32 %v5357_v53, %v5378_v1  ;;  %v715_v6 = vmul.f32 %v5382_v2, %v5378_v1  ;;  %v717_v9 = vmul.f32 %v5393_v5, %v5378_v1  ;;  %v719_v12 = vmul.f32 %v5406_v8, %v5378_v1 }
 0x364   :  { %4167 = vmatprep.subr.bf16.mxu0 %v4166_v55  ;;  %v712_v56 = vmul.f32 %v5357_v53, %v5359_v54  ;;  %v714_v4 = vmul.f32 %v5382_v2, %v5359_v54  ;;  %v716_v7 = vmul.f32 %v5393_v5, %v5359_v54  ;;  %v718_v10 = vmul.f32 %v5406_v8, %v5359_v54 }
 0x365   :  { %4169 = vmatpush3.bf16.msra.mxu0 %v4166_v55  ;;  %v720_v13 = vmul.f32 %v5417_v11, %v5359_v54  ;;  %v721_v15 = vmul.f32 %v5417_v11, %v5378_v1  ;;  %v722_v16 = vmul.f32 %v5428_v14, %v5359_v54  ;;  %v723_v18 = vmul.f32 %v5428_v14, %v5378_v1 }
 0x366   :  { %3855 = vmatprep.mubr.msk.f32.mxu1 %vm454_vm4, %v712_v56  ;;  %v724_v19 = vmul.f32 %v5439_v17, %v5359_v54  ;;  %v725_v21 = vmul.f32 %v5439_v17, %v5378_v1  ;;  %v726_v24 = vmul.f32 %v5450_v20, %v5359_v54  ;;  %v727_v27 = vmul.f32 %v5450_v20, %v5378_v1 }
 0x367   :  { %v728_v28 = vmul.f32 %v5461_v26, %v5359_v54  ;;  %v729_v30 = vmul.f32 %v5461_v26, %v5378_v1  ;;  %v730_v31 = vmul.f32 %v5470_v29, %v5359_v54  ;;  %v731_v32 = vmul.f32 %v5470_v29, %v5378_v1 }
 0x368   :  { %v3837_v58 = vpop.f32.mrb[2].mxu1 }
 0x369   :  { %v620_v59 = vadd.f32 %v3837_v58, %v3460_v57  ;;  %v614_v60 = vpop.f32.mrb[3].mxu1 }
 0x36a   :  { %v615_v61 = vadd.f32 %v3460_v57, %v614_v60 }
 0x36c   :  { %v4160_v0 = vpack.c.bf16 %v620_v59, %v615_v61 }
 0x36e   :  { %4162 = vmatprep.subr.msk.bf16.mxu1 %vm5366_vm9, %v4160_v0 }
 0x36f   :  { %4165 = vmatpush3.bf16.xpose.msk.msra.mxu1 %vm5366_vm9, %v4160_v0 }
 0x376   :  { %3856 = vmatmul.mubr.msk.f32.vlgmr.msra.gmra.mrb[4].mxu1 %vm454_vm4, %v713_v3 }
 0x377   :  { %3858 = vmatprep.mubr.msk.f32.mxu1 %vm454_vm4, %v714_v4 }
 0x37a   :  { %3859 = vmatmul.mubr.msk.f32.gmra.mrb[6].mxu1 %vm454_vm4, %v715_v6 }
 0x37b   :  { %3861 = vmatprep.mubr.msk.f32.mxu1 %vm454_vm4, %v716_v7 }
 0x37e   :  { %3862 = vmatmul.mubr.msk.f32.gmra.mrb[8].mxu1 %vm454_vm4, %v717_v9 }
 0x37f   :  { %3864 = vmatprep.mubr.msk.f32.mxu1 %vm454_vm4, %v718_v10 }
 0x382   :  { %3865 = vmatmul.mubr.msk.f32.gmra.mrb[10].mxu1 %vm454_vm4, %v719_v12 }
 0x383   :  { %3867 = vmatprep.mubr.msk.f32.mxu1 %vm454_vm4, %v720_v13 }
 0x386   :  { %3868 = vmatmul.mubr.msk.f32.gmra.mrb[12].mxu1 %vm454_vm4, %v721_v15 }
 0x387   :  { %3870 = vmatprep.mubr.msk.f32.mxu1 %vm454_vm4, %v722_v16 }
 0x38a   :  { %3871 = vmatmul.mubr.msk.f32.gmra.mrb[14].mxu1 %vm454_vm4, %v723_v18 }
 0x38b   :  { %3873 = vmatprep.mubr.msk.f32.mxu1 %vm454_vm4, %v724_v19 }
 0x38e   :  { %3874 = vmatmul.mubr.msk.f32.gmra.mrb[16].mxu1 %vm454_vm4, %v725_v21 }
 0x38f   :  { %3876 = vmatprep.mubr.msk.f32.mxu1 %vm454_vm4, %v726_v24 }
 0x392   :  { %3877 = vmatmul.mubr.msk.f32.gmra.mrb[18].mxu1 %vm454_vm4, %v727_v27 }
 0x393   :  { %3879 = vmatprep.mubr.msk.f32.mxu1 %vm454_vm4, %v728_v28 }
 0x396   :  { %3880 = vmatmul.mubr.msk.f32.gmra.mrb[20].mxu1 %vm454_vm4, %v729_v30 }
 0x397   :  { %3882 = vmatprep.mubr.msk.f32.mxu1 %vm454_vm4, %v730_v31 }
 0x39a   :  { %3883 = vmatmul.mubr.msk.f32.gmra.mrb[22].mxu1 %vm454_vm4, %v731_v32 }
 0x449   :  { %v3857_v36 = vpop.f32.mrb[4].mxu1 }
 0x44a   :  { %v5491_v37 = vadd.f32 %v3857_v36, %v5484_v34  ;;  %v864_v38 = vpop.f32.mrb[5].mxu1 }
 0x44b   :  { %v5494_v41 = vadd.f32 %v864_v38, %v5488_v35 }
 0x44c   :  { %v967_v42 = vsel %vm963_vm10, %v5491_v37, -inf }
 0x44d   :  { %968 = vmax.xlane.f32.xlu1 %v967_v42  ;;  %v3860_v43 = vpop.f32.mrb[6].mxu1  ;;  %v964_v47 = vsel %vm963_vm10, %v5494_v41, -inf }
 0x44e   :  { %v874_v44 = vpop.f32.mrb[7].mxu1  ;;  %v5502_v46 = vadd.f32 %v3860_v43, %v5484_v34 }
 0x44f   :  { %v5499_v45 = vadd.f32 %v874_v44, %v5488_v35 }
 0x450   :  { %v973_v52 = vsel %vm963_vm10, %v5502_v46, -inf }
 0x451   :  { %v3863_v48 = vpop.f32.mrb[8].mxu1  ;;  %965 = vmax.xlane.f32.xlu1 %v964_v47  ;;  %v970_v49 = vsel %vm963_vm10, %v5499_v45, -inf }
 0x452   :  { %v884_v50 = vpop.f32.mrb[9].mxu1  ;;  %971 = vmax.xlane.f32.xlu0 %v970_v49  ;;  %v5509_v51 = vadd.f32 %v3863_v48, %v5484_v34 }
 0x453   :  { %v5514_v56 = vadd.f32 %v884_v50, %v5488_v35 }
 0x454   :  { %v979_v57 = vsel %vm963_vm10, %v5509_v51, -inf }
 0x455   :  { %v3866_v54 = vpop.f32.mrb[10].mxu1  ;;  %974 = vmax.xlane.f32.xlu1 %v973_v52  ;;  %v976_v61 = vsel %vm963_vm10, %v5514_v56, -inf }
 0x456   :  { %v894_v55 = vpop.f32.mrb[11].mxu1  ;;  %v5519_v60 = vadd.f32 %v3866_v54, %v5484_v34 }
 0x457   :  { %v5527_v3 = vadd.f32 %v894_v55, %v5488_v35 }
 0x458   :  { %v985_v6 = vsel %vm963_vm10, %v5519_v60, -inf }
 0x459   :  { %v3869_v58 = vpop.f32.mrb[12].mxu1  ;;  %980 = vmax.xlane.f32.xlu1 %v979_v57  ;;  %v982_v15 = vsel %vm963_vm10, %v5527_v3, -inf }
 0x45a   :  { %v904_v59 = vpop.f32.mrb[13].mxu1  ;;  %v5537_v12 = vadd.f32 %v3869_v58, %v5484_v34 }
 0x45b   :  { %v5547_v21 = vadd.f32 %v904_v59, %v5488_v35 }
 0x45c   :  { %v991_v27 = vsel %vm963_vm10, %v5537_v12, -inf }
 0x45d   :  { %v3872_v63 = vpop.f32.mrb[14].mxu1  ;;  %977 = vmax.xlane.f32.xlu1 %v976_v61  ;;  %v988_v36 = vsel %vm963_vm10, %v5547_v21, -inf }
 0x45e   :  { %v5524_v0 = vadd.f32 %v3872_v63, %v5484_v34  ;;  %v914_v1 = vpop.f32.mrb[15].mxu1 }
 0x45f   :  { %v5557_v32 = vadd.f32 %v914_v1, %v5488_v35 }
 0x460   :  { %v997_v4 = vsel %vm963_vm10, %v5524_v0, -inf }
 0x461   :  { %v3875_v7 = vpop.f32.mrb[16].mxu1  ;;  %998 = vmax.xlane.f32.xlu0 %v997_v4  ;;  %986 = vmax.xlane.f32.xlu1 %v985_v6  ;;  %v994_v48 = vsel %vm963_vm10, %v5557_v32, -inf }
 0x462   :  { %v5534_v9 = vadd.f32 %v3875_v7, %v5484_v34  ;;  %v924_v10 = vpop.f32.mrb[17].mxu1 }
 0x463   :  { %v5567_v44 = vadd.f32 %v924_v10, %v5488_v35 }
 0x464   :  { %v1003_v13 = vsel %vm963_vm10, %v5534_v9, -inf }
 0x465   :  { %v3878_v16 = vpop.f32.mrb[18].mxu1  ;;  %1004 = vmax.xlane.f32.xlu0 %v1003_v13  ;;  %983 = vmax.xlane.f32.xlu1 %v982_v15  ;;  %v1000_v50 = vsel %vm963_vm10, %v5567_v44, -inf }
 0x466   :  { %v5544_v18 = vadd.f32 %v3878_v16, %v5484_v34  ;;  %v934_v19 = vpop.f32.mrb[19].mxu1 }
 0x467   :  { %v5574_v49 = vadd.f32 %v934_v19, %v5488_v35 }
 0x468   :  { %v1009_v24 = vsel %vm963_vm10, %v5544_v18, -inf }
 0x469   :  { %v3881_v28 = vpop.f32.mrb[20].mxu1  ;;  %1010 = vmax.xlane.f32.xlu0 %v1009_v24  ;;  %992 = vmax.xlane.f32.xlu1 %v991_v27  ;;  %v1006_v54 = vsel %vm963_vm10, %v5574_v49, -inf }
 0x46a   :  { %v5554_v30 = vadd.f32 %v3881_v28, %v5484_v34  ;;  %v944_v31 = vpop.f32.mrb[21].mxu1 }
 0x46b   :  { %v5579_v52 = vadd.f32 %v944_v31, %v5488_v35 }
 0x46c   :  { %v1015_v33 = vsel %vm963_vm10, %v5554_v30, -inf }
 0x46d   :  { %v3884_v38 = vpop.f32.mrb[22].mxu1  ;;  %1016 = vmax.xlane.f32.xlu0 %v1015_v33  ;;  %989 = vmax.xlane.f32.xlu1 %v988_v36  ;;  %v1012_v57 = vsel %vm963_vm10, %v5579_v52, -inf }
 0x46e   :  { %v5564_v42 = vadd.f32 %v3884_v38, %v5484_v34  ;;  %v954_v43 = vpop.f32.mrb[23].mxu1 }
 0x46f   :  { %v5584_v55 = vadd.f32 %v954_v43, %v5488_v35 }
 0x470   :  { %v1021_v47 = vsel %vm963_vm10, %v5564_v42, -inf }
 0x471   :  { %1022 = vmax.xlane.f32.xlu0 %v1021_v47  ;;  %995 = vmax.xlane.f32.xlu1 %v994_v48  ;;  %v1018_v58 = vsel %vm963_vm10, %v5584_v55, -inf }
 0x475   :  { %1001 = vmax.xlane.f32.xlu1 %v1000_v50 }
 0x479   :  { %1007 = vmax.xlane.f32.xlu1 %v1006_v54 }
 0x47d   :  { %1013 = vmax.xlane.f32.xlu1 %v1012_v57 }
 0x481   :  { %1019 = vmax.xlane.f32.xlu1 %v1018_v58 }
 0x4da   :  { %v969_v59 = vpop.xlane.xlu1 %968 }
 0x4db   :  { %v1025_v61 = vsub.f32 %v5491_v37, %v969_v59 }
 0x4dd   :  { %v1046_v63 = vmul.f32 1.442695, %v1025_v61 }
 0x4de   :  { %v966_v1 = vpop.xlane.xlu1 %965 }
 0x4df   :  { %4289 = vpow2.f32 %v1046_v63  ;;  %v1024_v4 = vsub.f32 %v5494_v41, %v966_v1  ;;  %v972_v6 = vpop.xlane.xlu0 %971 }
 0x4e0   :  { %v1026_v7 = vsub.f32 %v5499_v45, %v972_v6 }
 0x4e1   :  { %v1044_v10 = vmul.f32 1.442695, %v1024_v4 }
 0x4e2   :  { %v1048_v13 = vmul.f32 1.442695, %v1026_v7  ;;  %v975_v15 = vpop.xlane.xlu1 %974 }
 0x4e3   :  { %4291 = vpow2.f32 %v1044_v10  ;;  %v1027_v16 = vsub.f32 %v5502_v46, %v975_v15 }
 0x4e4   :  { %4293 = vpow2.f32 %v1048_v13 }
 0x4e5   :  { %v1050_v19 = vmul.f32 1.442695, %v1027_v16 }
 0x4e6   :  { %v981_v24 = vpop.xlane.xlu1 %980 }
 0x4e7   :  { %4295 = vpow2.f32 %v1050_v19  ;;  %v1029_v37 = vsub.f32 %v5509_v51, %v981_v24 }
 0x4e9   :  { %v5595_v27 = vpop.eup %4289  ;;  %v1054_v28 = vmul.f32 1.442695, %v1029_v37 }
 0x4ea   :  { %v978_v31 = vpop.xlane.xlu1 %977  ;;  %v1087_v41 = vsel %vm963_vm10, %v5595_v27, 0.0 }
 0x4eb   :  { %4297 = vpow2.f32 %v1054_v28  ;;  %v1028_v45 = vsub.f32 %v5514_v56, %v978_v31  ;;  %1088 = vadd.xlane.f32.xlu0 %v1087_v41 }
 0x4ed   :  { %v5600_v33 = vpop.eup %4291  ;;  %v1052_v46 = vmul.f32 1.442695, %v1028_v45 }
 0x4ee   :  { %v999_v36 = vpop.xlane.xlu0 %998  ;;  %v987_v38 = vpop.xlane.xlu1 %986  ;;  %v1084_v43 = vsel %vm963_vm10, %v5600_v33, 0.0 }
 0x4ef   :  { %v5604_v51 = vpop.eup %4293  ;;  %4299 = vpow2.f32 %v1052_v46  ;;  %v1031_v47 = vsub.f32 %v5519_v60, %v987_v38  ;;  %1085 = vadd.xlane.f32.xlu1 %v1084_v43  ;;  %v1035_v63 = vsub.f32 %v5524_v0, %v999_v36 }
 0x4f0   :  { %v1090_v57 = vsel %vm963_vm10, %v5604_v51, 0.0 }
 0x4f1   :  { %v5607_v48 = vpop.eup %4295  ;;  %v1058_v50 = vmul.f32 1.442695, %v1031_v47  ;;  %v1066_v13 = vmul.f32 1.442695, %v1035_v63 }
 0x4f2   :  { %v1005_v54 = vpop.xlane.xlu0 %1004  ;;  %v984_v56 = vpop.xlane.xlu1 %983  ;;  %v1093_v58 = vsel %vm963_vm10, %v5607_v48, 0.0 }
 0x4f3   :  { %v1030_v59 = vsub.f32 %v5527_v3, %v984_v56  ;;  %1091 = vadd.xlane.f32.xlu1 %v1090_v57  ;;  %1094 = vadd.xlane.f32.xlu0 %v1093_v58  ;;  %4301 = vpow2.f32 %v1058_v50  ;;  %v1037_v15 = vsub.f32 %v5534_v9, %v1005_v54 }
 0x4f5   :  { %v5614_v61 = vpop.eup %4297  ;;  %v1056_v60 = vmul.f32 1.442695, %v1030_v59 }
 0x4f6   :  { %v993_v1 = vpop.xlane.xlu1 %992  ;;  %v1099_v4 = vsel %vm963_vm10, %v5614_v61, 0.0  ;;  %v1011_v6 = vpop.xlane.xlu0 %1010 }
 0x4f7   :  { %v1033_v7 = vsub.f32 %v5537_v12, %v993_v1  ;;  %1100 = vadd.xlane.f32.xlu0 %v1099_v4  ;;  %4303 = vpow2.f32 %v1056_v60  ;;  %v1070_v12 = vmul.f32 1.442695, %v1037_v15  ;;  %v1039_v31 = vsub.f32 %v5544_v18, %v1011_v6 }
 0x4f9   :  { %v5620_v10 = vpop.eup %4299  ;;  %v1062_v3 = vmul.f32 1.442695, %v1033_v7  ;;  %v1074_v36 = vmul.f32 1.442695, %v1039_v31 }
 0x4fa   :  { %v990_v16 = vpop.xlane.xlu1 %989  ;;  %v1096_v19 = vsel %vm963_vm10, %v5620_v10, 0.0  ;;  %v1017_v24 = vpop.xlane.xlu0 %1016 }
 0x4fb   :  { %v1032_v0 = vsub.f32 %v5547_v21, %v990_v16  ;;  %1097 = vadd.xlane.f32.xlu1 %v1096_v19  ;;  %4305 = vpow2.f32 %v1062_v3  ;;  %v1041_v38 = vsub.f32 %v5554_v30, %v1017_v24 }
 0x4fc   :  { %4307 = vpow2.f32 %v1066_v13 }
 0x4fd   :  { %v1060_v37 = vmul.f32 1.442695, %v1032_v0  ;;  %v5626_v28 = vpop.eup %4301  ;;  %v1078_v56 = vmul.f32 1.442695, %v1041_v38 }
 0x4fe   :  { %v996_v41 = vpop.xlane.xlu1 %995  ;;  %v1105_v9 = vsel %vm963_vm10, %v5626_v28, 0.0  ;;  %v1023_v47 = vpop.xlane.xlu0 %1022 }
 0x4ff   :  { %v1034_v45 = vsub.f32 %v5557_v32, %v996_v41  ;;  %4309 = vpow2.f32 %v1060_v37  ;;  %1106 = vadd.xlane.f32.xlu0 %v1105_v9  ;;  %v1043_v57 = vsub.f32 %v5564_v42, %v1023_v47 }
 0x500   :  { %4311 = vpow2.f32 %v1070_v12 }
 0x501   :  { %v1064_v46 = vmul.f32 1.442695, %v1034_v45  ;;  %v5632_v21 = vpop.eup %4303  ;;  %v1082_v1 = vmul.f32 1.442695, %v1043_v57 }
 0x502   :  { %v1002_v43 = vpop.xlane.xlu1 %1001  ;;  %v1102_v18 = vsel %vm963_vm10, %v5632_v21, 0.0 }
 0x503   :  { %v1036_v50 = vsub.f32 %v5567_v44, %v1002_v43  ;;  %4313 = vpow2.f32 %v1064_v46  ;;  %1103 = vadd.xlane.f32.xlu1 %v1102_v18 }
 0x504   :  { %4315 = vpow2.f32 %v1074_v36 }
 0x505   :  { %v1068_v32 = vmul.f32 1.442695, %v1036_v50  ;;  %v5638_v54 = vpop.eup %4305 }
 0x506   :  { %v1008_v58 = vpop.xlane.xlu1 %1007  ;;  %v1111_v59 = vsel %vm963_vm10, %v5638_v54, 0.0  ;;  %v5644_v44 = vpop.eup %4307 }
 0x507   :  { %4317 = vpow2.f32 %v1068_v32  ;;  %v1038_v30 = vsub.f32 %v5574_v49, %v1008_v58  ;;  %1112 = vadd.xlane.f32.xlu0 %v1111_v59  ;;  %v1117_v42 = vsel %vm963_vm10, %v5644_v44, 0.0 }
 0x508   :  { %4319 = vpow2.f32 %v1078_v56 }
 0x509   :  { %v1072_v60 = vmul.f32 1.442695, %v1038_v30  ;;  %v5646_v63 = vpop.eup %4309 }
 0x50a   :  { %v1014_v4 = vpop.xlane.xlu1 %1013  ;;  %v1108_v49 = vsel %vm963_vm10, %v5646_v63, 0.0  ;;  %v5653_v7 = vpop.eup %4311 }
 0x50b   :  { %4321 = vpow2.f32 %v1072_v60  ;;  %v1040_v6 = vsub.f32 %v5579_v52, %v1014_v4  ;;  %1118 = vadd.xlane.f32.xlu0 %v1117_v42  ;;  %1109 = vadd.xlane.f32.xlu1 %v1108_v49  ;;  %v1123_v52 = vsel %vm963_vm10, %v5653_v7, 0.0 }
 0x50c   :  { %4323 = vpow2.f32 %v1082_v1 }
 0x50d   :  { %v1076_v3 = vmul.f32 1.442695, %v1040_v6  ;;  %v5655_v13 = vpop.eup %4313 }
 0x50e   :  { %v1020_v15 = vpop.xlane.xlu1 %1019  ;;  %v1114_v19 = vsel %vm963_vm10, %v5655_v13, 0.0  ;;  %v5662_v0 = vpop.eup %4315 }
 0x50f   :  { %4325 = vpow2.f32 %v1076_v3  ;;  %v1042_v16 = vsub.f32 %v5584_v55, %v1020_v15  ;;  %1124 = vadd.xlane.f32.xlu0 %v1123_v52  ;;  %1115 = vadd.xlane.f32.xlu1 %v1114_v19  ;;  %v1129_v55 = vsel %vm963_vm10, %v5662_v0, 0.0 }
 0x511   :  { %v5664_v24 = vpop.eup %4317  ;;  %v1080_v37 = vmul.f32 1.442695, %v1042_v16 }
 0x512   :  { %v1120_v12 = vsel %vm963_vm10, %v5664_v24, 0.0  ;;  %v5670_v31 = vpop.eup %4319 }
 0x513   :  { %4327 = vpow2.f32 %v1080_v37  ;;  %1130 = vadd.xlane.f32.xlu0 %v1129_v55  ;;  %1121 = vadd.xlane.f32.xlu1 %v1120_v12  ;;  %v1135_v9 = vsel %vm963_vm10, %v5670_v31, 0.0 }
 0x515   :  { %v5672_v41 = vpop.eup %4321 }
 0x516   :  { %v1126_v45 = vsel %vm963_vm10, %v5672_v41, 0.0  ;;  %v5678_v46 = vpop.eup %4323 }
 0x517   :  { %1136 = vadd.xlane.f32.xlu0 %v1135_v9  ;;  %1127 = vadd.xlane.f32.xlu1 %v1126_v45  ;;  %v1141_v43 = vsel %vm963_vm10, %v5678_v46, 0.0 }
 0x519   :  { %v5680_v36 = vpop.eup %4325 }
 0x51a   :  { %v1132_v38 = vsel %vm963_vm10, %v5680_v36, 0.0 }
 0x51b   :  { %1142 = vadd.xlane.f32.xlu0 %v1141_v43  ;;  %1133 = vadd.xlane.f32.xlu1 %v1132_v38 }
 0x51d   :  { %v5686_v47 = vpop.eup %4327 }
 0x51e   :  { %v1138_v50 = vsel %vm963_vm10, %v5686_v47, 0.0 }
 0x51f   :  { %1139 = vadd.xlane.f32.xlu1 %v1138_v50 }
 0x578   :  { %v1089_v18 = vpop.xlane.xlu0 %1088 }
 0x579   :  { %4329 = vrcp.f32 %v1089_v18 }
 0x57c   :  { %v1086_v32 = vpop.xlane.xlu1 %1085 }
 0x57d   :  { %4331 = vrcp.f32 %v1086_v32 }
 0x580   :  { %v1095_v56 = vpop.xlane.xlu0 %1094  ;;  %v1092_v57 = vpop.xlane.xlu1 %1091 }
 0x581   :  { %4333 = vrcp.f32 %v1095_v56 }
 0x582   :  { %4335 = vrcp.f32 %v1092_v57 }
 0x583   :  { %v4330_v30 = vpop.eup %4329 }
 0x584   :  { %v1101_v58 = vpop.xlane.xlu0 %1100  ;;  %v1165_v4 = vmul.f32 %v4330_v30, %v5595_v27 }
 0x585   :  { %4337 = vrcp.f32 %v1101_v58 }
 0x587   :  { %v4332_v59 = vpop.eup %4331 }
 0x588   :  { %v1098_v60 = vpop.xlane.xlu1 %1097  ;;  %v1164_v1 = vmul.f32 %v4332_v59, %v5600_v33 }
 0x589   :  { %4339 = vrcp.f32 %v1098_v60 }
 0x58a   :  { %3889 = vmatprep.mubr.msk.f32.mxu0 %vm963_vm10, %v1164_v1 }
 0x58b   :  { %v4334_v6 = vpop.eup %4333  ;;  %3890 = vmatmul.mubr.msk.f32.vlgmr.msra.gmra.mrb[4].mxu0 %vm963_vm10, %v1165_v4 }
 0x58c   :  { %v4336_v42 = vpop.eup %4335  ;;  %v1167_v49 = vmul.f32 %v4334_v6, %v5607_v48  ;;  %v1107_v15 = vpop.xlane.xlu0 %1106 }
 0x58d   :  { %v1166_v3 = vmul.f32 %v4336_v42, %v5604_v51  ;;  %4341 = vrcp.f32 %v1107_v15 }
 0x58f   :  { %3892 = vmatprep.mubr.msk.f32.mxu0 %vm963_vm10, %v1166_v3  ;;  %v4338_v16 = vpop.eup %4337 }
 0x590   :  { %3893 = vmatmul.mubr.msk.f32.gmra.mrb[6].mxu0 %vm963_vm10, %v1167_v49  ;;  %v1104_v33 = vpop.xlane.xlu1 %1103  ;;  %v1169_v37 = vmul.f32 %v4338_v16, %v5614_v61 }
 0x591   :  { %4343 = vrcp.f32 %v1104_v33 }
 0x593   :  { %v4340_v27 = vpop.eup %4339 }
 0x594   :  { %v1168_v52 = vmul.f32 %v4340_v27, %v5620_v10  ;;  %v1113_v19 = vpop.xlane.xlu0 %1112 }
 0x595   :  { %4345 = vrcp.f32 %v1113_v19  ;;  %v1448_v19 = vld [vmem:[#allocation8 + $0x8] sm:$0xff] }
 0x596   :  { %3895 = vmatprep.mubr.msk.f32.mxu0 %vm963_vm10, %v1168_v52  ;;  %v1447_v52 = vld [vmem:[#allocation8] sm:$0xff] }
 0x597   :  { %3896 = vmatmul.mubr.msk.f32.gmra.mrb[8].mxu0 %vm963_vm10, %v1169_v37  ;;  %v4342_v12 = vpop.eup %4341  ;;  %v4170_v37 = vpack.c.bf16 %v1448_v19, %v1447_v52 }
 0x598   :  { %v1119_v51 = vpop.xlane.xlu0 %1118  ;;  %v1110_v48 = vpop.xlane.xlu1 %1109  ;;  %v1171_v10 = vmul.f32 %v4342_v12, %v5626_v28 }
 0x599   :  { %4347 = vrcp.f32 %v1110_v48  ;;  %4171 = vmatprep.subr.bf16.mxu0 %v4170_v37  ;;  %v1451_v48 = vld [vmem:[#allocation8 + $0x20] sm:$0xff] }
 0x59a   :  { %4349 = vrcp.f32 %v1119_v51  ;;  %4173 = vmatpush3.bf16.msra.mxu0 %v4170_v37 }
 0x59b   :  { %v4344_v55 = vpop.eup %4343 }
 0x59c   :  { %v1125_v45 = vpop.xlane.xlu0 %1124  ;;  %v1116_v9 = vpop.xlane.xlu1 %1115  ;;  %v1170_v38 = vmul.f32 %v4344_v55, %v5632_v21 }
 0x59d   :  { %4351 = vrcp.f32 %v1116_v9 }
 0x59e   :  { %3898 = vmatprep.mubr.msk.f32.mxu0 %vm963_vm10, %v1170_v38  ;;  %4353 = vrcp.f32 %v1125_v45 }
 0x59f   :  { %3899 = vmatmul.mubr.msk.f32.gmra.mrb[10].mxu0 %vm963_vm10, %v1171_v10  ;;  %v4346_v50 = vpop.eup %4345 }
 0x5a0   :  { %v1131_v61 = vpop.xlane.xlu0 %1130  ;;  %v1122_v43 = vpop.xlane.xlu1 %1121  ;;  %v1173_v21 = vmul.f32 %v4346_v50, %v5638_v54 }
 0x5a1   :  { %4355 = vrcp.f32 %v1122_v43 }
 0x5a2   :  { %4357 = vrcp.f32 %v1131_v61 }
 0x5a3   :  { %v4348_v18 = vpop.eup %4347 }
 0x5a4   :  { %v1137_v32 = vpop.xlane.xlu0 %1136  ;;  %v1128_v56 = vpop.xlane.xlu1 %1127  ;;  %v1172_v57 = vmul.f32 %v4348_v18, %v5646_v63 }
 0x5a5   :  { %4359 = vrcp.f32 %v1128_v56  ;;  %v4350_v28 = vpop.eup %4349 }
 0x5a6   :  { %3901 = vmatprep.mubr.msk.f32.mxu0 %vm963_vm10, %v1172_v57  ;;  %4361 = vrcp.f32 %v1137_v32  ;;  %v1175_v1 = vmul.f32 %v4350_v28, %v5644_v44 }
 0x5a7   :  { %v4352_v58 = vpop.eup %4351  ;;  %3902 = vmatmul.mubr.msk.f32.gmra.mrb[12].mxu0 %vm963_vm10, %v1173_v21 }
 0x5a8   :  { %v1134_v30 = vpop.xlane.xlu1 %1133  ;;  %v1143_v59 = vpop.xlane.xlu0 %1142  ;;  %v1174_v60 = vmul.f32 %v4352_v58, %v5655_v13 }
 0x5a9   :  { %4363 = vrcp.f32 %v1134_v30  ;;  %v4354_v4 = vpop.eup %4353 }
 0x5aa   :  { %3904 = vmatprep.mubr.msk.f32.mxu0 %vm963_vm10, %v1174_v60  ;;  %4365 = vrcp.f32 %v1143_v59  ;;  %v1177_v42 = vmul.f32 %v4354_v4, %v5653_v7 }
 0x5ab   :  { %v4356_v63 = vpop.eup %4355  ;;  %3905 = vmatmul.mubr.msk.f32.gmra.mrb[14].mxu0 %vm963_vm10, %v1175_v1 }
 0x5ac   :  { %v1140_v54 = vpop.xlane.xlu1 %1139  ;;  %v1176_v6 = vmul.f32 %v4356_v63, %v5664_v24  ;;  %v4358_v49 = vpop.eup %4357 }
 0x5ad   :  { %4367 = vrcp.f32 %v1140_v54  ;;  %v1179_v3 = vmul.f32 %v4358_v49, %v5662_v0 }
 0x5ae   :  { %3907 = vmatprep.mubr.msk.f32.mxu0 %vm963_vm10, %v1176_v6 }
 0x5af   :  { %v4360_v13 = vpop.eup %4359  ;;  %3908 = vmatmul.mubr.msk.f32.gmra.mrb[16].mxu0 %vm963_vm10, %v1177_v42 }
 0x5b0   :  { %v1178_v44 = vmul.f32 %v4360_v13, %v5672_v41  ;;  %v4362_v15 = vpop.eup %4361 }
 0x5b1   :  { %v1181_v7 = vmul.f32 %v4362_v15, %v5670_v31  ;;  %v1450_v31 = vld [vmem:[#allocation8 + $0x18] sm:$0xff] }
 0x5b2   :  { %3910 = vmatprep.mubr.msk.f32.mxu0 %vm963_vm10, %v1178_v44 }
 0x5b3   :  { %v4364_v33 = vpop.eup %4363  ;;  %3911 = vmatmul.mubr.msk.f32.gmra.mrb[18].mxu0 %vm963_vm10, %v1179_v3 }
 0x5b4   :  { %v1180_v24 = vmul.f32 %v4364_v33, %v5680_v36  ;;  %v4366_v16 = vpop.eup %4365  ;;  %v1449_v36 = vld [vmem:[#allocation8 + $0x10] sm:$0xff] }
 0x5b5   :  { %v1183_v0 = vmul.f32 %v4366_v16, %v5678_v46  ;;  %v4174_v51 = vpack.c.bf16 %v1450_v31, %v1449_v36 }
 0x5b6   :  { %3913 = vmatprep.mubr.msk.f32.mxu0 %vm963_vm10, %v1180_v24 }
 0x5b7   :  { %v4368_v27 = vpop.eup %4367  ;;  %3914 = vmatmul.mubr.msk.f32.gmra.mrb[20].mxu0 %vm963_vm10, %v1181_v7  ;;  %4175 = vmatprep.subr.bf16.mxu0 %v4174_v51 }
 0x5b8   :  { %v1182_v41 = vmul.f32 %v4368_v27, %v5686_v47  ;;  %4177 = vmatpush3.bf16.msra.mxu0 %v4174_v51 }
 0x5b9   :  { %3927 = vmatprep.subr.mxu0 %v1451_v48 }
 0x5ba   :  { %3916 = vmatprep.mubr.msk.f32.mxu0 %vm963_vm10, %v1182_v41 }
 0x5bb   :  { %3917 = vmatmul.mubr.msk.f32.gmra.mrb[22].mxu0 %vm963_vm10, %v1183_v0 }
 0x5bc   :  { %3928 = vmatpush3.msra.mxu0 %v1451_v48 }
 0x65e   :  { %v3891_v47 = vpop.f32.mrb[4].mxu0 }
 0x65f   :  { %v1310_v12 = vpop.f32.mrb[5].mxu0  ;;  %v1410_v46 = vmul.f32 %v3891_v47, %v5357_v53 }
 0x660   :  { %v1409_v38 = vmul.f32 %v5357_v53, %v1310_v12 }
 0x663   :  { %v3894_v55 = vpop.f32.mrb[6].mxu0 }
 0x664   :  { %v1412_v45 = vmul.f32 %v3894_v55, %v5382_v2  ;;  %v1320_v9 = vpop.f32.mrb[7].mxu0 }
 0x665   :  { %v1411_v10 = vmul.f32 %v5382_v2, %v1320_v9 }
 0x666   :  { %v1414_v61 = vadd.f32 %v1412_v45, %v1410_v46 }
 0x667   :  { %v1413_v43 = vadd.f32 %v1411_v10, %v1409_v38 }
 0x66a   :  { %v3897_v50 = vpop.f32.mrb[8].mxu0 }
 0x66b   :  { %v1416_v18 = vmul.f32 %v3897_v50, %v5393_v5  ;;  %v1330_v32 = vpop.f32.mrb[9].mxu0 }
 0x66c   :  { %v1415_v56 = vmul.f32 %v5393_v5, %v1330_v32  ;;  %v3508_v32 = vld [vmem:[#allocation10] ss:$0 sm:$0xff] }
 0x66d   :  { %v1418_v57 = vadd.f32 %v1416_v18, %v1414_v61 }
 0x66e   :  { %v1417_v21 = vadd.f32 %v1415_v56, %v1413_v43 }
 0x672   :  { %v3900_v28 = vpop.f32.mrb[10].mxu0 }
 0x673   :  { %v1420_v58 = vmul.f32 %v3900_v28, %v5406_v8  ;;  %v1340_v30 = vpop.f32.mrb[11].mxu0 }
 0x674   :  { %v1419_v59 = vmul.f32 %v5406_v8, %v1340_v30 }
 0x675   :  { %v1422_v60 = vadd.f32 %v1420_v58, %v1418_v57 }
 0x676   :  { %v1421_v1 = vadd.f32 %v1419_v59, %v1417_v21 }
 0x67a   :  { %v3903_v4 = vpop.f32.mrb[12].mxu0 }
 0x67b   :  { %v1424_v63 = vmul.f32 %v3903_v4, %v5417_v11  ;;  %v1350_v54 = vpop.f32.mrb[13].mxu0  ;;  %v1588_v4 = vld [vmem:[#allocation14 + $0x8] sm:$0xff] }
 0x67c   :  { %v1423_v6 = vmul.f32 %v5417_v11, %v1350_v54 }
 0x67d   :  { %v1426_v42 = vadd.f32 %v1424_v63, %v1422_v60  ;;  %v1589_v63 = vld [vmem:[#allocation14 + $0x10] sm:$0xff] }
 0x67e   :  { %v1425_v49 = vadd.f32 %v1423_v6, %v1421_v1  ;;  %v3906_v13 = vpop.f32.mrb[14].mxu0  ;;  %v1587_v1 = vld [vmem:[#allocation14] sm:$0xff]  ;;  %v1590_v6 = vld [vmem:[#allocation14 + $0x18] sm:$0xff] }
 0x67f   :  { %v1428_v44 = vmul.f32 %v3906_v13, %v5428_v14  ;;  %v1360_v3 = vpop.f32.mrb[15].mxu0  ;;  %v4178_v54 = vpack.c.bf16 %v1588_v4, %v1587_v1 }
 0x680   :  { %v1427_v15 = vmul.f32 %v5428_v14, %v1360_v3 }
 0x681   :  { %v1430_v33 = vadd.f32 %v1428_v44, %v1426_v42  ;;  %v4182_v42 = vpack.c.bf16 %v1590_v6, %v1589_v63  ;;  %4179 = vmatprep.subr.bf16.mxu1 %v4178_v54 }
 0x682   :  { %v1429_v24 = vadd.f32 %v1427_v15, %v1425_v49  ;;  %v3909_v16 = vpop.f32.mrb[16].mxu0  ;;  %4181 = vmatpush3.bf16.msra.mxu1 %v4178_v54 }
 0x683   :  { %v1432_v7 = vmul.f32 %v3909_v16, %v5439_v17  ;;  %v1370_v27 = vpop.f32.mrb[17].mxu0  ;;  %4183 = vmatprep.subr.bf16.mxu1 %v4182_v42 }
 0x684   :  { %v1431_v41 = vmul.f32 %v5439_v17, %v1370_v27  ;;  %v1682_v27 = vld [vmem:[#allocation17] sm:$0xff] }
 0x685   :  { %v1434_v0 = vadd.f32 %v1432_v7, %v1430_v33  ;;  %v1591_v7 = vld [vmem:[#allocation14 + $0x20] sm:$0xff] }
 0x686   :  { %v1433_v52 = vadd.f32 %v1431_v41, %v1429_v24  ;;  %v3912_v19 = vpop.f32.mrb[18].mxu0  ;;  %4185 = vmatpush3.bf16.msra.mxu1 %v4182_v42  ;;  %v1683_v41 = vld [vmem:[#allocation17 + $0x8] sm:$0xff] }
 0x687   :  { %v1436_v37 = vmul.f32 %v3912_v19, %v5450_v20  ;;  %v1380_v36 = vpop.f32.mrb[19].mxu0  ;;  %3940 = vmatprep.subr.mxu1 %v1591_v7 }
 0x688   :  { %v1435_v31 = vmul.f32 %v5450_v20, %v1380_v36 }
 0x689   :  { %v1438_v51 = vadd.f32 %v1436_v37, %v1434_v0  ;;  %v4186_v0 = vpack.c.bf16 %v1683_v41, %v1682_v27  ;;  %v3521_v41 = vld [vmem:[%s6246_s12 + $0x28] sm:$0xff] }
 0x68a   :  { %v1437_v48 = vadd.f32 %v1435_v31, %v1433_v52  ;;  %v3915_v47 = vpop.f32.mrb[20].mxu0  ;;  %3941 = vmatpush3.msra.mxu1 %v1591_v7 }
 0x68b   :  { %v1440_v12 = vmul.f32 %v3915_v47, %v5461_v26  ;;  %v1390_v55 = vpop.f32.mrb[21].mxu0  ;;  %4187 = vmatprep.subr.bf16.mxu0 %v4186_v0  ;;  %v3511_v47 = vld [vmem:[#allocation11] ss:$0 sm:$0xff] }
 0x68c   :  { %v1439_v46 = vmul.f32 %v5461_v26, %v1390_v55 }
 0x68d   :  { %v1442_v45 = vadd.f32 %v1440_v12, %v1438_v51 }
 0x68e   :  { %v1441_v9 = vadd.f32 %v1439_v46, %v1437_v48  ;;  %v3918_v38 = vpop.f32.mrb[22].mxu0 }
 0x68f   :  { %v1444_v10 = vmul.f32 %v3918_v38, %v5470_v29  ;;  %v1400_v61 = vpop.f32.mrb[23].mxu0 }
 0x690   :  { %v1443_v43 = vmul.f32 %v5470_v29, %v1400_v61 }
 0x691   :  { %v1446_v50 = vadd.f32 %v1444_v10, %v1442_v45  ;;  %v3512_v45 = vld [vmem:[#allocation13] ss:$0 sm:$0xff] }
 0x692   :  { %v1445_v18 = vadd.f32 %v1443_v43, %v1441_v9  ;;  %v1684_v43 = vld [vmem:[#allocation17 + $0x10] sm:$0xff] }
 0x694   :  { %3929 = vmatprep.mubr.msk.f32.mxu0 %vm454_vm4, %v1445_v18 }
 0x695   :  { %3930 = vmatmul.mubr.msk.f32.vlgmr.msra.gmra.mrb[24].mxu0 %vm454_vm4, %v1446_v50  ;;  %v1685_v50 = vld [vmem:[#allocation17 + $0x18] sm:$0xff] }
 0x696   :  { %4189 = vmatpush3.bf16.msra.mxu0 %v4186_v0  ;;  %v4190_v18 = vpack.c.bf16 %v1685_v50, %v1684_v43  ;;  %v3522_v0 = vld [vmem:[%s6246_s12 + $0x30] sm:$0xff] }
 0x698   :  { %4191 = vmatprep.subr.bf16.mxu0 %v4190_v18 }
 0x69a   :  { %4193 = vmatpush3.bf16.msra.mxu0 %v4190_v18 }
 0x768   :  { %v3931_v56 = vpop.f32.mrb[24].mxu0 }
 0x769   :  { %v1537_v57 = vadd.f32 %v3931_v56, %v3508_v32  ;;  %v1531_v21 = vpop.f32.mrb[25].mxu0  ;;  %v3513_v56 = vld [vmem:[#allocation16] ss:$0 sm:$0xff] }
 0x76a   :  { %v1532_v28 = vadd.f32 %v3508_v32, %v1531_v21  ;;  %v1686_v32 = vld [vmem:[#allocation17 + $0x20] sm:$0xff] }
 0x76b   :  { %v1541_v58 = vadd.f32 %v5326_v39, %v1537_v57  ;;  %3953 = vmatprep.subr.mxu0 %v1686_v32 }
 0x76c   :  { %v1540_v30 = vadd.f32 %v1532_v28, %v5328_v40  ;;  %3954 = vmatpush3.msra.mxu0 %v1686_v32 }
 0x76d   :  { %v1547_v59 = vsel %vm454_vm4, %v1541_v58, 0.0 }
 0x76e   :  { %1548 = vadd.xlane.f32.xlu0 %v1547_v59  ;;  %v1544_v60 = vsel %vm454_vm4, %v1540_v30, 0.0 }
 0x76f   :  { %1545 = vadd.xlane.f32.xlu1 %v1544_v60  ;;  %v3516_v60 = vld [vmem:[#allocation19] ss:$0 sm:$0xff] }
 0x7fb   :  { %v1549_v49 = vpop.xlane.xlu0 %1548 }
 0x7fc   :  { %v1552_v39 = vmul.f32 0.025, %v1549_v49  ;;  %v1546_v13 = vpop.xlane.xlu1 %1545 }
 0x7fd   :  { %v1551_v40 = vmul.f32 0.025, %v1546_v13 }
 0x7fe   :  { %v1554_v44 = vsub.f32 %v1541_v58, %v1552_v39 }
 0x7ff   :  { %v1553_v3 = vsub.f32 %v1540_v30, %v1551_v40 }
 0x800   :  { %v1556_v15 = vmul.f32 %v1554_v44, %v1554_v44 }
 0x801   :  { %v1555_v33 = vmul.f32 %v1553_v3, %v1553_v3 }
 0x802   :  { %v1560_v24 = vsel %vm454_vm4, %v1556_v15, 0.0 }
 0x803   :  { %1561 = vadd.xlane.f32.xlu0 %v1560_v24  ;;  %v1557_v16 = vsel %vm454_vm4, %v1555_v33, 0.0 }
 0x804   :  { %1558 = vadd.xlane.f32.xlu1 %v1557_v16 }
 0x890   :  { %v1562_v52 = vpop.xlane.xlu0 %1561 }
 0x891   :  { %v1564_v19 = vmul.f32 0.025, %v1562_v52  ;;  %v1559_v37 = vpop.xlane.xlu1 %1558  ;;  %v4194_v52 = vpack.c.bf16 %v3522_v0, %v3521_v41 }
 0x892   :  { %v1563_v36 = vmul.f32 0.025, %v1559_v37  ;;  %v3530_v37 = vld [vmem:[%s6248_s0 + $0x30] sm:$0xff] }
 0x893   :  { %v1566_v31 = vadd.f32 1e-05, %v1564_v19  ;;  %v3529_v19 = vld [vmem:[%s6248_s0 + $0x28] sm:$0xff]  ;;  %4195 = vmatprep.subr.bf16.mxu1 %v4194_v52 }
 0x894   :  { %v1565_v51 = vadd.f32 1e-05, %v1563_v36  ;;  %v4202_v36 = vpack.c.bf16 %v3530_v37, %v3529_v19  ;;  %v3542_v19 = vld [vmem:[#allocation7 + $0x1] ss:$0 sm:$0xff] }
 0x895   :  { %4369 = vrsqrt.f32 %v1566_v31  ;;  %v3523_v31 = vld [vmem:[%s6246_s12 + $0x38] sm:$0xff] }
 0x896   :  { %4371 = vrsqrt.f32 %v1565_v51  ;;  %4203 = vmatprep.subr.bf16.mxu0 %v4202_v36  ;;  %v3524_v51 = vld [vmem:[%s6246_s12 + $0x40] sm:$0xff] }
 0x89f   :  { %v4370_v48 = vpop.eup %4369 }
 0x8a0   :  { %v4372_v12 = vpop.eup %4371  ;;  %v1570_v55 = vmul.f32 %v4370_v48, %v1554_v44  ;;  %v4198_v48 = vpack.c.bf16 %v3524_v51, %v3523_v31 }
 0x8a1   :  { %v1569_v46 = vmul.f32 %v4372_v12, %v1553_v3  ;;  %v3532_v12 = vld [vmem:[%s6248_s0 + $0x40] sm:$0xff] }
 0x8a2   :  { %v1578_v9 = vmul.f32 %v3511_v47, %v1570_v55 }
 0x8a3   :  { %v1577_v38 = vmul.f32 %v3511_v47, %v1569_v46  ;;  %v3531_v47 = vld [vmem:[%s6248_s0 + $0x38] sm:$0xff]  ;;  %v3525_v46 = vld [vmem:[%s6246_s12 + $0x48] sm:$0xff] }
 0x8a4   :  { %v1586_v61 = vadd.f32 %v3512_v45, %v1578_v9  ;;  %v4206_v55 = vpack.c.bf16 %v3532_v12, %v3531_v47  ;;  %v3537_v9 = vld [vmem:[%s6247_s7 + $0x28] sm:$0xff] }
 0x8a5   :  { %v1585_v10 = vadd.f32 %v3512_v45, %v1577_v38  ;;  %v3533_v45 = vld [vmem:[%s6248_s0 + $0x48] sm:$0xff]  ;;  %v3538_v38 = vld [vmem:[%s6247_s7 + $0x30] sm:$0xff] }
 0x8a7   :  { %3942 = vmatprep.mubr.msk.f32.mxu1 %vm454_vm4, %v1585_v10 }
 0x8a8   :  { %3943 = vmatmul.mubr.msk.f32.vlgmr.msra.gmra.mrb[24].mxu1 %vm454_vm4, %v1586_v61 }
 0x8a9   :  { %4197 = vmatpush3.bf16.msra.mxu1 %v4194_v52 }
 0x8aa   :  { %4199 = vmatprep.subr.bf16.mxu1 %v4198_v48 }
 0x8ad   :  { %4201 = vmatpush3.bf16.msra.mxu1 %v4198_v48 }
 0x8ae   :  { %3966 = vmatprep.subr.mxu1 %v3525_v46 }
 0x8b1   :  { %3967 = vmatpush3.msra.mxu1 %v3525_v46 }
 0x97b   :  { %v3944_v57 = vpop.f32.mrb[24].mxu1 }
 0x97c   :  { %v1677_v21 = vadd.f32 %v3944_v57, %v3513_v56  ;;  %v1671_v28 = vpop.f32.mrb[25].mxu1 }
 0x97d   :  { %v1672_v58 = vadd.f32 %v3513_v56, %v1671_v28 }
 0x97e   :  { %v1681_v59 = vmax.f32 %v1677_v21, 0.0  ;;  %v3519_v21 = vld [vmem:[#allocation20] ss:$0 sm:$0xff] }
 0x97f   :  { %v1680_v30 = vmax.f32 %v1672_v58, 0.0 }
 0x981   :  { %3955 = vmatprep.mubr.msk.f32.mxu0 %vm454_vm4, %v1680_v30 }
 0x982   :  { %3956 = vmatmul.mubr.msk.f32.vlgmr.msra.gmra.mrb[26].mxu0 %vm454_vm4, %v1681_v59  ;;  %v3520_v59 = vld [vmem:[#allocation22] ss:$0 sm:$0xff] }
 0x983   :  { %4205 = vmatpush3.bf16.msra.mxu0 %v4202_v36 }
 0x984   :  { %4207 = vmatprep.subr.bf16.mxu0 %v4206_v55 }
 0x987   :  { %4209 = vmatpush3.bf16.msra.mxu0 %v4206_v55 }
 0x988   :  { %3979 = vmatprep.subr.mxu0 %v3533_v45 }
 0x98b   :  { %3980 = vmatpush3.msra.mxu0 %v3533_v45 }
 0xa55   :  { %v3957_v1 = vpop.f32.mrb[26].mxu0 }
 0xa56   :  { %v1772_v4 = vadd.f32 %v3957_v1, %v3516_v60  ;;  %v1766_v63 = vpop.f32.mrb[27].mxu0 }
 0xa57   :  { %v1767_v54 = vadd.f32 %v3516_v60, %v1766_v63  ;;  %v3540_v63 = vld [vmem:[%s6247_s7 + $0x40] sm:$0xff] }
 0xa58   :  { %v1776_v6 = vadd.f32 %v1772_v4, %v1586_v61  ;;  %v3539_v4 = vld [vmem:[%s6247_s7 + $0x38] sm:$0xff] }
 0xa59   :  { %v1775_v42 = vadd.f32 %v1767_v54, %v1585_v10  ;;  %v4210_v10 = vpack.c.bf16 %v3538_v38, %v3537_v9 }
 0xa5a   :  { %v1782_v49 = vsel %vm454_vm4, %v1776_v6, 0.0 }
 0xa5b   :  { %1783 = vadd.xlane.f32.xlu0 %v1782_v49  ;;  %v1779_v39 = vsel %vm454_vm4, %v1775_v42, 0.0  ;;  %4211 = vmatprep.subr.bf16.mxu1 %v4210_v10  ;;  %v3541_v49 = vld [vmem:[%s6247_s7 + $0x48] sm:$0xff] }
 0xa5c   :  { %1780 = vadd.xlane.f32.xlu1 %v1779_v39  ;;  %v3534_v39 = vld [vmem:[#allocation5 + $0x1] ss:$0 sm:$0xff] }
 0xae8   :  { %v1784_v13 = vpop.xlane.xlu0 %1783 }
 0xae9   :  { %v1786_v40 = vmul.f32 0.025, %v1784_v13  ;;  %v1781_v44 = vpop.xlane.xlu1 %1780  ;;  %v3526_v13 = vld [vmem:[#allocation2 + $0x1] ss:$0 sm:$0xff] }
 0xaea   :  { %v1785_v3 = vmul.f32 0.025, %v1781_v44 }
 0xaeb   :  { %v1788_v15 = vsub.f32 %v1776_v6, %v1786_v40 }
 0xaec   :  { %v1787_v33 = vsub.f32 %v1775_v42, %v1785_v3  ;;  %v4214_v42 = vpack.c.bf16 %v3540_v63, %v3539_v4 }
 0xaed   :  { %v1790_v24 = vmul.f32 %v1788_v15, %v1788_v15 }
 0xaee   :  { %v1789_v16 = vmul.f32 %v1787_v33, %v1787_v33 }
 0xaef   :  { %v1794_v7 = vsel %vm454_vm4, %v1790_v24, 0.0 }
 0xaf0   :  { %1795 = vadd.xlane.f32.xlu0 %v1794_v7  ;;  %v1791_v27 = vsel %vm454_vm4, %v1789_v16, 0.0 }
 0xaf1   :  { %1792 = vadd.xlane.f32.xlu1 %v1791_v27 }
 0xb7d   :  { %v1796_v61 = vpop.xlane.xlu0 %1795 }
 0xb7e   :  { %v1798_v43 = vmul.f32 0.025, %v1796_v61  ;;  %v1793_v50 = vpop.xlane.xlu1 %1792 }
 0xb7f   :  { %v1797_v18 = vmul.f32 0.025, %v1793_v50 }
 0xb80   :  { %v1800_v32 = vadd.f32 1e-05, %v1798_v43 }
 0xb81   :  { %v1799_v56 = vadd.f32 1e-05, %v1797_v18 }
 0xb82   :  { %4373 = vrsqrt.f32 %v1800_v32 }
 0xb83   :  { %4375 = vrsqrt.f32 %v1799_v56 }
 0xb8c   :  { %v4374_v57 = vpop.eup %4373 }
 0xb8d   :  { %v4376_v28 = vpop.eup %4375  ;;  %v1804_v58 = vmul.f32 %v4374_v57, %v1788_v15 }
 0xb8e   :  { %v1803_v30 = vmul.f32 %v4376_v28, %v1787_v33 }
 0xb8f   :  { %v1812_v60 = vmul.f32 %v3519_v21, %v1804_v58 }
 0xb90   :  { %v1811_v1 = vmul.f32 %v3519_v21, %v1803_v30 }
 0xb91   :  { %v5810_v6 = vadd.f32 %v3520_v59, %v1812_v60 }
 0xb92   :  { %v5808_v54 = vadd.f32 %v3520_v59, %v1811_v1 }
 0xb94   :  { %3968 = vmatprep.mubr.msk.f32.mxu1 %vm454_vm4, %v5808_v54  ;;  %3981 = vmatprep.mubr.msk.f32.mxu0 %vm454_vm4, %v5808_v54 }
 0xb95   :  { %3969 = vmatmul.mubr.msk.f32.vlgmr.msra.gmra.mrb[26].mxu1 %vm454_vm4, %v5810_v6  ;;  %3982 = vmatmul.mubr.msk.f32.vlgmr.msra.gmra.mrb[28].mxu0 %vm454_vm4, %v5810_v6 }
 0xb96   :  { %4213 = vmatpush3.bf16.msra.mxu1 %v4210_v10  ;;  %3994 = vmatprep.mubr.msk.f32.mxu1 %vm454_vm4, %v5808_v54 }
 0xb97   :  { %4215 = vmatprep.subr.bf16.mxu1 %v4214_v42 }
 0xb9a   :  { %4217 = vmatpush3.bf16.msra.mxu1 %v4214_v42 }
 0xb9b   :  { %3992 = vmatprep.subr.mxu1 %v3541_v49 }
 0xb9e   :  { %3993 = vmatpush3.msra.mxu1 %v3541_v49 }
 0xb9f   :  { %3995 = vmatmul.mubr.msk.f32.vlgmr.msra.gmra.mrb[28].mxu1 %vm454_vm4, %v5810_v6 }
 0xc68   :  { %v3970_v40 = vpop.f32.mrb[26].mxu1  ;;  %v3983_v44 = vpop.f32.mrb[28].mxu0 }
 0xc69   :  { %v2002_v3 = vadd.f32 %v3983_v44, %v3534_v39  ;;  %v1907_v15 = vpop.f32.mrb[27].mxu1  ;;  %v1996_v33 = vpop.f32.mrb[29].mxu0  ;;  %v1913_v7 = vadd.f32 %v3970_v40, %v3526_v13 }
 0xc6a   :  { %v1908_v24 = vadd.f32 %v3526_v13, %v1907_v15  ;;  %v1997_v16 = vadd.f32 %v3534_v39, %v1996_v33 }
 0xc6b   :  { %v2095_v52 = vmul.f32 0.5, %v1913_v7 }
 0xc6c   :  { %v2094_v27 = vmul.f32 0.5, %v1908_v24  ;;  %v4218_v41 = vpack.c.bf16 %v2002_v3, %v1997_v16 }
 0xc6d   :  { %v2097_v48 = vmul.f32 %v5357_v53, %v2095_v52  ;;  %v2099_v62 = vmul.f32 %v5382_v2, %v2095_v52  ;;  %v2101_v46 = vmul.f32 %v5393_v5, %v2095_v52  ;;  %v2103_v9 = vmul.f32 %v5406_v8, %v2095_v52 }
 0xc6e   :  { %4220 = vmatprep.subr.msk.bf16.mxu0 %vm5366_vm9, %v4218_v41  ;;  %v2096_v0 = vmul.f32 %v5357_v53, %v2094_v27  ;;  %v2098_v47 = vmul.f32 %v5382_v2, %v2094_v27  ;;  %v2100_v55 = vmul.f32 %v5393_v5, %v2094_v27  ;;  %v2102_v45 = vmul.f32 %v5406_v8, %v2094_v27 }
 0xc6f   :  { %4223 = vmatpush3.bf16.xpose.msk.msra.mxu0 %vm5366_vm9, %v4218_v41  ;;  %v2104_v38 = vmul.f32 %v5417_v11, %v2094_v27  ;;  %v2105_v10 = vmul.f32 %v5417_v11, %v2095_v52  ;;  %v2106_v61 = vmul.f32 %v5428_v14, %v2094_v27  ;;  %v2107_v43 = vmul.f32 %v5428_v14, %v2095_v52 }
 0xc70   :  { %4001 = vmatprep.mubr.msk.f32.mxu0 %vm454_vm4, %v2096_v0  ;;  %v2108_v50 = vmul.f32 %v5439_v17, %v2094_v27  ;;  %v2109_v18 = vmul.f32 %v5439_v17, %v2095_v52  ;;  %v2110_v32 = vmul.f32 %v5450_v20, %v2094_v27  ;;  %v2111_v56 = vmul.f32 %v5450_v20, %v2095_v52 }
 0xc71   :  { %v2112_v57 = vmul.f32 %v5461_v26, %v2094_v27  ;;  %v2113_v21 = vmul.f32 %v5461_v26, %v2095_v52  ;;  %v2114_v28 = vmul.f32 %v5470_v29, %v2094_v27  ;;  %v2115_v58 = vmul.f32 %v5470_v29, %v2095_v52 }
 0xc72   :  { %v3996_v37 = vpop.f32.mrb[28].mxu1 }
 0xc73   :  { %v2091_v36 = vadd.f32 %v3996_v37, %v3542_v19  ;;  %v2085_v31 = vpop.f32.mrb[29].mxu1 }
 0xc74   :  { %v2086_v51 = vadd.f32 %v3542_v19, %v2085_v31 }
 0xc76   :  { %v4224_v12 = vpack.c.bf16 %v2091_v36, %v2086_v51  ;;  %4002 = vmatmul.mubr.msk.f32.vlgmr.msra.gmra.mrb[30].mxu0 %vm454_vm4, %v2097_v48 }
 0xc77   :  { %4004 = vmatprep.mubr.msk.f32.mxu0 %vm454_vm4, %v2098_v47 }
 0xc78   :  { %4225 = vmatprep.subr.bf16.mxu1 %v4224_v12 }
 0xc79   :  { %4227 = vmatpush3.bf16.msra.mxu1 %v4224_v12 }
 0xc7a   :  { %4005 = vmatmul.mubr.msk.f32.gmra.mrb[32].mxu0 %vm454_vm4, %v2099_v62 }
 0xc7b   :  { %4007 = vmatprep.mubr.msk.f32.mxu0 %vm454_vm4, %v2100_v55 }
 0xc7e   :  { %4008 = vmatmul.mubr.msk.f32.gmra.mrb[34].mxu0 %vm454_vm4, %v2101_v46 }
 0xc7f   :  { %4010 = vmatprep.mubr.msk.f32.mxu0 %vm454_vm4, %v2102_v45 }
 0xc82   :  { %4011 = vmatmul.mubr.msk.f32.gmra.mrb[36].mxu0 %vm454_vm4, %v2103_v9 }
 0xc83   :  { %4013 = vmatprep.mubr.msk.f32.mxu0 %vm454_vm4, %v2104_v38 }
 0xc86   :  { %4014 = vmatmul.mubr.msk.f32.gmra.mrb[38].mxu0 %vm454_vm4, %v2105_v10 }
 0xc87   :  { %4016 = vmatprep.mubr.msk.f32.mxu0 %vm454_vm4, %v2106_v61 }
 0xc8a   :  { %4017 = vmatmul.mubr.msk.f32.gmra.mrb[40].mxu0 %vm454_vm4, %v2107_v43 }
 0xc8b   :  { %4019 = vmatprep.mubr.msk.f32.mxu0 %vm454_vm4, %v2108_v50 }
 0xc8e   :  { %4020 = vmatmul.mubr.msk.f32.gmra.mrb[42].mxu0 %vm454_vm4, %v2109_v18 }
 0xc8f   :  { %4022 = vmatprep.mubr.msk.f32.mxu0 %vm454_vm4, %v2110_v32 }
 0xc92   :  { %4023 = vmatmul.mubr.msk.f32.gmra.mrb[44].mxu0 %vm454_vm4, %v2111_v56 }
 0xc93   :  { %4025 = vmatprep.mubr.msk.f32.mxu0 %vm454_vm4, %v2112_v57 }
 0xc96   :  { %4026 = vmatmul.mubr.msk.f32.gmra.mrb[46].mxu0 %vm454_vm4, %v2113_v21 }
 0xc97   :  { %4028 = vmatprep.mubr.msk.f32.mxu0 %vm454_vm4, %v2114_v28 }
 0xc9a   :  { %4029 = vmatmul.mubr.msk.f32.gmra.mrb[48].mxu0 %vm454_vm4, %v2115_v58 }
 0xd49   :  { %v4003_v30 = vpop.f32.mrb[30].mxu0 }
 0xd4a   :  { %v5872_v59 = vadd.f32 %v4003_v30, %v5484_v34  ;;  %v2248_v60 = vpop.f32.mrb[31].mxu0 }
 0xd4b   :  { %v5875_v1 = vadd.f32 %v2248_v60, %v5488_v35 }
 0xd4c   :  { %v2350_v4 = vsel %vm963_vm10, %v5872_v59, -inf }
 0xd4d   :  { %2351 = vmax.xlane.f32.xlu0 %v2350_v4  ;;  %v4006_v63 = vpop.f32.mrb[32].mxu0  ;;  %v2347_v42 = vsel %vm963_vm10, %v5875_v1, -inf }
 0xd4e   :  { %v5882_v49 = vadd.f32 %v4006_v63, %v5484_v34  ;;  %v2258_v39 = vpop.f32.mrb[33].mxu0  ;;  %2348 = vmax.xlane.f32.xlu1 %v2347_v42 }
 0xd4f   :  { %v5885_v13 = vadd.f32 %v2258_v39, %v5488_v35 }
 0xd50   :  { %v2356_v40 = vsel %vm963_vm10, %v5882_v49, -inf }
 0xd51   :  { %2357 = vmax.xlane.f32.xlu0 %v2356_v40  ;;  %v4009_v44 = vpop.f32.mrb[34].mxu0  ;;  %v2353_v3 = vsel %vm963_vm10, %v5885_v13, -inf }
 0xd52   :  { %v5892_v15 = vadd.f32 %v4009_v44, %v5484_v34  ;;  %v2268_v33 = vpop.f32.mrb[35].mxu0  ;;  %2354 = vmax.xlane.f32.xlu1 %v2353_v3 }
 0xd53   :  { %v5895_v24 = vadd.f32 %v2268_v33, %v5488_v35 }
 0xd54   :  { %v2362_v16 = vsel %vm963_vm10, %v5892_v15, -inf }
 0xd55   :  { %2363 = vmax.xlane.f32.xlu0 %v2362_v16  ;;  %v4012_v7 = vpop.f32.mrb[36].mxu0  ;;  %v2359_v27 = vsel %vm963_vm10, %v5895_v24, -inf }
 0xd56   :  { %v5902_v41 = vadd.f32 %v4012_v7, %v5484_v34  ;;  %v2278_v0 = vpop.f32.mrb[37].mxu0  ;;  %2360 = vmax.xlane.f32.xlu1 %v2359_v27 }
 0xd57   :  { %v5905_v52 = vadd.f32 %v2278_v0, %v5488_v35 }
 0xd58   :  { %v2368_v19 = vsel %vm963_vm10, %v5902_v41, -inf }
 0xd59   :  { %2369 = vmax.xlane.f32.xlu0 %v2368_v19  ;;  %v4015_v37 = vpop.f32.mrb[38].mxu0  ;;  %v2365_v36 = vsel %vm963_vm10, %v5905_v52, -inf }
 0xd5a   :  { %v5912_v31 = vadd.f32 %v4015_v37, %v5484_v34  ;;  %v2288_v51 = vpop.f32.mrb[39].mxu0  ;;  %2366 = vmax.xlane.f32.xlu1 %v2365_v36 }
 0xd5b   :  { %v5915_v48 = vadd.f32 %v2288_v51, %v5488_v35 }
 0xd5c   :  { %v2374_v47 = vsel %vm963_vm10, %v5912_v31, -inf }
 0xd5d   :  { %2375 = vmax.xlane.f32.xlu0 %v2374_v47  ;;  %v4018_v12 = vpop.f32.mrb[40].mxu0  ;;  %v2371_v62 = vsel %vm963_vm10, %v5915_v48, -inf }
 0xd5e   :  { %v5922_v55 = vadd.f32 %v4018_v12, %v5484_v34  ;;  %v2298_v46 = vpop.f32.mrb[41].mxu0  ;;  %2372 = vmax.xlane.f32.xlu1 %v2371_v62 }
 0xd5f   :  { %v5925_v45 = vadd.f32 %v2298_v46, %v5488_v35 }
 0xd60   :  { %v2380_v9 = vsel %vm963_vm10, %v5922_v55, -inf }
 0xd61   :  { %2381 = vmax.xlane.f32.xlu0 %v2380_v9  ;;  %v4021_v38 = vpop.f32.mrb[42].mxu0  ;;  %v2377_v10 = vsel %vm963_vm10, %v5925_v45, -inf }
 0xd62   :  { %v5932_v61 = vadd.f32 %v4021_v38, %v5484_v34  ;;  %v2308_v43 = vpop.f32.mrb[43].mxu0  ;;  %2378 = vmax.xlane.f32.xlu1 %v2377_v10 }
 0xd63   :  { %v5935_v50 = vadd.f32 %v2308_v43, %v5488_v35 }
 0xd64   :  { %v2386_v18 = vsel %vm963_vm10, %v5932_v61, -inf }
 0xd65   :  { %2387 = vmax.xlane.f32.xlu0 %v2386_v18  ;;  %v4024_v32 = vpop.f32.mrb[44].mxu0  ;;  %v2383_v56 = vsel %vm963_vm10, %v5935_v50, -inf }
 0xd66   :  { %v5942_v57 = vadd.f32 %v4024_v32, %v5484_v34  ;;  %v2318_v21 = vpop.f32.mrb[45].mxu0  ;;  %2384 = vmax.xlane.f32.xlu1 %v2383_v56 }
 0xd67   :  { %v5945_v28 = vadd.f32 %v2318_v21, %v5488_v35 }
 0xd68   :  { %v2392_v58 = vsel %vm963_vm10, %v5942_v57, -inf }
 0xd69   :  { %2393 = vmax.xlane.f32.xlu0 %v2392_v58  ;;  %v4027_v30 = vpop.f32.mrb[46].mxu0  ;;  %v2389_v60 = vsel %vm963_vm10, %v5945_v28, -inf }
 0xd6a   :  { %v5952_v4 = vadd.f32 %v4027_v30, %v5484_v34  ;;  %v2328_v63 = vpop.f32.mrb[47].mxu0  ;;  %2390 = vmax.xlane.f32.xlu1 %v2389_v60 }
 0xd6b   :  { %v5955_v42 = vadd.f32 %v2328_v63, %v5488_v35 }
 0xd6c   :  { %v2398_v39 = vsel %vm963_vm10, %v5952_v4, -inf }
 0xd6d   :  { %2399 = vmax.xlane.f32.xlu0 %v2398_v39  ;;  %v4030_v40 = vpop.f32.mrb[48].mxu0  ;;  %v2395_v44 = vsel %vm963_vm10, %v5955_v42, -inf }
 0xd6e   :  { %v5962_v3 = vadd.f32 %v4030_v40, %v5484_v34  ;;  %v2338_v33 = vpop.f32.mrb[49].mxu0  ;;  %2396 = vmax.xlane.f32.xlu1 %v2395_v44 }
 0xd6f   :  { %v5965_v16 = vadd.f32 %v2338_v33, %v5488_v35 }
 0xd70   :  { %v2404_v7 = vsel %vm963_vm10, %v5962_v3, -inf }
 0xd71   :  { %2405 = vmax.xlane.f32.xlu0 %v2404_v7  ;;  %v2401_v27 = vsel %vm963_vm10, %v5965_v16, -inf }
 0xd72   :  { %2402 = vmax.xlane.f32.xlu1 %v2401_v27 }
 0xdda   :  { %v2352_v0 = vpop.xlane.xlu0 %2351 }
 0xddb   :  { %v2408_v19 = vsub.f32 %v5872_v59, %v2352_v0  ;;  %v2349_v37 = vpop.xlane.xlu1 %2348 }
 0xddc   :  { %v2407_v34 = vsub.f32 %v5875_v1, %v2349_v37 }
 0xddd   :  { %v2429_v36 = vmul.f32 1.442695, %v2408_v19 }
 0xdde   :  { %v2427_v51 = vmul.f32 1.442695, %v2407_v34  ;;  %v2358_v47 = vpop.xlane.xlu0 %2357 }
 0xddf   :  { %4377 = vpow2.f32 %v2429_v36  ;;  %v2410_v35 = vsub.f32 %v5882_v49, %v2358_v47  ;;  %v2355_v12 = vpop.xlane.xlu1 %2354 }
 0xde0   :  { %4379 = vpow2.f32 %v2427_v51  ;;  %v2409_v62 = vsub.f32 %v5885_v13, %v2355_v12 }
 0xde1   :  { %v2433_v46 = vmul.f32 1.442695, %v2410_v35 }
 0xde2   :  { %v2431_v9 = vmul.f32 1.442695, %v2409_v62  ;;  %v2364_v38 = vpop.xlane.xlu0 %2363 }
 0xde3   :  { %4381 = vpow2.f32 %v2433_v46  ;;  %v2412_v10 = vsub.f32 %v5892_v15, %v2364_v38  ;;  %v2361_v59 = vpop.xlane.xlu1 %2360 }
 0xde4   :  { %4383 = vpow2.f32 %v2431_v9  ;;  %v2411_v1 = vsub.f32 %v5895_v24, %v2361_v59 }
 0xde5   :  { %v2437_v43 = vmul.f32 1.442695, %v2412_v10 }
 0xde6   :  { %v2435_v18 = vmul.f32 1.442695, %v2411_v1  ;;  %v2370_v32 = vpop.xlane.xlu0 %2369 }
 0xde7   :  { %4385 = vpow2.f32 %v2437_v43  ;;  %v2414_v49 = vsub.f32 %v5902_v41, %v2370_v32  ;;  %v2367_v56 = vpop.xlane.xlu1 %2366 }
 0xde8   :  { %4387 = vpow2.f32 %v2435_v18  ;;  %v2413_v13 = vsub.f32 %v5905_v52, %v2367_v56 }
 0xde9   :  { %v5979_v21 = vpop.eup %4377  ;;  %v2441_v58 = vmul.f32 1.442695, %v2414_v49 }
 0xdea   :  { %v5981_v30 = vpop.eup %4379  ;;  %v2439_v15 = vmul.f32 1.442695, %v2413_v13  ;;  %v2376_v60 = vpop.xlane.xlu0 %2375  ;;  %v2470_v24 = vsel %vm963_vm10, %v5979_v21, 0.0 }
 0xdeb   :  { %4389 = vpow2.f32 %v2441_v58  ;;  %v2416_v63 = vsub.f32 %v5912_v31, %v2376_v60  ;;  %2471 = vadd.xlane.f32.xlu0 %v2470_v24  ;;  %v2373_v39 = vpop.xlane.xlu1 %2372  ;;  %v2467_v41 = vsel %vm963_vm10, %v5981_v30, 0.0 }
 0xdec   :  { %4391 = vpow2.f32 %v2439_v15  ;;  %v2415_v52 = vsub.f32 %v5915_v48, %v2373_v39  ;;  %2468 = vadd.xlane.f32.xlu1 %v2467_v41 }
 0xded   :  { %v5989_v40 = vpop.eup %4381  ;;  %v2445_v44 = vmul.f32 1.442695, %v2416_v63 }
 0xdee   :  { %v5991_v33 = vpop.eup %4383  ;;  %v2443_v7 = vmul.f32 1.442695, %v2415_v52  ;;  %v2382_v27 = vpop.xlane.xlu0 %2381  ;;  %v2476_v0 = vsel %vm963_vm10, %v5989_v40, 0.0 }
 0xdef   :  { %4393 = vpow2.f32 %v2445_v44  ;;  %v2418_v31 = vsub.f32 %v5922_v55, %v2382_v27  ;;  %2477 = vadd.xlane.f32.xlu0 %v2476_v0  ;;  %v2379_v19 = vpop.xlane.xlu1 %2378  ;;  %v2473_v37 = vsel %vm963_vm10, %v5991_v33, 0.0 }
 0xdf0   :  { %4395 = vpow2.f32 %v2443_v7  ;;  %v2417_v48 = vsub.f32 %v5925_v45, %v2379_v19  ;;  %2474 = vadd.xlane.f32.xlu1 %v2473_v37 }
 0xdf1   :  { %v5999_v34 = vpop.eup %4385  ;;  %v2449_v36 = vmul.f32 1.442695, %v2418_v31 }
 0xdf2   :  { %v6001_v51 = vpop.eup %4387  ;;  %v2447_v47 = vmul.f32 1.442695, %v2417_v48  ;;  %v2388_v35 = vpop.xlane.xlu0 %2387  ;;  %v2482_v12 = vsel %vm963_vm10, %v5999_v34, 0.0 }
 0xdf3   :  { %4397 = vpow2.f32 %v2449_v36  ;;  %v2420_v55 = vsub.f32 %v5932_v61, %v2388_v35  ;;  %2483 = vadd.xlane.f32.xlu0 %v2482_v12  ;;  %v2385_v62 = vpop.xlane.xlu1 %2384  ;;  %v2479_v46 = vsel %vm963_vm10, %v6001_v51, 0.0 }
 0xdf4   :  { %4399 = vpow2.f32 %v2447_v47  ;;  %v2419_v45 = vsub.f32 %v5935_v50, %v2385_v62  ;;  %2480 = vadd.xlane.f32.xlu1 %v2479_v46 }
 0xdf5   :  { %v6009_v9 = vpop.eup %4389  ;;  %v2453_v38 = vmul.f32 1.442695, %v2420_v55 }
 0xdf6   :  { %v6011_v10 = vpop.eup %4391  ;;  %v2451_v59 = vmul.f32 1.442695, %v2419_v45  ;;  %v2394_v1 = vpop.xlane.xlu0 %2393  ;;  %v2488_v43 = vsel %vm963_vm10, %v6009_v9, 0.0 }
 0xdf7   :  { %4401 = vpow2.f32 %v2453_v38  ;;  %v2422_v61 = vsub.f32 %v5942_v57, %v2394_v1  ;;  %2489 = vadd.xlane.f32.xlu0 %v2488_v43  ;;  %v2391_v18 = vpop.xlane.xlu1 %2390  ;;  %v2485_v32 = vsel %vm963_vm10, %v6011_v10, 0.0 }
 0xdf8   :  { %4403 = vpow2.f32 %v2451_v59  ;;  %v2421_v50 = vsub.f32 %v5945_v28, %v2391_v18  ;;  %2486 = vadd.xlane.f32.xlu1 %v2485_v32 }
 0xdf9   :  { %v6019_v49 = vpop.eup %4393  ;;  %v2457_v56 = vmul.f32 1.442695, %v2422_v61 }
 0xdfa   :  { %v6021_v13 = vpop.eup %4395  ;;  %v2455_v58 = vmul.f32 1.442695, %v2421_v50  ;;  %v2400_v15 = vpop.xlane.xlu0 %2399  ;;  %v2494_v60 = vsel %vm963_vm10, %v6019_v49, 0.0 }
 0xdfb   :  { %4405 = vpow2.f32 %v2457_v56  ;;  %v2424_v57 = vsub.f32 %v5952_v4, %v2400_v15  ;;  %2495 = vadd.xlane.f32.xlu0 %v2494_v60  ;;  %v2397_v24 = vpop.xlane.xlu1 %2396  ;;  %v2491_v63 = vsel %vm963_vm10, %v6021_v13, 0.0 }
 0xdfc   :  { %4407 = vpow2.f32 %v2455_v58  ;;  %v2423_v28 = vsub.f32 %v5955_v42, %v2397_v24  ;;  %2492 = vadd.xlane.f32.xlu1 %v2491_v63 }
 0xdfd   :  { %v6029_v39 = vpop.eup %4397  ;;  %v2461_v41 = vmul.f32 1.442695, %v2424_v57 }
 0xdfe   :  { %v6031_v52 = vpop.eup %4399  ;;  %v2459_v44 = vmul.f32 1.442695, %v2423_v28  ;;  %v2406_v7 = vpop.xlane.xlu0 %2405  ;;  %v2500_v27 = vsel %vm963_vm10, %v6029_v39, 0.0 }
 0xdff   :  { %4409 = vpow2.f32 %v2461_v41  ;;  %v2426_v4 = vsub.f32 %v5962_v3, %v2406_v7  ;;  %2501 = vadd.xlane.f32.xlu0 %v2500_v27  ;;  %v2403_v0 = vpop.xlane.xlu1 %2402  ;;  %v2497_v31 = vsel %vm963_vm10, %v6031_v52, 0.0 }
 0xe00   :  { %4411 = vpow2.f32 %v2459_v44  ;;  %v2425_v42 = vsub.f32 %v5965_v16, %v2403_v0  ;;  %2498 = vadd.xlane.f32.xlu1 %v2497_v31 }
 0xe01   :  { %v6039_v19 = vpop.eup %4401  ;;  %v2465_v37 = vmul.f32 1.442695, %v2426_v4 }
 0xe02   :  { %v6041_v48 = vpop.eup %4403  ;;  %v2463_v36 = vmul.f32 1.442695, %v2425_v42  ;;  %v2506_v47 = vsel %vm963_vm10, %v6039_v19, 0.0 }
 0xe03   :  { %4413 = vpow2.f32 %v2465_v37  ;;  %2507 = vadd.xlane.f32.xlu0 %v2506_v47  ;;  %v2503_v3 = vsel %vm963_vm10, %v6041_v48, 0.0 }
 0xe04   :  { %4415 = vpow2.f32 %v2463_v36  ;;  %2504 = vadd.xlane.f32.xlu1 %v2503_v3 }
 0xe05   :  { %v6047_v35 = vpop.eup %4405 }
 0xe06   :  { %v6049_v16 = vpop.eup %4407  ;;  %v2512_v12 = vsel %vm963_vm10, %v6047_v35, 0.0 }
 0xe07   :  { %2513 = vadd.xlane.f32.xlu0 %v2512_v12  ;;  %v2509_v55 = vsel %vm963_vm10, %v6049_v16, 0.0 }
 0xe08   :  { %2510 = vadd.xlane.f32.xlu1 %v2509_v55 }
 0xe09   :  { %v6055_v62 = vpop.eup %4409 }
 0xe0a   :  { %v6057_v46 = vpop.eup %4411  ;;  %v2518_v45 = vsel %vm963_vm10, %v6055_v62, 0.0 }
 0xe0b   :  { %2519 = vadd.xlane.f32.xlu0 %v2518_v45  ;;  %v2515_v38 = vsel %vm963_vm10, %v6057_v46, 0.0 }
 0xe0c   :  { %2516 = vadd.xlane.f32.xlu1 %v2515_v38 }
 0xe0d   :  { %v6063_v59 = vpop.eup %4413 }
 0xe0e   :  { %v6065_v1 = vpop.eup %4415  ;;  %v2524_v43 = vsel %vm963_vm10, %v6063_v59, 0.0 }
 0xe0f   :  { %2525 = vadd.xlane.f32.xlu0 %v2524_v43  ;;  %v2521_v61 = vsel %vm963_vm10, %v6065_v1, 0.0 }
 0xe10   :  { %2522 = vadd.xlane.f32.xlu1 %v2521_v61 }
 0xe78   :  { %v2472_v18 = vpop.xlane.xlu0 %2471 }
 0xe79   :  { %4417 = vrcp.f32 %v2472_v18  ;;  %v2469_v32 = vpop.xlane.xlu1 %2468 }
 0xe7a   :  { %4419 = vrcp.f32 %v2469_v32 }
 0xe7c   :  { %v2478_v50 = vpop.xlane.xlu0 %2477 }
 0xe7d   :  { %4421 = vrcp.f32 %v2478_v50  ;;  %v2475_v56 = vpop.xlane.xlu1 %2474 }
 0xe7e   :  { %4423 = vrcp.f32 %v2475_v56 }
 0xe80   :  { %v2484_v58 = vpop.xlane.xlu0 %2483 }
 0xe81   :  { %4425 = vrcp.f32 %v2484_v58  ;;  %v2481_v15 = vpop.xlane.xlu1 %2480 }
 0xe82   :  { %4427 = vrcp.f32 %v2481_v15 }
 0xe83   :  { %v4418_v60 = vpop.eup %4417 }
 0xe84   :  { %v4420_v57 = vpop.eup %4419  ;;  %v2490_v24 = vpop.xlane.xlu0 %2489  ;;  %v2548_v41 = vmul.f32 %v4418_v60, %v5979_v21 }
 0xe85   :  { %4429 = vrcp.f32 %v2490_v24  ;;  %v2487_v63 = vpop.xlane.xlu1 %2486  ;;  %v2547_v28 = vmul.f32 %v4420_v57, %v5981_v30 }
 0xe86   :  { %4431 = vrcp.f32 %v2487_v63 }
 0xe87   :  { %v4422_v44 = vpop.eup %4421  ;;  %4035 = vmatprep.mubr.msk.f32.mxu1 %vm963_vm10, %v2547_v28 }
 0xe88   :  { %v4424_v7 = vpop.eup %4423  ;;  %v2496_v27 = vpop.xlane.xlu0 %2495  ;;  %4036 = vmatmul.mubr.msk.f32.vlgmr.msra.gmra.mrb[30].mxu1 %vm963_vm10, %v2548_v41  ;;  %v2550_v31 = vmul.f32 %v4422_v44, %v5989_v40 }
 0xe89   :  { %4433 = vrcp.f32 %v2496_v27  ;;  %v2493_v4 = vpop.xlane.xlu1 %2492  ;;  %v2549_v0 = vmul.f32 %v4424_v7, %v5991_v33 }
 0xe8a   :  { %4435 = vrcp.f32 %v2493_v4  ;;  %v2831_v4 = vld [vmem:[#allocation8 + $0x28] sm:$0xff] }
 0xe8b   :  { %v4426_v42 = vpop.eup %4425  ;;  %4038 = vmatprep.mubr.msk.f32.mxu1 %vm963_vm10, %v2549_v0  ;;  %v2832_v0 = vld [vmem:[#allocation8 + $0x30] sm:$0xff] }
 0xe8c   :  { %v4428_v30 = vpop.eup %4427  ;;  %v2502_v21 = vpop.xlane.xlu0 %2501  ;;  %4039 = vmatmul.mubr.msk.f32.gmra.mrb[32].mxu1 %vm963_vm10, %v2550_v31  ;;  %v2552_v47 = vmul.f32 %v4426_v42, %v5999_v34  ;;  %v4228_v31 = vpack.c.bf16 %v2832_v0, %v2831_v4 }
 0xe8d   :  { %4437 = vrcp.f32 %v2502_v21  ;;  %v2499_v37 = vpop.xlane.xlu1 %2498  ;;  %v2551_v36 = vmul.f32 %v4428_v30, %v6001_v51  ;;  %v2835_v30 = vld [vmem:[#allocation8 + $0x48] sm:$0xff] }
 0xe8e   :  { %4439 = vrcp.f32 %v2499_v37  ;;  %4229 = vmatprep.subr.bf16.mxu1 %v4228_v31 }
 0xe8f   :  { %v4430_v3 = vpop.eup %4429  ;;  %4041 = vmatprep.mubr.msk.f32.mxu1 %vm963_vm10, %v2551_v36  ;;  %4231 = vmatpush3.bf16.msra.mxu1 %v4228_v31 }
 0xe90   :  { %v4432_v33 = vpop.eup %4431  ;;  %v2508_v12 = vpop.xlane.xlu0 %2507  ;;  %4042 = vmatmul.mubr.msk.f32.gmra.mrb[34].mxu1 %vm963_vm10, %v2552_v47  ;;  %v2554_v45 = vmul.f32 %v4430_v3, %v6009_v9 }
 0xe91   :  { %4441 = vrcp.f32 %v2508_v12  ;;  %v2505_v40 = vpop.xlane.xlu1 %2504  ;;  %v2553_v55 = vmul.f32 %v4432_v33, %v6011_v10 }
 0xe92   :  { %4443 = vrcp.f32 %v2505_v40 }
 0xe93   :  { %v4434_v38 = vpop.eup %4433  ;;  %4044 = vmatprep.mubr.msk.f32.mxu1 %vm963_vm10, %v2553_v55 }
 0xe94   :  { %v4436_v51 = vpop.eup %4435  ;;  %v2514_v43 = vpop.xlane.xlu0 %2513  ;;  %4045 = vmatmul.mubr.msk.f32.gmra.mrb[36].mxu1 %vm963_vm10, %v2554_v45  ;;  %v2556_v18 = vmul.f32 %v4434_v38, %v6019_v49 }
 0xe95   :  { %4445 = vrcp.f32 %v2514_v43  ;;  %v2511_v34 = vpop.xlane.xlu1 %2510  ;;  %v2555_v61 = vmul.f32 %v4436_v51, %v6021_v13 }
 0xe96   :  { %4447 = vrcp.f32 %v2511_v34 }
 0xe97   :  { %v4438_v32 = vpop.eup %4437  ;;  %4047 = vmatprep.mubr.msk.f32.mxu1 %vm963_vm10, %v2555_v61 }
 0xe98   :  { %v4440_v10 = vpop.eup %4439  ;;  %v2520_v50 = vpop.xlane.xlu0 %2519  ;;  %4048 = vmatmul.mubr.msk.f32.gmra.mrb[38].mxu1 %vm963_vm10, %v2556_v18  ;;  %v2558_v58 = vmul.f32 %v4438_v32, %v6029_v39 }
 0xe99   :  { %4449 = vrcp.f32 %v2520_v50  ;;  %v2517_v9 = vpop.xlane.xlu1 %2516  ;;  %v2557_v56 = vmul.f32 %v4440_v10, %v6031_v52 }
 0xe9a   :  { %4451 = vrcp.f32 %v2517_v9 }
 0xe9b   :  { %v4442_v15 = vpop.eup %4441  ;;  %4050 = vmatprep.mubr.msk.f32.mxu1 %vm963_vm10, %v2557_v56 }
 0xe9c   :  { %v4444_v13 = vpop.eup %4443  ;;  %v2526_v60 = vpop.xlane.xlu0 %2525  ;;  %4051 = vmatmul.mubr.msk.f32.gmra.mrb[40].mxu1 %vm963_vm10, %v2558_v58  ;;  %v2560_v24 = vmul.f32 %v4442_v15, %v6039_v19 }
 0xe9d   :  { %4453 = vrcp.f32 %v2526_v60  ;;  %v2523_v49 = vpop.xlane.xlu1 %2522  ;;  %v2559_v57 = vmul.f32 %v4444_v13, %v6041_v48 }
 0xe9e   :  { %4455 = vrcp.f32 %v2523_v49 }
 0xe9f   :  { %v4446_v63 = vpop.eup %4445  ;;  %4053 = vmatprep.mubr.msk.f32.mxu1 %vm963_vm10, %v2559_v57 }
 0xea0   :  { %v4448_v52 = vpop.eup %4447  ;;  %4054 = vmatmul.mubr.msk.f32.gmra.mrb[42].mxu1 %vm963_vm10, %v2560_v24  ;;  %v2562_v28 = vmul.f32 %v4446_v63, %v6047_v35 }
 0xea1   :  { %v2561_v39 = vmul.f32 %v4448_v52, %v6049_v16 }
 0xea3   :  { %v4450_v41 = vpop.eup %4449  ;;  %4056 = vmatprep.mubr.msk.f32.mxu1 %vm963_vm10, %v2561_v39 }
 0xea4   :  { %v4452_v44 = vpop.eup %4451  ;;  %4057 = vmatmul.mubr.msk.f32.gmra.mrb[44].mxu1 %vm963_vm10, %v2562_v28  ;;  %v2564_v19 = vmul.f32 %v4450_v41, %v6055_v62  ;;  %v2833_v62 = vld [vmem:[#allocation8 + $0x38] sm:$0xff] }
 0xea5   :  { %v2563_v48 = vmul.f32 %v4452_v44, %v6057_v46  ;;  %v2834_v46 = vld [vmem:[#allocation8 + $0x40] sm:$0xff] }
 0xea6   :  { %v4232_v42 = vpack.c.bf16 %v2834_v46, %v2833_v62 }
 0xea7   :  { %v4454_v7 = vpop.eup %4453  ;;  %4059 = vmatprep.mubr.msk.f32.mxu1 %vm963_vm10, %v2563_v48 }
 0xea8   :  { %v4456_v27 = vpop.eup %4455  ;;  %4060 = vmatmul.mubr.msk.f32.gmra.mrb[46].mxu1 %vm963_vm10, %v2564_v19  ;;  %v2566_v35 = vmul.f32 %v4454_v7, %v6063_v59  ;;  %4233 = vmatprep.subr.bf16.mxu1 %v4232_v42 }
 0xea9   :  { %v2565_v16 = vmul.f32 %v4456_v27, %v6065_v1  ;;  %4235 = vmatpush3.bf16.msra.mxu1 %v4232_v42 }
 0xeaa   :  { %4073 = vmatprep.subr.mxu1 %v2835_v30 }
 0xeab   :  { %4062 = vmatprep.mubr.msk.f32.mxu1 %vm963_vm10, %v2565_v16 }
 0xeac   :  { %4063 = vmatmul.mubr.msk.f32.gmra.mrb[48].mxu1 %vm963_vm10, %v2566_v35 }
 0xead   :  { %4074 = vmatpush3.msra.mxu1 %v2835_v30 }
 0xf5b   :  { %v4037_v1 = vpop.f32.mrb[30].mxu1 }
 0xf5c   :  { %v2693_v21 = vpop.f32.mrb[31].mxu1  ;;  %v2793_v37 = vmul.f32 %v4037_v1, %v5357_v53 }
 0xf5d   :  { %v2792_v3 = vmul.f32 %v5357_v53, %v2693_v21 }
 0xf5f   :  { %v4040_v59 = vpop.f32.mrb[32].mxu1 }
 0xf60   :  { %v2795_v36 = vmul.f32 %v4040_v59, %v5382_v2  ;;  %v2703_v47 = vpop.f32.mrb[33].mxu1 }
 0xf61   :  { %v2794_v33 = vmul.f32 %v5382_v2, %v2703_v47 }
 0xf62   :  { %v2797_v12 = vadd.f32 %v2795_v36, %v2793_v37 }
 0xf63   :  { %v2796_v40 = vadd.f32 %v2794_v33, %v2792_v3  ;;  %v4043_v55 = vpop.f32.mrb[34].mxu1 }
 0xf64   :  { %v2799_v45 = vmul.f32 %v4043_v55, %v5393_v5  ;;  %v2713_v38 = vpop.f32.mrb[35].mxu1  ;;  %v2976_v55 = vld [vmem:[#allocation14 + $0x38] sm:$0xff] }
 0xf65   :  { %v2798_v51 = vmul.f32 %v5393_v5, %v2713_v38  ;;  %v2977_v38 = vld [vmem:[#allocation14 + $0x40] sm:$0xff] }
 0xf66   :  { %v2801_v43 = vadd.f32 %v2799_v45, %v2797_v12  ;;  %v2974_v12 = vld [vmem:[#allocation14 + $0x28] sm:$0xff] }
 0xf67   :  { %v2800_v34 = vadd.f32 %v2798_v51, %v2796_v40  ;;  %v4046_v61 = vpop.f32.mrb[36].mxu1  ;;  %v2975_v40 = vld [vmem:[#allocation14 + $0x30] sm:$0xff]  ;;  %v4240_v51 = vpack.c.bf16 %v2977_v38, %v2976_v55 }
 0xf68   :  { %v2803_v18 = vmul.f32 %v4046_v61, %v5406_v8  ;;  %v2723_v32 = vpop.f32.mrb[37].mxu1  ;;  %v4236_v45 = vpack.c.bf16 %v2975_v40, %v2974_v12 }
 0xf69   :  { %v2802_v10 = vmul.f32 %v5406_v8, %v2723_v32 }
 0xf6a   :  { %v2805_v50 = vadd.f32 %v2803_v18, %v2801_v43  ;;  %4237 = vmatprep.subr.bf16.mxu0 %v4236_v45 }
 0xf6b   :  { %v2804_v53 = vadd.f32 %v2802_v10, %v2800_v34  ;;  %v4049_v9 = vpop.f32.mrb[38].mxu1  ;;  %4239 = vmatpush3.bf16.msra.mxu0 %v4236_v45 }
 0xf6c   :  { %v2807_v2 = vmul.f32 %v4049_v9, %v5417_v11  ;;  %v2733_v56 = vpop.f32.mrb[39].mxu1  ;;  %4241 = vmatprep.subr.bf16.mxu0 %v4240_v51  ;;  %v2978_v9 = vld [vmem:[#allocation14 + $0x48] sm:$0xff] }
 0xf6d   :  { %v2806_v58 = vmul.f32 %v5417_v11, %v2733_v56  ;;  %v3072_v56 = vld [vmem:[#allocation17 + $0x30] sm:$0xff] }
 0xf6e   :  { %v2809_v15 = vadd.f32 %v2807_v2, %v2805_v50  ;;  %v3071_v2 = vld [vmem:[#allocation17 + $0x28] sm:$0xff] }
 0xf6f   :  { %v2808_v13 = vadd.f32 %v2806_v58, %v2804_v53  ;;  %v4052_v60 = vpop.f32.mrb[40].mxu1  ;;  %4243 = vmatpush3.bf16.msra.mxu0 %v4240_v51  ;;  %v4244_v58 = vpack.c.bf16 %v3072_v56, %v3071_v2  ;;  %v4859_v51 = vmov 0.0|0.0   ;;  %v437_v56 = vshrl.u32 %v275_v22, 7  ;;  %v3290_v22 = vld [vmem:[%s6212_s18 + $0x20] sm:$0xff] }
 0xf70   :  { %v2811_v5 = vmul.f32 %v4052_v60, %v5428_v14  ;;  %v2743_v49 = vpop.f32.mrb[41].mxu1  ;;  %4086 = vmatprep.subr.mxu0 %v2978_v9 }
 0xf71   :  { %v2810_v57 = vmul.f32 %v5428_v14, %v2743_v49  ;;  %4245 = vmatprep.subr.bf16.mxu1 %v4244_v58 }
 0xf72   :  { %v2813_v24 = vadd.f32 %v2811_v5, %v2809_v15 }
 0xf73   :  { %v2812_v63 = vadd.f32 %v2810_v57, %v2808_v13  ;;  %v4055_v52 = vpop.f32.mrb[42].mxu1  ;;  %4087 = vmatpush3.msra.mxu0 %v2978_v9 }
 0xf74   :  { %v2815_v8 = vmul.f32 %v4055_v52, %v5439_v17  ;;  %v2753_v39 = vpop.f32.mrb[43].mxu1  ;;  %4255 = vmatprep.subr.bf16.mxu0 %v4859_v51 }
 0xf75   :  { %v2814_v28 = vmul.f32 %v5439_v17, %v2753_v39 }
 0xf76   :  { %v2817_v41 = vadd.f32 %v2815_v8, %v2813_v24 }
 0xf77   :  { %v2816_v44 = vadd.f32 %v2814_v28, %v2812_v63  ;;  %v4058_v48 = vpop.f32.mrb[44].mxu1  ;;  %v3590_v63 = vld [vmem:[#allocation11 + $0x1] ss:$0 sm:$0xff]  ;;  %v3591_v28 = vld [vmem:[#allocation13 + $0x1] ss:$0 sm:$0xff] }
 0xf78   :  { %v2819_v11 = vmul.f32 %v4058_v48, %v5450_v20  ;;  %v2763_v19 = vpop.f32.mrb[45].mxu1 }
 0xf79   :  { %v2818_v7 = vmul.f32 %v5450_v20, %v2763_v19  ;;  %v3587_v20 = vld [vmem:[#allocation10 + $0x1] ss:$0 sm:$0xff]  ;;  %v3073_v19 = vld [vmem:[#allocation17 + $0x38] sm:$0xff] }
 0xf7a   :  { %v2821_v27 = vadd.f32 %v2819_v11, %v2817_v41 }
 0xf7b   :  { %v2820_v16 = vadd.f32 %v2818_v7, %v2816_v44  ;;  %v4061_v35 = vpop.f32.mrb[46].mxu1  ;;  %v3074_v7 = vld [vmem:[#allocation17 + $0x40] sm:$0xff] }
 0xf7c   :  { %v2823_v14 = vmul.f32 %v4061_v35, %v5461_v26  ;;  %v2773_v4 = vpop.f32.mrb[47].mxu1  ;;  %v3592_v35 = vld [vmem:[#allocation16 + $0x1] ss:$0 sm:$0xff] }
 0xf7d   :  { %v2822_v0 = vmul.f32 %v5461_v26, %v2773_v4 }
 0xf7e   :  { %v2825_v31 = vadd.f32 %v2823_v14, %v2821_v27  ;;  %v4248_v27 = vpack.c.bf16 %v3074_v7, %v3073_v19 }
 0xf7f   :  { %v2824_v62 = vadd.f32 %v2822_v0, %v2820_v16  ;;  %v4064_v46 = vpop.f32.mrb[48].mxu1  ;;  %v3075_v16 = vld [vmem:[#allocation17 + $0x48] sm:$0xff] }
 0xf80   :  { %v2827_v17 = vmul.f32 %v4064_v46, %v5470_v29  ;;  %v2783_v42 = vpop.f32.mrb[49].mxu1 }
 0xf81   :  { %v2826_v30 = vmul.f32 %v5470_v29, %v2783_v42 }
 0xf82   :  { %v2829_v1 = vadd.f32 %v2827_v17, %v2825_v31  ;;  %v3595_v17 = vld [vmem:[#allocation19 + $0x1] ss:$0 sm:$0xff] }
 0xf83   :  { %v2828_v21 = vadd.f32 %v2826_v30, %v2824_v62 }
 0xf85   :  { %4075 = vmatprep.mubr.msk.f32.mxu1 %vm454_vm4, %v2828_v21 }
 0xf86   :  { %4076 = vmatmul.mubr.msk.f32.vlgmr.msra.gmra.mrb[50].mxu1 %vm454_vm4, %v2829_v1 }
 0xf87   :  { %4247 = vmatpush3.bf16.msra.mxu1 %v4244_v58 }
 0xf88   :  { %4249 = vmatprep.subr.bf16.mxu1 %v4248_v27 }
 0xf8b   :  { %4251 = vmatpush3.bf16.msra.mxu1 %v4248_v27 }
 0xf8c   :  { %4099 = vmatprep.subr.mxu1 %v3075_v16 }
 0xf8f   :  { %4100 = vmatpush3.msra.mxu1 %v3075_v16 }
 0xf90   :  { %4252 = vmatprep.subr.bf16.mxu1 %v4859_v51 }
0x1059   :  { %v4077_v59 = vpop.f32.mrb[50].mxu1 }
0x105a   :  { %v2922_v37 = vadd.f32 %v4077_v59, %v3587_v20  ;;  %v2916_v36 = vpop.f32.mrb[51].mxu1 }
0x105b   :  { %v2917_v47 = vadd.f32 %v3587_v20, %v2916_v36 }
0x105c   :  { %v2926_v26 = vadd.f32 %v2922_v37, %v5810_v6 }
0x105d   :  { %v2925_v3 = vadd.f32 %v2917_v47, %v5808_v54 }
0x105e   :  { %v2934_v33 = vsel %vm454_vm4, %v2926_v26, 0.0 }
0x105f   :  { %2935 = vadd.xlane.f32.xlu0 %v2934_v33  ;;  %v2931_v29 = vsel %vm454_vm4, %v2925_v3, 0.0 }
0x1060   :  { %2932 = vadd.xlane.f32.xlu1 %v2931_v29 }
0x10ec   :  { %v2936_v43 = vpop.xlane.xlu0 %2935 }
0x10ed   :  { %v2938_v6 = vmul.f32 0.025, %v2936_v43  ;;  %v2933_v34 = vpop.xlane.xlu1 %2932  ;;  %v3286_v43 = vld [vmem:[%s6212_s18] sm:$0xff] }
0x10ee   :  { %v2937_v54 = vmul.f32 0.025, %v2933_v34  ;;  %v3288_v34 = vld [vmem:[%s6212_s18 + $0x10] sm:$0xff] }
0x10ef   :  { %v2940_v61 = vsub.f32 %v2926_v26, %v2938_v6  ;;  %v3287_v6 = vld [vmem:[%s6212_s18 + $0x8] sm:$0xff] }
0x10f0   :  { %v2939_v18 = vsub.f32 %v2925_v3, %v2937_v54  ;;  %v4256_v54 = vpack.c.bf16 %v3287_v6, %v3286_v43 }
0x10f1   :  { %v2942_v32 = vmul.f32 %v2940_v61, %v2940_v61 }
0x10f2   :  { %v2941_v10 = vmul.f32 %v2939_v18, %v2939_v18 }
0x10f3   :  { %v2946_v50 = vsel %vm454_vm4, %v2942_v32, 0.0 }
0x10f4   :  { %2947 = vadd.xlane.f32.xlu0 %v2946_v50  ;;  %v2943_v53 = vsel %vm454_vm4, %v2941_v10, 0.0 }
0x10f5   :  { %2944 = vadd.xlane.f32.xlu1 %v2943_v53 }
0x1181   :  { %v2948_v15 = vpop.xlane.xlu0 %2947 }
0x1182   :  { %v2950_v13 = vmul.f32 0.025, %v2948_v15  ;;  %v2945_v60 = vpop.xlane.xlu1 %2944  ;;  %v3598_v15 = vld [vmem:[#allocation20 + $0x1] ss:$0 sm:$0xff] }
0x1183   :  { %v2949_v5 = vmul.f32 0.025, %v2945_v60 }
0x1184   :  { %v2952_v49 = vadd.f32 1e-05, %v2950_v13 }
0x1185   :  { %v2951_v57 = vadd.f32 1e-05, %v2949_v5 }
0x1186   :  { %4457 = vrsqrt.f32 %v2952_v49  ;;  %v3599_v49 = vld [vmem:[#allocation22 + $0x1] ss:$0 sm:$0xff] }
0x1187   :  { %4459 = vrsqrt.f32 %v2951_v57 }
0x1190   :  { %v4458_v24 = vpop.eup %4457 }
0x1191   :  { %v4460_v52 = vpop.eup %4459  ;;  %v2956_v8 = vmul.f32 %v4458_v24, %v2940_v61  ;;  %v3289_v61 = vld [vmem:[%s6212_s18 + $0x18] sm:$0xff]  ;;  %v438_v24 = vmul.u32 8, %v437_v56  ;;  %s4861_s18 = smov [#allocation26]  }
0x1192   :  { %v2955_v39 = vmul.f32 %v4460_v52, %v2939_v18  ;;  %v4259_v18 = vpack.c.bf16 %v3289_v61, %v3288_v34 }
0x1193   :  { %v2964_v41 = vmul.f32 %v3590_v63, %v2956_v8  ;;  %vm439_vm9 = vcmp.eq.s32.totalorder %v5296_v23, %v438_v24 }
0x1194   :  { %v2963_v44 = vmul.f32 %v3590_v63, %v2955_v39 }
0x1195   :  { %v2972_v11 = vadd.f32 %v3591_v28, %v2964_v41 }
0x1196   :  { %v2971_v48 = vadd.f32 %v3591_v28, %v2963_v44  ;;  %v3456_v28 = vsel %vm439_vm9, 1.0, %v4857_v25 }
0x1198   :  { %4088 = vmatprep.mubr.msk.f32.mxu0 %vm454_vm4, %v2971_v48 }
0x1199   :  { %4089 = vmatmul.mubr.msk.f32.vlgmr.msra.gmra.mrb[50].mxu0 %vm454_vm4, %v2972_v11 }
0x119a   :  { %4121 = vmatprep.mubr.msk.f32.mxu0 %vm4860_vm7, %v4857_v25  ;;  %4257 = vmatpush3.bf16.msra.mxu0 %v4256_v54 }
0x119b   :  { %4258 = vmatprep.subr.bf16.mxu0 %v4859_v51 }
0x119e   :  { %4260 = vmatpush3.bf16.msra.mxu0 %v4259_v18 }
0x119f   :  { %4119 = vmatprep.subr.mxu0 %v4857_v25 }
0x11a2   :  { %4120 = vmatpush3.msra.mxu0 %v3290_v22 }
0x126c   :  { %v4090_v14 = vpop.f32.mrb[50].mxu0 }
0x126d   :  { %v3065_v4 = vadd.f32 %v4090_v14, %v3592_v35  ;;  %v3059_v0 = vpop.f32.mrb[51].mxu0 }
0x126e   :  { %v3060_v31 = vadd.f32 %v3592_v35, %v3059_v0 }
0x126f   :  { %v3069_v46 = vmax.f32 %v3065_v4, 0.0 }
0x1270   :  { %v3068_v62 = vmax.f32 %v3060_v31, 0.0 }
0x1272   :  { %4101 = vmatprep.mubr.msk.f32.mxu1 %vm454_vm4, %v3068_v62 }
0x1273   :  { %4102 = vmatmul.mubr.msk.f32.vlgmr.msra.gmra.mrb[52].mxu1 %vm454_vm4, %v3069_v46 }
0x1274   :  { %4108 = vmatprep.mubr.msk.f32.mxu1 %vm4860_vm7, %v4857_v25 }
0x1346   :  { %v4103_v42 = vpop.f32.mrb[52].mxu1 }
0x1347   :  { %v3162_v30 = vadd.f32 %v4103_v42, %v3595_v17  ;;  %v3156_v1 = vpop.f32.mrb[53].mxu1 }
0x1348   :  { %v3157_v21 = vadd.f32 %v3595_v17, %v3156_v1  ;;  %v3603_v17 = vld [vmem:[#allocation23] ss:$0 sm:$0xff] }
0x1349   :  { %v3166_v20 = vadd.f32 %v3162_v30, %v2972_v11  ;;  %v3604_v30 = vld [vmem:[#allocation25] ss:$0 sm:$0xff] }
0x134a   :  { %v3165_v59 = vadd.f32 %v3157_v21, %v2971_v48  ;;  %v3601_v48 = vld [vmem:[%s6213_s19] ss:$0 sm:$0xff]  ;;  %s3421_s19 = sshll.u32 %s4861_s18, 4  ;;  %s3422_s19 = int_to_ptr.vmem [resolvable:$true] %s3421_s19 }
0x134b   :  { %v3174_v37 = vsel %vm454_vm4, %v3166_v20, 0.0  ;;  %s4797_s15 = scalar_lea.vmem %s3422_s19, 32  ;;  %p4802_p9 = scmp.lt.s32.totalorder %s3422_s19, %s3422_s19 }
0x134c   :  { %3175 = vadd.xlane.f32.xlu0 %v3174_v37  ;;  %v3171_v36 = vsel %vm454_vm4, %v3165_v59, 0.0  ;;  %p4798_p8 = scmp.ne.s32.totalorder %s3422_s19, %s4797_s15  ;;  %p4803_p10 = scmp.lt.s32.totalorder %s4797_s15, %s4797_s15 }
0x134d   :  { %3172 = vadd.xlane.f32.xlu1 %v3171_v36 }
0x134e   :  { %p4804_p11 = por %p4803_p10, %p4802_p9 }
0x1350   :  { %p4805_p12 = pnand %p4804_p11, %p4798_p8 }
0x13d9   :  { %v3176_v47 = vpop.xlane.xlu0 %3175 }
0x13da   :  { %v3178_v26 = vmul.f32 0.025, %v3176_v47  ;;  %v3173_v3 = vpop.xlane.xlu1 %3172 }
0x13db   :  { %v3177_v33 = vmul.f32 0.025, %v3173_v3 }
0x13dc   :  { %v3180_v29 = vsub.f32 %v3166_v20, %v3178_v26 }
0x13dd   :  { %v3179_v12 = vsub.f32 %v3165_v59, %v3177_v33  ;;  %v3403_v59 = vcvt.s32.f32 %v5296_v23 }
0x13de   :  { %v3182_v40 = vmul.f32 %v3180_v29, %v3180_v29 }
0x13df   :  { %v3181_v55 = vmul.f32 %v3179_v12, %v3179_v12 }
0x13e0   :  { %v3186_v45 = vsel %vm454_vm4, %v3182_v40, 0.0 }
0x13e1   :  { %3187 = vadd.xlane.f32.xlu0 %v3186_v45  ;;  %v3183_v38 = vsel %vm454_vm4, %v3181_v55, 0.0 }
0x13e2   :  { %3184 = vadd.xlane.f32.xlu1 %v3183_v38 }
0x146e   :  { %v3188_v32 = vpop.xlane.xlu0 %3187 }
0x146f   :  { %v3190_v10 = vmul.f32 0.025, %v3188_v32  ;;  %v3185_v50 = vpop.xlane.xlu1 %3184 }
0x1470   :  { %v3189_v53 = vmul.f32 0.025, %v3185_v50 }
0x1471   :  { %v3192_v9 = vadd.f32 1e-05, %v3190_v10 }
0x1472   :  { %v3191_v2 = vadd.f32 1e-05, %v3189_v53 }
0x1473   :  { %4461 = vrsqrt.f32 %v3192_v9 }
0x1474   :  { %4463 = vrsqrt.f32 %v3191_v2 }
0x147d   :  { %v4462_v58 = vpop.eup %4461 }
0x147e   :  { %v4464_v13 = vpop.eup %4463  ;;  %v3196_v60 = vmul.f32 %v4462_v58, %v3180_v29 }
0x147f   :  { %v3195_v5 = vmul.f32 %v4464_v13, %v3179_v12 }
0x1480   :  { %v3204_v57 = vmul.f32 %v3598_v15, %v3196_v60 }
0x1481   :  { %v3203_v63 = vmul.f32 %v3598_v15, %v3195_v5 }
0x1482   :  { %v3212_v52 = vadd.f32 %v3599_v49, %v3204_v57 }
0x1483   :  { %v3211_v8 = vadd.f32 %v3599_v49, %v3203_v63 }
0x1485   :  { %v4253_v39 = vpack.c.bf16 %v3212_v52, %v3211_v8 }
0x1487   :  { %4254 = vmatpush3.bf16.msra.mxu1 %v4253_v39 }
0x148a   :  { %4109 = vmatmul.mubr.msk.f32.vlgmr.msra.gmra.mrb[54].mxu1 %vm963_vm10, %v3456_v28 }
0x155d   :  { %v3282_v41 = vpop.f32.mrb[54].mxu1 }
0x155e   :  { %v4110_v44 = vpop.f32.mrb[55].mxu1  ;;  %4122 = vmatmul.mubr.msk.f32.vlgmr.msra.gmra.mrb[52].mxu0 %vm454_vm4, %v3282_v41 }
0x1631   :  { %v3367_v11 = vpop.f32.mrb[52].mxu0 }
0x1632   :  { %v3368_v19 = vadd.f32 %v3601_v48, %v3367_v11  ;;  %v4123_v7 = vpop.f32.mrb[53].mxu0 }
0x1634   :  { %v3374_v25 = vsel %vm3373_vm11, %v3368_v19, 0.0 }
0x1635   :  { %3375 = vadd.xlane.f32.xlu1 %v3374_v25 }
0x16c2   :  { %v3376_v27 = vpop.xlane.xlu1 %3375 }
0x16c3   :  { %v3378_v16 = vmul.f32 0.125, %v3376_v27 }
0x16c5   :  { %v3379_v35 = vsub.f32 %v3368_v19, %v3378_v16 }
0x16c7   :  { %v3380_v14 = vmul.f32 %v3379_v35, %v3379_v35 }
0x16c9   :  { %v3381_v4 = vsel %vm3373_vm11, %v3380_v14, 0.0 }
0x16ca   :  { %3382 = vadd.xlane.f32.xlu0 %v3381_v4 }
0x1757   :  { %v3383_v0 = vpop.xlane.xlu0 %3382 }
0x1758   :  { %v3384_v31 = vmul.f32 0.125, %v3383_v0 }
0x175a   :  { %v3385_v62 = vadd.f32 1e-05, %v3384_v31 }
0x175c   :  { %4465 = vrsqrt.f32 %v3385_v62 }
0x1766   :  { %v4466_v46 = vpop.eup %4465 }
0x1767   :  { %v3387_v42 = vmul.f32 %v4466_v46, %v3379_v35 }
0x1769   :  { %v3394_v1 = vmul.f32 %v3603_v17, %v3387_v42 }
0x176b   :  { %v3401_v21 = vadd.f32 %v3604_v30, %v3394_v1 }
0x176d   :  { %v3404_v20 = vsel %vm3373_vm11, %v3401_v21, -inf  ;;  %3402 = vst.msk [vmem:[#allocation26] sm:$0x3] %vm3373_vm11, %v3401_v21 }
0x176e   :  { %3405 = vmax.xlane.f32.xlu1 %v3404_v20 }
0x17fb   :  { %v3406_v37 = vpop.xlane.xlu1 %3405 }
0x17fc   :  { %vm3407_vm4 = vcmp.eq.f32.partialorder %v3401_v21, %v3406_v37 }
0x17fd   :  { %v3408_v36 = vsel %vm3407_vm4, %v3403_v59, 8.0 }
0x17fe   :  { %v3409_v47 = vsel %vm3373_vm11, %v3408_v36, inf }
0x17ff   :  { %3410 = vmin.xlane.f32.xlu0 %v3409_v47 }
0x1800   :  { %4808 = shalt.err (!%p4805_p12)
}
0x1801   :  { %s4809_s26 = scalar_lea.hbm %s6216_s22, 32 }
0x1802   :  { %p4810_p13 = scmp.ne.s32.totalorder %s6216_s22, %s4809_s26  ;;  %p4813_p0 = scmp.lt.u32.totalorder %s4809_s26, %s6216_s22 }
0x1804   :  { %p4815_p1 = pnand %p4813_p0, %p4810_p13 }
0x1806   :  { %4818 = shalt.err (!%p4815_p1)
}
0x1807   :  { %3424 = dma.vmem_to_hbm [thread:$0]  %s3422_s19, 32, %s6216_s22, [#allocation4]   ;;  %vm3413_vm12 = vcmask 1024  }
0x1808   :  { %s6253_s17 = sld [smem:[#allocation44_spill]] }
0x188c   :  { %v3411_v23 = vpop.xlane.xlu0 %3410 }
0x188d   :  { %v4261_v26 = vtrunc.f32 %v3411_v23 }
0x188f   :  { %v4262_v3 = vcvt.f32.s32 %v4261_v26 }
0x1891   :  { %3414 = vst.msk [vmem:[%s6253_s17] sm:$0x3] %vm3413_vm12, %v4262_v3 }
0x1892   :  { %4835 = dma.done.wait [#allocation4], 32  }
0x1893   :  { %4836 = vsyncadd [#allocation4], 4294967264 }
0x1894   :  { %3432 = vsyncpa [#allocation3], 1 }
0x1895   :  { %3433 = vsyncpa [#allocation6], 1 }
0x1896   :  { %3434 = vsyncpa [#allocation9], 1 }
0x1897   :  { %3435 = vsyncpa [#allocation12], 1 }
0x1898   :  { %3436 = vsyncpa [#allocation15], 1 }
0x1899   :  { %3437 = vsyncpa [#allocation18], 1 }
0x189a   :  { %3438 = vsyncpa [#allocation21], 1 }
0x189b   :  { %3439 = vsyncpa [#allocation24], 1 }
0x189c   :  { %3440 = vsyncpa [#allocation4], 1 }

</bundles_post_ra>
